<compile_context>
chip_gen: v7x
topology: tpu7x:2x2x1
jax: 0.10.0
libtpu: 0.0.40
codegen_flags: <defaults>
</compile_context>

<pallas_src>
import functools

import jax
import jax.numpy as jnp
from jax import lax
from jax.experimental import pallas as pl
from jax.experimental.pallas import tpu as pltpu


def _round_up(x, m):
    return ((x + m - 1) // m) * m


# ----------------------------- Pallas kernel --------------------------------
def _gemm_bias_act_kernel(x_ref, w_ref, b_ref, o_ref, acc_ref, *, use_act, slope):
    """One (tm, tn) output tile; the K reduction is streamed over grid axis 2."""
    k = pl.program_id(2)

    @pl.when(k == 0)
    def _init():
        acc_ref[...] = jnp.zeros_like(acc_ref)

    acc_ref[...] += jnp.dot(x_ref[...], w_ref[...],
                            preferred_element_type=jnp.float32)

    @pl.when(k == pl.num_programs(2) - 1)
    def _finalize():
        out = acc_ref[...] + b_ref[...]
        if use_act:
            out = jnp.where(out >= 0.0, out, slope * out)   # LeakyReLU(0.01)
        o_ref[...] = out.astype(o_ref.dtype)


def pallas_gemm_bias_act(x, w, b, *, use_act, slope=0.01):
    """o = act(x @ w + b) fused.  x:(M,K) bf16, w:(K,N) bf16, b:(N,) f32 -> (M,N) f32."""
    M, K = x.shape
    Kw, N = w.shape
    assert K == Kw

    # --- K (reduction): stream weights in slabs instead of keeping (K, N) resident.
    if K <= 512:
        tk = K
    elif K <= 4096:
        tk = 512
    else:
        tk = 1024
    Kp = _round_up(K, tk)
    nk = Kp // tk

    # --- N (lanes): pad to a multiple of 128 so every store is lane-dense.
    Np = _round_up(N, 128)
    if Np <= 512:
        tn = Np
    elif Np % 512 == 0:
        tn = 512
    elif Np % 256 == 0:
        tn = 256
    else:
        tn = 128
    nn = Np // tn

    # --- M (rows): bigger tiles for the small-K early layers (amortize per-step
    # overhead), smaller when K is large; never over-pad tiny-M layers.
    if K <= 256:
        tm_base = 1024
    elif K <= 1024:
        tm_base = 512
    else:
        tm_base = 256
    tm = min(tm_base, _round_up(M, 8))
    Mp = _round_up(M, tm)
    nm = Mp // tm

    # --- zero-pad operands to the tiled shapes (padding contributes 0 to the dot;
    # padded output rows/cols are sliced off below).
    xp = x if (Mp, Kp) == (M, K) else jnp.pad(x, ((0, Mp - M), (0, Kp - K)))
    wp = w if (Kp, Np) == (K, N) else jnp.pad(w, ((0, Kp - K), (0, Np - N)))
    bp = b.astype(jnp.float32).reshape(1, N)
    if Np != N:
        bp = jnp.pad(bp, ((0, 0), (0, Np - N)))

    # Weight stream: triple-buffer the big weight-bandwidth-bound layers.
    if nk >= 4:
        try:
            w_spec = pl.BlockSpec((tk, tn), lambda i, j, k: (k, j),
                                  pipeline_mode=pl.Buffered(3))
        except (TypeError, AttributeError):
            w_spec = pl.BlockSpec((tk, tn), lambda i, j, k: (k, j))
    else:
        w_spec = pl.BlockSpec((tk, tn), lambda i, j, k: (k, j))

    kernel = functools.partial(_gemm_bias_act_kernel, use_act=use_act, slope=slope)
    cost = pl.CostEstimate(
        flops=2 * Mp * Kp * Np,
        transcendentals=0,
        bytes_accessed=(xp.size * xp.dtype.itemsize + wp.size * wp.dtype.itemsize
                        + bp.size * 4 + Mp * Np * 4),
    )

    out = pl.pallas_call(
        kernel,
        out_shape=jax.ShapeDtypeStruct((Mp, Np), jnp.float32),
        grid_spec=pltpu.PrefetchScalarGridSpec(
            num_scalar_prefetch=0,
            grid=(nm, nn, nk),                                     # reduction axis last
            in_specs=[
                pl.BlockSpec((tm, tk), lambda i, j, k: (i, k)),    # patch-row tile
                w_spec,                                            # streamed weight tile
                pl.BlockSpec((1, tn), lambda i, j, k: (0, j)),     # bias
            ],
            out_specs=pl.BlockSpec((tm, tn), lambda i, j, k: (i, j)),
            scratch_shapes=[pltpu.VMEM((tm, tn), jnp.float32)],    # f32 accumulator
        ),
        compiler_params=pltpu.CompilerParams(
            dimension_semantics=("parallel", "parallel", "arbitrary"),
            vmem_limit_bytes=48 * 1024 * 1024,   # fits v7x's 64 MiB VMEM; fine on v5e/v6e
        ),
        cost_estimate=cost,
    )(xp, wp, bp)
    return out[:M, :N]


# ------------------------------ JAX glue -------------------------------------
def _im2col(x_nhwc, kh, kw, stride, pad):
    # TODO(synk): fuse the halo gather for the first 2-3 stride-2 layers into the
    # kernel (manual make_async_copy of NHWC tiles) to avoid the im2col HBM blowup.
    n, h, w, c = x_nhwc.shape
    xp = jnp.pad(x_nhwc, ((0, 0), (pad, pad), (pad, pad), (0, 0)))
    ho = (h + 2 * pad - kh) // stride + 1
    wo = (w + 2 * pad - kw) // stride + 1
    cols = []
    for i in range(kh):
        for j in range(kw):
            cols.append(xp[:, i:i + stride * ho:stride, j:j + stride * wo:stride, :])
    patches = jnp.concatenate(cols, axis=-1)          # (n, ho, wo, kh*kw*c)
    return patches.reshape(n * ho * wo, kh * kw * c), (n, ho, wo)


def conv2d_pallas(x_nhwc, w_oihw, b, *, stride, pad, use_act):
    c_out, c_in, kh, kw = w_oihw.shape
    # bf16 operands: MXU-native and halves im2col/weight HBM traffic; f32 accumulation.
    patches, (n, ho, wo) = _im2col(x_nhwc.astype(jnp.bfloat16), kh, kw, stride, pad)
    # match patch ordering (tap-major, channel fastest): (kh, kw, C_in, C_out)
    w_mat = jnp.transpose(w_oihw, (2, 3, 1, 0)).reshape(kh * kw * c_in, c_out)
    w_mat = w_mat.astype(jnp.bfloat16)
    if b is None:
        b = jnp.zeros((c_out,), jnp.float32)
    out = pallas_gemm_bias_act(patches, w_mat, b, use_act=use_act)
    return out.reshape(n, ho, wo, c_out)


# --------------------------- parameters / model -------------------------------
def init_params(key, image_size, conv_dim, c_dim, repeat_num):
    specs = [(3, conv_dim)]
    cd = conv_dim
    for _ in range(1, repeat_num - 2):
        specs.append((cd, cd * 2))
        cd *= 2
    specs.append((cd, cd))
    specs.append((cd, cd))
    keys = jax.random.split(key, len(specs) + 2)
    main = []
    for idx, (ci, co) in enumerate(specs):
        wk, bk = jax.random.split(keys[idx])
        fan_in = ci * 4 * 4
        w = jax.random.normal(wk, (co, ci, 4, 4), jnp.float32) / jnp.sqrt(fan_in)
        bias = jax.random.normal(bk, (co,), jnp.float32) * 0.01
        main.append((w, bias))
    ks = image_size // (2 ** repeat_num)
    conv1 = jax.random.normal(keys[-2], (1, cd, 3, 3), jnp.float32) / jnp.sqrt(cd * 9)
    conv2 = jax.random.normal(keys[-1], (c_dim, cd, ks, ks), jnp.float32) / jnp.sqrt(cd * ks * ks)
    return {"main": main, "conv1": conv1, "conv2": conv2}


def discriminator_forward(x_nchw, params):
    h = jnp.transpose(x_nchw, (0, 2, 3, 1))                   # NCHW -> NHWC
    for (w, b) in params["main"]:
        h = conv2d_pallas(h, w, b, stride=2, pad=1, use_act=True)
    out_src = conv2d_pallas(h, params["conv1"], None, stride=1, pad=1, use_act=False)
    out_cls = conv2d_pallas(h, params["conv2"], None, stride=1, pad=0, use_act=False)
    out_src = jnp.transpose(out_src, (0, 3, 1, 2))            # back to NCHW
    n = out_cls.shape[0]
    out_cls = out_cls.reshape(n, out_cls.shape[-1])           # == .view(N, c_dim)
    return out_src, out_cls


# --------------------------- pure-JAX references -------------------------------
def reference_forward(x, params, *, compute_dtype=jnp.float32):
    """lax.conv reference. compute_dtype=bfloat16 mirrors the kernel's operand cast
    (accumulation stays f32), compute_dtype=float32 is the exact module semantics."""
    def conv(x, w, b, stride, pad):
        y = lax.conv_general_dilated(
            x.astype(compute_dtype), w.astype(compute_dtype),
            (stride, stride), ((pad, pad), (pad, pad)),
            dimension_numbers=("NCHW", "OIHW", "NCHW"),
            preferred_element_type=jnp.float32)
        if b is not None:
            y = y + b.reshape(1, -1, 1, 1)
        return y
    h = x
    for (w, b) in params["main"]:
        h = conv(h, w, b, 2, 1)
        h = jnp.where(h >= 0.0, h, 0.01 * h)
    out_src = conv(h, params["conv1"], None, 1, 1)
    out_cls = conv(h, params["conv2"], None, 1, 0)
    return out_src, out_cls.reshape(out_cls.shape[0], out_cls.shape[1])


if __name__ == "__main__":
    # small but structurally faithful config: 6 stride-2 convs -> 64/2^6 = 1
    image_size, conv_dim, c_dim, repeat_num = 64, 8, 5, 6
    batch = 2

    x = jax.random.normal(jax.random.PRNGKey(0), (batch, 3, image_size, image_size),
                          jnp.float32)
    params = init_params(jax.random.PRNGKey(1), image_size, conv_dim, c_dim, repeat_num)

    fwd = jax.jit(discriminator_forward)
    out_src, out_cls = fwd(x, params)
    jax.block_until_ready((out_src, out_cls))

    spatial = image_size // (2 ** repeat_num)
    assert out_src.shape == (batch, 1, spatial, spatial), out_src.shape
    assert out_cls.shape == (batch, c_dim), out_cls.shape

    # 1) tight check against a precision-matched reference (bf16 operands, f32 acc)
    ref_src, ref_cls = reference_forward(x, params, compute_dtype=jnp.bfloat16)
    assert jnp.allclose(out_src, ref_src, atol=1e-3, rtol=1e-3), \
        float(jnp.max(jnp.abs(out_src - ref_src)))
    assert jnp.allclose(out_cls, ref_cls, atol=1e-3, rtol=1e-3), \
        float(jnp.max(jnp.abs(out_cls - ref_cls)))

    # 2) loose sanity check against the full-f32 module semantics
    f32_src, f32_cls = reference_forward(x, params, compute_dtype=jnp.float32)
    assert jnp.allclose(out_src, f32_src, atol=5e-2, rtol=5e-2), \
        float(jnp.max(jnp.abs(out_src - f32_src)))
    assert jnp.allclose(out_cls, f32_cls, atol=5e-2, rtol=5e-2), \
        float(jnp.max(jnp.abs(out_cls - f32_cls)))

    print("KERNEL_OK")
</pallas_src>

<mosaic_0001>
module attributes {stable_mosaic.version = 11 : i64} {
  func.func @_gemm_bias_act_kernel(%arg0: i32, %arg1: i32, %arg2: i32, %arg3: memref<1024x48xbf16, #tpu.memory_space<vmem>>, %arg4: memref<48x128xbf16, #tpu.memory_space<vmem>>, %arg5: memref<1x128xf32, #tpu.memory_space<vmem>>, %arg6: memref<1024x128xf32, #tpu.memory_space<vmem>>, %arg7: memref<1024x128xf32, #tpu.memory_space<vmem>>) attributes {dimension_semantics = [#tpu.dimension_semantics<parallel>, #tpu.dimension_semantics<parallel>, #tpu.dimension_semantics<arbitrary>], iteration_bounds = array<i64: 2, 1, 1>, scalar_prefetch = 0 : i64, scratch_operands = 1 : i64, tpu.core_type = #tpu.core_type<tc>, window_params = [{transform_indices = @transform_0, window_bounds = array<i64: 1024, 48>}, {transform_indices = @transform_1, window_bounds = array<i64: 48, 128>}, {transform_indices = @transform_2, window_bounds = array<i64: 1, 128>}, {transform_indices = @transform_3, window_bounds = array<i64: 1024, 128>}]} {
    %c0_i32 = arith.constant 0 : i32
    %0 = arith.cmpi eq, %arg2, %c0_i32 : i32
    %1 = arith.extui %0 : i1 to i32
    %c0_i32_0 = arith.constant 0 : i32
    %2 = arith.cmpi ne, %1, %c0_i32_0 : i32
    scf.if %2 {
      %cst_10 = arith.constant 0.000000e+00 : f32
      %12 = vector.broadcast %cst_10 : f32 to vector<1024x128xf32>
      %c0_11 = arith.constant 0 : index
      %c0_12 = arith.constant 0 : index
      %13 = vector.load %arg7[%c0_11, %c0_12] : memref<1024x128xf32, #tpu.memory_space<vmem>>, vector<1024x128xf32>
      tpu.vector_store %arg7[%c0_11, %c0_12], %12 {strides = array<i32>} : memref<1024x128xf32, #tpu.memory_space<vmem>>, vector<1024x128xf32>,
    } else {
    }
    %c0 = arith.constant 0 : index
    %c0_1 = arith.constant 0 : index
    %3 = vector.load %arg7[%c0, %c0_1] : memref<1024x128xf32, #tpu.memory_space<vmem>>, vector<1024x128xf32>
    %c0_2 = arith.constant 0 : index
    %c0_3 = arith.constant 0 : index
    %4 = vector.load %arg3[%c0_2, %c0_3] : memref<1024x48xbf16, #tpu.memory_space<vmem>>, vector<1024x48xbf16>
    %c0_4 = arith.constant 0 : index
    %c0_5 = arith.constant 0 : index
    %5 = vector.load %arg4[%c0_4, %c0_5] : memref<48x128xbf16, #tpu.memory_space<vmem>>, vector<48x128xbf16>
    %cst = arith.constant dense<0.000000e+00> : vector<1024x128xf32>
    %6 = tpu.matmul %4, %5, %cst {dimension_numbers = #tpu.dot_dimension_numbers<[1], [0], [0], [1], [0, 0, 1, 1], [], []>} : vector<1024x48xbf16>, vector<48x128xbf16>, vector<1024x128xf32> -> vector<1024x128xf32>
    %7 = arith.addf %3, %6 : vector<1024x128xf32>
    %c0_6 = arith.constant 0 : index
    %c0_7 = arith.constant 0 : index
    %8 = vector.load %arg7[%c0_6, %c0_7] : memref<1024x128xf32, #tpu.memory_space<vmem>>, vector<1024x128xf32>
    tpu.vector_store %arg7[%c0_6, %c0_7], %7 {strides = array<i32>} : memref<1024x128xf32, #tpu.memory_space<vmem>>, vector<1024x128xf32>,
    %c0_i32_8 = arith.constant 0 : i32
    %9 = arith.cmpi eq, %arg2, %c0_i32_8 : i32
    %10 = arith.extui %9 : i1 to i32
    %c0_i32_9 = arith.constant 0 : i32
    %11 = arith.cmpi ne, %10, %c0_i32_9 : i32
    scf.if %11 {
      %c0_10 = arith.constant 0 : index
      %c0_11 = arith.constant 0 : index
      %12 = vector.load %arg7[%c0_10, %c0_11] : memref<1024x128xf32, #tpu.memory_space<vmem>>, vector<1024x128xf32>
      %c0_12 = arith.constant 0 : index
      %c0_13 = arith.constant 0 : index
      %13 = vector.load %arg5[%c0_12, %c0_13] : memref<1x128xf32, #tpu.memory_space<vmem>>, vector<1x128xf32>
      %14 = vector.broadcast %13 : vector<1x128xf32> to vector<1024x128xf32>
      %15 = arith.addf %12, %14 : vector<1024x128xf32>
      %cst_14 = arith.constant 0.000000e+00 : f32
      %16 = vector.broadcast %cst_14 : f32 to vector<1024x128xf32>
      %17 = arith.cmpf oge, %15, %16 : vector<1024x128xf32>
      %cst_15 = arith.constant 0.00999999977 : f32
      %18 = vector.broadcast %cst_15 : f32 to vector<1024x128xf32>
      %19 = arith.mulf %18, %15 : vector<1024x128xf32>
      %20 = arith.select %17, %15, %19 : vector<1024x128xi1>, vector<1024x128xf32>
      %c0_16 = arith.constant 0 : index
      %c0_17 = arith.constant 0 : index
      %21 = vector.load %arg6[%c0_16, %c0_17] : memref<1024x128xf32, #tpu.memory_space<vmem>>, vector<1024x128xf32>
      tpu.vector_store %arg6[%c0_16, %c0_17], %20 {strides = array<i32>} : memref<1024x128xf32, #tpu.memory_space<vmem>>, vector<1024x128xf32>,
    } else {
    }
    return
  }
  func.func @transform_0(%arg0: i32, %arg1: i32, %arg2: i32) -> (i32, i32) {
    %c0_i32 = arith.constant 0 : i32
    return %arg0, %arg2 : i32, i32
  }
  func.func @transform_1(%arg0: i32, %arg1: i32, %arg2: i32) -> (i32, i32) {
    %c0_i32 = arith.constant 0 : i32
    return %arg2, %arg1 : i32, i32
  }
  func.func @transform_2(%arg0: i32, %arg1: i32, %arg2: i32) -> (i32, i32) {
    %c0_i32 = arith.constant 0 : i32
    %c0_i32_0 = arith.constant 0 : i32
    return %c0_i32, %arg1 : i32, i32
  }
  func.func @transform_3(%arg0: i32, %arg1: i32, %arg2: i32) -> (i32, i32) {
    %c0_i32 = arith.constant 0 : i32
    return %arg0, %arg1 : i32, i32
  }
}

module attributes {stable_mosaic.version = 11 : i64} {
  func.func @_gemm_bias_act_kernel(%arg0: i32, %arg1: i32, %arg2: i32, %arg3: memref<512x128xbf16, #tpu.memory_space<vmem>>, %arg4: memref<128x128xbf16, #tpu.memory_space<vmem>>, %arg5: memref<1x128xf32, #tpu.memory_space<vmem>>, %arg6: memref<512x128xf32, #tpu.memory_space<vmem>>, %arg7: memref<512x128xf32, #tpu.memory_space<vmem>>) attributes {dimension_semantics = [#tpu.dimension_semantics<parallel>, #tpu.dimension_semantics<parallel>, #tpu.dimension_semantics<arbitrary>], iteration_bounds = array<i64: 1, 1, 1>, scalar_prefetch = 0 : i64, scratch_operands = 1 : i64, tpu.core_type = #tpu.core_type<tc>, window_params = [{transform_indices = @transform_0, window_bounds = array<i64: 512, 128>}, {transform_indices = @transform_1, window_bounds = array<i64: 128, 128>}, {transform_indices = @transform_2, window_bounds = array<i64: 1, 128>}, {transform_indices = @transform_3, window_bounds = array<i64: 512, 128>}]} {
    %c0_i32 = arith.constant 0 : i32
    %0 = arith.cmpi eq, %arg2, %c0_i32 : i32
    %1 = arith.extui %0 : i1 to i32
    %c0_i32_0 = arith.constant 0 : i32
    %2 = arith.cmpi ne, %1, %c0_i32_0 : i32
    scf.if %2 {
      %cst_10 = arith.constant 0.000000e+00 : f32
      %12 = vector.broadcast %cst_10 : f32 to vector<512x128xf32>
      %c0_11 = arith.constant 0 : index
      %c0_12 = arith.constant 0 : index
      %13 = vector.load %arg7[%c0_11, %c0_12] : memref<512x128xf32, #tpu.memory_space<vmem>>, vector<512x128xf32>
      tpu.vector_store %arg7[%c0_11, %c0_12], %12 {strides = array<i32>} : memref<512x128xf32, #tpu.memory_space<vmem>>, vector<512x128xf32>,
    } else {
    }
    %c0 = arith.constant 0 : index
    %c0_1 = arith.constant 0 : index
    %3 = vector.load %arg7[%c0, %c0_1] : memref<512x128xf32, #tpu.memory_space<vmem>>, vector<512x128xf32>
    %c0_2 = arith.constant 0 : index
    %c0_3 = arith.constant 0 : index
    %4 = vector.load %arg3[%c0_2, %c0_3] : memref<512x128xbf16, #tpu.memory_space<vmem>>, vector<512x128xbf16>
    %c0_4 = arith.constant 0 : index
    %c0_5 = arith.constant 0 : index
    %5 = vector.load %arg4[%c0_4, %c0_5] : memref<128x128xbf16, #tpu.memory_space<vmem>>, vector<128x128xbf16>
    %cst = arith.constant dense<0.000000e+00> : vector<512x128xf32>
    %6 = tpu.matmul %4, %5, %cst {dimension_numbers = #tpu.dot_dimension_numbers<[1], [0], [0], [1], [0, 0, 1, 1], [], []>} : vector<512x128xbf16>, vector<128x128xbf16>, vector<512x128xf32> -> vector<512x128xf32>
    %7 = arith.addf %3, %6 : vector<512x128xf32>
    %c0_6 = arith.constant 0 : index
    %c0_7 = arith.constant 0 : index
    %8 = vector.load %arg7[%c0_6, %c0_7] : memref<512x128xf32, #tpu.memory_space<vmem>>, vector<512x128xf32>
    tpu.vector_store %arg7[%c0_6, %c0_7], %7 {strides = array<i32>} : memref<512x128xf32, #tpu.memory_space<vmem>>, vector<512x128xf32>,
    %c0_i32_8 = arith.constant 0 : i32
    %9 = arith.cmpi eq, %arg2, %c0_i32_8 : i32
    %10 = arith.extui %9 : i1 to i32
    %c0_i32_9 = arith.constant 0 : i32
    %11 = arith.cmpi ne, %10, %c0_i32_9 : i32
    scf.if %11 {
      %c0_10 = arith.constant 0 : index
      %c0_11 = arith.constant 0 : index
      %12 = vector.load %arg7[%c0_10, %c0_11] : memref<512x128xf32, #tpu.memory_space<vmem>>, vector<512x128xf32>
      %c0_12 = arith.constant 0 : index
      %c0_13 = arith.constant 0 : index
      %13 = vector.load %arg5[%c0_12, %c0_13] : memref<1x128xf32, #tpu.memory_space<vmem>>, vector<1x128xf32>
      %14 = vector.broadcast %13 : vector<1x128xf32> to vector<512x128xf32>
      %15 = arith.addf %12, %14 : vector<512x128xf32>
      %cst_14 = arith.constant 0.000000e+00 : f32
      %16 = vector.broadcast %cst_14 : f32 to vector<512x128xf32>
      %17 = arith.cmpf oge, %15, %16 : vector<512x128xf32>
      %cst_15 = arith.constant 0.00999999977 : f32
      %18 = vector.broadcast %cst_15 : f32 to vector<512x128xf32>
      %19 = arith.mulf %18, %15 : vector<512x128xf32>
      %20 = arith.select %17, %15, %19 : vector<512x128xi1>, vector<512x128xf32>
      %c0_16 = arith.constant 0 : index
      %c0_17 = arith.constant 0 : index
      %21 = vector.load %arg6[%c0_16, %c0_17] : memref<512x128xf32, #tpu.memory_space<vmem>>, vector<512x128xf32>
      tpu.vector_store %arg6[%c0_16, %c0_17], %20 {strides = array<i32>} : memref<512x128xf32, #tpu.memory_space<vmem>>, vector<512x128xf32>,
    } else {
    }
    return
  }
  func.func @transform_0(%arg0: i32, %arg1: i32, %arg2: i32) -> (i32, i32) {
    %c0_i32 = arith.constant 0 : i32
    return %arg0, %arg2 : i32, i32
  }
  func.func @transform_1(%arg0: i32, %arg1: i32, %arg2: i32) -> (i32, i32) {
    %c0_i32 = arith.constant 0 : i32
    return %arg2, %arg1 : i32, i32
  }
  func.func @transform_2(%arg0: i32, %arg1: i32, %arg2: i32) -> (i32, i32) {
    %c0_i32 = arith.constant 0 : i32
    %c0_i32_0 = arith.constant 0 : i32
    return %c0_i32, %arg1 : i32, i32
  }
  func.func @transform_3(%arg0: i32, %arg1: i32, %arg2: i32) -> (i32, i32) {
    %c0_i32 = arith.constant 0 : i32
    return %arg0, %arg1 : i32, i32
  }
}

module attributes {stable_mosaic.version = 11 : i64} {
  func.func @_gemm_bias_act_kernel(%arg0: i32, %arg1: i32, %arg2: i32, %arg3: memref<128x256xbf16, #tpu.memory_space<vmem>>, %arg4: memref<256x128xbf16, #tpu.memory_space<vmem>>, %arg5: memref<1x128xf32, #tpu.memory_space<vmem>>, %arg6: memref<128x128xf32, #tpu.memory_space<vmem>>, %arg7: memref<128x128xf32, #tpu.memory_space<vmem>>) attributes {dimension_semantics = [#tpu.dimension_semantics<parallel>, #tpu.dimension_semantics<parallel>, #tpu.dimension_semantics<arbitrary>], iteration_bounds = array<i64: 1, 1, 1>, scalar_prefetch = 0 : i64, scratch_operands = 1 : i64, tpu.core_type = #tpu.core_type<tc>, window_params = [{transform_indices = @transform_0, window_bounds = array<i64: 128, 256>}, {transform_indices = @transform_1, window_bounds = array<i64: 256, 128>}, {transform_indices = @transform_2, window_bounds = array<i64: 1, 128>}, {transform_indices = @transform_3, window_bounds = array<i64: 128, 128>}]} {
    %c0_i32 = arith.constant 0 : i32
    %0 = arith.cmpi eq, %arg2, %c0_i32 : i32
    %1 = arith.extui %0 : i1 to i32
    %c0_i32_0 = arith.constant 0 : i32
    %2 = arith.cmpi ne, %1, %c0_i32_0 : i32
    scf.if %2 {
      %cst_10 = arith.constant 0.000000e+00 : f32
      %12 = vector.broadcast %cst_10 : f32 to vector<128x128xf32>
      %c0_11 = arith.constant 0 : index
      %c0_12 = arith.constant 0 : index
      %13 = vector.load %arg7[%c0_11, %c0_12] : memref<128x128xf32, #tpu.memory_space<vmem>>, vector<128x128xf32>
      tpu.vector_store %arg7[%c0_11, %c0_12], %12 {strides = array<i32>} : memref<128x128xf32, #tpu.memory_space<vmem>>, vector<128x128xf32>,
    } else {
    }
    %c0 = arith.constant 0 : index
    %c0_1 = arith.constant 0 : index
    %3 = vector.load %arg7[%c0, %c0_1] : memref<128x128xf32, #tpu.memory_space<vmem>>, vector<128x128xf32>
    %c0_2 = arith.constant 0 : index
    %c0_3 = arith.constant 0 : index
    %4 = vector.load %arg3[%c0_2, %c0_3] : memref<128x256xbf16, #tpu.memory_space<vmem>>, vector<128x256xbf16>
    %c0_4 = arith.constant 0 : index
    %c0_5 = arith.constant 0 : index
    %5 = vector.load %arg4[%c0_4, %c0_5] : memref<256x128xbf16, #tpu.memory_space<vmem>>, vector<256x128xbf16>
    %cst = arith.constant dense<0.000000e+00> : vector<128x128xf32>
    %6 = tpu.matmul %4, %5, %cst {dimension_numbers = #tpu.dot_dimension_numbers<[1], [0], [0], [1], [0, 0, 1, 1], [], []>} : vector<128x256xbf16>, vector<256x128xbf16>, vector<128x128xf32> -> vector<128x128xf32>
    %7 = arith.addf %3, %6 : vector<128x128xf32>
    %c0_6 = arith.constant 0 : index
    %c0_7 = arith.constant 0 : index
    %8 = vector.load %arg7[%c0_6, %c0_7] : memref<128x128xf32, #tpu.memory_space<vmem>>, vector<128x128xf32>
    tpu.vector_store %arg7[%c0_6, %c0_7], %7 {strides = array<i32>} : memref<128x128xf32, #tpu.memory_space<vmem>>, vector<128x128xf32>,
    %c0_i32_8 = arith.constant 0 : i32
    %9 = arith.cmpi eq, %arg2, %c0_i32_8 : i32
    %10 = arith.extui %9 : i1 to i32
    %c0_i32_9 = arith.constant 0 : i32
    %11 = arith.cmpi ne, %10, %c0_i32_9 : i32
    scf.if %11 {
      %c0_10 = arith.constant 0 : index
      %c0_11 = arith.constant 0 : index
      %12 = vector.load %arg7[%c0_10, %c0_11] : memref<128x128xf32, #tpu.memory_space<vmem>>, vector<128x128xf32>
      %c0_12 = arith.constant 0 : index
      %c0_13 = arith.constant 0 : index
      %13 = vector.load %arg5[%c0_12, %c0_13] : memref<1x128xf32, #tpu.memory_space<vmem>>, vector<1x128xf32>
      %14 = vector.broadcast %13 : vector<1x128xf32> to vector<128x128xf32>
      %15 = arith.addf %12, %14 : vector<128x128xf32>
      %cst_14 = arith.constant 0.000000e+00 : f32
      %16 = vector.broadcast %cst_14 : f32 to vector<128x128xf32>
      %17 = arith.cmpf oge, %15, %16 : vector<128x128xf32>
      %cst_15 = arith.constant 0.00999999977 : f32
      %18 = vector.broadcast %cst_15 : f32 to vector<128x128xf32>
      %19 = arith.mulf %18, %15 : vector<128x128xf32>
      %20 = arith.select %17, %15, %19 : vector<128x128xi1>, vector<128x128xf32>
      %c0_16 = arith.constant 0 : index
      %c0_17 = arith.constant 0 : index
      %21 = vector.load %arg6[%c0_16, %c0_17] : memref<128x128xf32, #tpu.memory_space<vmem>>, vector<128x128xf32>
      tpu.vector_store %arg6[%c0_16, %c0_17], %20 {strides = array<i32>} : memref<128x128xf32, #tpu.memory_space<vmem>>, vector<128x128xf32>,
    } else {
    }
    return
  }
  func.func @transform_0(%arg0: i32, %arg1: i32, %arg2: i32) -> (i32, i32) {
    %c0_i32 = arith.constant 0 : i32
    return %arg0, %arg2 : i32, i32
  }
  func.func @transform_1(%arg0: i32, %arg1: i32, %arg2: i32) -> (i32, i32) {
    %c0_i32 = arith.constant 0 : i32
    return %arg2, %arg1 : i32, i32
  }
  func.func @transform_2(%arg0: i32, %arg1: i32, %arg2: i32) -> (i32, i32) {
    %c0_i32 = arith.constant 0 : i32
    %c0_i32_0 = arith.constant 0 : i32
    return %c0_i32, %arg1 : i32, i32
  }
  func.func @transform_3(%arg0: i32, %arg1: i32, %arg2: i32) -> (i32, i32) {
    %c0_i32 = arith.constant 0 : i32
    return %arg0, %arg1 : i32, i32
  }
}

module attributes {stable_mosaic.version = 11 : i64} {
  func.func @_gemm_bias_act_kernel(%arg0: i32, %arg1: i32, %arg2: i32, %arg3: memref<32x512xbf16, #tpu.memory_space<vmem>>, %arg4: memref<512x128xbf16, #tpu.memory_space<vmem>>, %arg5: memref<1x128xf32, #tpu.memory_space<vmem>>, %arg6: memref<32x128xf32, #tpu.memory_space<vmem>>, %arg7: memref<32x128xf32, #tpu.memory_space<vmem>>) attributes {dimension_semantics = [#tpu.dimension_semantics<parallel>, #tpu.dimension_semantics<parallel>, #tpu.dimension_semantics<arbitrary>], iteration_bounds = array<i64: 1, 1, 1>, scalar_prefetch = 0 : i64, scratch_operands = 1 : i64, tpu.core_type = #tpu.core_type<tc>, window_params = [{transform_indices = @transform_0, window_bounds = array<i64: 32, 512>}, {transform_indices = @transform_1, window_bounds = array<i64: 512, 128>}, {transform_indices = @transform_2, window_bounds = array<i64: 1, 128>}, {transform_indices = @transform_3, window_bounds = array<i64: 32, 128>}]} {
    %c0_i32 = arith.constant 0 : i32
    %0 = arith.cmpi eq, %arg2, %c0_i32 : i32
    %1 = arith.extui %0 : i1 to i32
    %c0_i32_0 = arith.constant 0 : i32
    %2 = arith.cmpi ne, %1, %c0_i32_0 : i32
    scf.if %2 {
      %cst_10 = arith.constant 0.000000e+00 : f32
      %12 = vector.broadcast %cst_10 : f32 to vector<32x128xf32>
      %c0_11 = arith.constant 0 : index
      %c0_12 = arith.constant 0 : index
      %13 = vector.load %arg7[%c0_11, %c0_12] : memref<32x128xf32, #tpu.memory_space<vmem>>, vector<32x128xf32>
      tpu.vector_store %arg7[%c0_11, %c0_12], %12 {strides = array<i32>} : memref<32x128xf32, #tpu.memory_space<vmem>>, vector<32x128xf32>,
    } else {
    }
    %c0 = arith.constant 0 : index
    %c0_1 = arith.constant 0 : index
    %3 = vector.load %arg7[%c0, %c0_1] : memref<32x128xf32, #tpu.memory_space<vmem>>, vector<32x128xf32>
    %c0_2 = arith.constant 0 : index
    %c0_3 = arith.constant 0 : index
    %4 = vector.load %arg3[%c0_2, %c0_3] : memref<32x512xbf16, #tpu.memory_space<vmem>>, vector<32x512xbf16>
    %c0_4 = arith.constant 0 : index
    %c0_5 = arith.constant 0 : index
    %5 = vector.load %arg4[%c0_4, %c0_5] : memref<512x128xbf16, #tpu.memory_space<vmem>>, vector<512x128xbf16>
    %cst = arith.constant dense<0.000000e+00> : vector<32x128xf32>
    %6 = tpu.matmul %4, %5, %cst {dimension_numbers = #tpu.dot_dimension_numbers<[1], [0], [0], [1], [0, 0, 1, 1], [], []>} : vector<32x512xbf16>, vector<512x128xbf16>, vector<32x128xf32> -> vector<32x128xf32>
    %7 = arith.addf %3, %6 : vector<32x128xf32>
    %c0_6 = arith.constant 0 : index
    %c0_7 = arith.constant 0 : index
    %8 = vector.load %arg7[%c0_6, %c0_7] : memref<32x128xf32, #tpu.memory_space<vmem>>, vector<32x128xf32>
    tpu.vector_store %arg7[%c0_6, %c0_7], %7 {strides = array<i32>} : memref<32x128xf32, #tpu.memory_space<vmem>>, vector<32x128xf32>,
    %c0_i32_8 = arith.constant 0 : i32
    %9 = arith.cmpi eq, %arg2, %c0_i32_8 : i32
    %10 = arith.extui %9 : i1 to i32
    %c0_i32_9 = arith.constant 0 : i32
    %11 = arith.cmpi ne, %10, %c0_i32_9 : i32
    scf.if %11 {
      %c0_10 = arith.constant 0 : index
      %c0_11 = arith.constant 0 : index
      %12 = vector.load %arg7[%c0_10, %c0_11] : memref<32x128xf32, #tpu.memory_space<vmem>>, vector<32x128xf32>
      %c0_12 = arith.constant 0 : index
      %c0_13 = arith.constant 0 : index
      %13 = vector.load %arg5[%c0_12, %c0_13] : memref<1x128xf32, #tpu.memory_space<vmem>>, vector<1x128xf32>
      %14 = vector.broadcast %13 : vector<1x128xf32> to vector<32x128xf32>
      %15 = arith.addf %12, %14 : vector<32x128xf32>
      %cst_14 = arith.constant 0.000000e+00 : f32
      %16 = vector.broadcast %cst_14 : f32 to vector<32x128xf32>
      %17 = arith.cmpf oge, %15, %16 : vector<32x128xf32>
      %cst_15 = arith.constant 0.00999999977 : f32
      %18 = vector.broadcast %cst_15 : f32 to vector<32x128xf32>
      %19 = arith.mulf %18, %15 : vector<32x128xf32>
      %20 = arith.select %17, %15, %19 : vector<32x128xi1>, vector<32x128xf32>
      %c0_16 = arith.constant 0 : index
      %c0_17 = arith.constant 0 : index
      %21 = vector.load %arg6[%c0_16, %c0_17] : memref<32x128xf32, #tpu.memory_space<vmem>>, vector<32x128xf32>
      tpu.vector_store %arg6[%c0_16, %c0_17], %20 {strides = array<i32>} : memref<32x128xf32, #tpu.memory_space<vmem>>, vector<32x128xf32>,
    } else {
    }
    return
  }
  func.func @transform_0(%arg0: i32, %arg1: i32, %arg2: i32) -> (i32, i32) {
    %c0_i32 = arith.constant 0 : i32
    return %arg0, %arg2 : i32, i32
  }
  func.func @transform_1(%arg0: i32, %arg1: i32, %arg2: i32) -> (i32, i32) {
    %c0_i32 = arith.constant 0 : i32
    return %arg2, %arg1 : i32, i32
  }
  func.func @transform_2(%arg0: i32, %arg1: i32, %arg2: i32) -> (i32, i32) {
    %c0_i32 = arith.constant 0 : i32
    %c0_i32_0 = arith.constant 0 : i32
    return %c0_i32, %arg1 : i32, i32
  }
  func.func @transform_3(%arg0: i32, %arg1: i32, %arg2: i32) -> (i32, i32) {
    %c0_i32 = arith.constant 0 : i32
    return %arg0, %arg1 : i32, i32
  }
}

module attributes {stable_mosaic.version = 11 : i64} {
  func.func @_gemm_bias_act_kernel(%arg0: i32, %arg1: i32, %arg2: i32, %arg3: memref<8x512xbf16, #tpu.memory_space<vmem>>, %arg4: memref<512x128xbf16, #tpu.memory_space<vmem>>, %arg5: memref<1x128xf32, #tpu.memory_space<vmem>>, %arg6: memref<8x128xf32, #tpu.memory_space<vmem>>, %arg7: memref<8x128xf32, #tpu.memory_space<vmem>>) attributes {dimension_semantics = [#tpu.dimension_semantics<parallel>, #tpu.dimension_semantics<parallel>, #tpu.dimension_semantics<arbitrary>], iteration_bounds = array<i64: 1, 1, 2>, scalar_prefetch = 0 : i64, scratch_operands = 1 : i64, tpu.core_type = #tpu.core_type<tc>, window_params = [{transform_indices = @transform_0, window_bounds = array<i64: 8, 512>}, {transform_indices = @transform_1, window_bounds = array<i64: 512, 128>}, {transform_indices = @transform_2, window_bounds = array<i64: 1, 128>}, {transform_indices = @transform_3, window_bounds = array<i64: 8, 128>}]} {
    %c0_i32 = arith.constant 0 : i32
    %0 = arith.cmpi eq, %arg2, %c0_i32 : i32
    %1 = arith.extui %0 : i1 to i32
    %c0_i32_0 = arith.constant 0 : i32
    %2 = arith.cmpi ne, %1, %c0_i32_0 : i32
    scf.if %2 {
      %cst_9 = arith.constant 0.000000e+00 : f32
      %12 = vector.broadcast %cst_9 : f32 to vector<8x128xf32>
      %c0_10 = arith.constant 0 : index
      %c0_11 = arith.constant 0 : index
      %13 = vector.load %arg7[%c0_10, %c0_11] : memref<8x128xf32, #tpu.memory_space<vmem>>, vector<8x128xf32>
      tpu.vector_store %arg7[%c0_10, %c0_11], %12 {strides = array<i32>} : memref<8x128xf32, #tpu.memory_space<vmem>>, vector<8x128xf32>,
    } else {
    }
    %c0 = arith.constant 0 : index
    %c0_1 = arith.constant 0 : index
    %3 = vector.load %arg7[%c0, %c0_1] : memref<8x128xf32, #tpu.memory_space<vmem>>, vector<8x128xf32>
    %c0_2 = arith.constant 0 : index
    %c0_3 = arith.constant 0 : index
    %4 = vector.load %arg3[%c0_2, %c0_3] : memref<8x512xbf16, #tpu.memory_space<vmem>>, vector<8x512xbf16>
    %c0_4 = arith.constant 0 : index
    %c0_5 = arith.constant 0 : index
    %5 = vector.load %arg4[%c0_4, %c0_5] : memref<512x128xbf16, #tpu.memory_space<vmem>>, vector<512x128xbf16>
    %cst = arith.constant dense<0.000000e+00> : vector<8x128xf32>
    %6 = tpu.matmul %4, %5, %cst {dimension_numbers = #tpu.dot_dimension_numbers<[1], [0], [0], [1], [0, 0, 1, 1], [], []>} : vector<8x512xbf16>, vector<512x128xbf16>, vector<8x128xf32> -> vector<8x128xf32>
    %7 = arith.addf %3, %6 : vector<8x128xf32>
    %c0_6 = arith.constant 0 : index
    %c0_7 = arith.constant 0 : index
    %8 = vector.load %arg7[%c0_6, %c0_7] : memref<8x128xf32, #tpu.memory_space<vmem>>, vector<8x128xf32>
    tpu.vector_store %arg7[%c0_6, %c0_7], %7 {strides = array<i32>} : memref<8x128xf32, #tpu.memory_space<vmem>>, vector<8x128xf32>,
    %c1_i32 = arith.constant 1 : i32
    %9 = arith.cmpi eq, %arg2, %c1_i32 : i32
    %10 = arith.extui %9 : i1 to i32
    %c0_i32_8 = arith.constant 0 : i32
    %11 = arith.cmpi ne, %10, %c0_i32_8 : i32
    scf.if %11 {
      %c0_9 = arith.constant 0 : index
      %c0_10 = arith.constant 0 : index
      %12 = vector.load %arg7[%c0_9, %c0_10] : memref<8x128xf32, #tpu.memory_space<vmem>>, vector<8x128xf32>
      %c0_11 = arith.constant 0 : index
      %c0_12 = arith.constant 0 : index
      %13 = vector.load %arg5[%c0_11, %c0_12] : memref<1x128xf32, #tpu.memory_space<vmem>>, vector<1x128xf32>
      %14 = vector.broadcast %13 : vector<1x128xf32> to vector<8x128xf32>
      %15 = arith.addf %12, %14 : vector<8x128xf32>
      %cst_13 = arith.constant 0.000000e+00 : f32
      %16 = vector.broadcast %cst_13 : f32 to vector<8x128xf32>
      %17 = arith.cmpf oge, %15, %16 : vector<8x128xf32>
      %cst_14 = arith.constant 0.00999999977 : f32
      %18 = vector.broadcast %cst_14 : f32 to vector<8x128xf32>
      %19 = arith.mulf %18, %15 : vector<8x128xf32>
      %20 = arith.select %17, %15, %19 : vector<8x128xi1>, vector<8x128xf32>
      %c0_15 = arith.constant 0 : index
      %c0_16 = arith.constant 0 : index
      %21 = vector.load %arg6[%c0_15, %c0_16] : memref<8x128xf32, #tpu.memory_space<vmem>>, vector<8x128xf32>
      tpu.vector_store %arg6[%c0_15, %c0_16], %20 {strides = array<i32>} : memref<8x128xf32, #tpu.memory_space<vmem>>, vector<8x128xf32>,
    } else {
    }
    return
  }
  func.func @transform_0(%arg0: i32, %arg1: i32, %arg2: i32) -> (i32, i32) {
    %c0_i32 = arith.constant 0 : i32
    return %arg0, %arg2 : i32, i32
  }
  func.func @transform_1(%arg0: i32, %arg1: i32, %arg2: i32) -> (i32, i32) {
    %c0_i32 = arith.constant 0 : i32
    return %arg2, %arg1 : i32, i32
  }
  func.func @transform_2(%arg0: i32, %arg1: i32, %arg2: i32) -> (i32, i32) {
    %c0_i32 = arith.constant 0 : i32
    %c0_i32_0 = arith.constant 0 : i32
    return %c0_i32, %arg1 : i32, i32
  }
  func.func @transform_3(%arg0: i32, %arg1: i32, %arg2: i32) -> (i32, i32) {
    %c0_i32 = arith.constant 0 : i32
    return %arg0, %arg1 : i32, i32
  }
}

module attributes {stable_mosaic.version = 11 : i64} {
  func.func @_gemm_bias_act_kernel(%arg0: i32, %arg1: i32, %arg2: i32, %arg3: memref<8x512xbf16, #tpu.memory_space<vmem>>, %arg4: memref<512x128xbf16, #tpu.memory_space<vmem>>, %arg5: memref<1x128xf32, #tpu.memory_space<vmem>>, %arg6: memref<8x128xf32, #tpu.memory_space<vmem>>, %arg7: memref<8x128xf32, #tpu.memory_space<vmem>>) attributes {dimension_semantics = [#tpu.dimension_semantics<parallel>, #tpu.dimension_semantics<parallel>, #tpu.dimension_semantics<arbitrary>], iteration_bounds = array<i64: 1, 1, 2>, scalar_prefetch = 0 : i64, scratch_operands = 1 : i64, tpu.core_type = #tpu.core_type<tc>, window_params = [{transform_indices = @transform_0, window_bounds = array<i64: 8, 512>}, {transform_indices = @transform_1, window_bounds = array<i64: 512, 128>}, {transform_indices = @transform_2, window_bounds = array<i64: 1, 128>}, {transform_indices = @transform_3, window_bounds = array<i64: 8, 128>}]} {
    %c0_i32 = arith.constant 0 : i32
    %0 = arith.cmpi eq, %arg2, %c0_i32 : i32
    %1 = arith.extui %0 : i1 to i32
    %c0_i32_0 = arith.constant 0 : i32
    %2 = arith.cmpi ne, %1, %c0_i32_0 : i32
    scf.if %2 {
      %cst_9 = arith.constant 0.000000e+00 : f32
      %12 = vector.broadcast %cst_9 : f32 to vector<8x128xf32>
      %c0_10 = arith.constant 0 : index
      %c0_11 = arith.constant 0 : index
      %13 = vector.load %arg7[%c0_10, %c0_11] : memref<8x128xf32, #tpu.memory_space<vmem>>, vector<8x128xf32>
      tpu.vector_store %arg7[%c0_10, %c0_11], %12 {strides = array<i32>} : memref<8x128xf32, #tpu.memory_space<vmem>>, vector<8x128xf32>,
    } else {
    }
    %c0 = arith.constant 0 : index
    %c0_1 = arith.constant 0 : index
    %3 = vector.load %arg7[%c0, %c0_1] : memref<8x128xf32, #tpu.memory_space<vmem>>, vector<8x128xf32>
    %c0_2 = arith.constant 0 : index
    %c0_3 = arith.constant 0 : index
    %4 = vector.load %arg3[%c0_2, %c0_3] : memref<8x512xbf16, #tpu.memory_space<vmem>>, vector<8x512xbf16>
    %c0_4 = arith.constant 0 : index
    %c0_5 = arith.constant 0 : index
    %5 = vector.load %arg4[%c0_4, %c0_5] : memref<512x128xbf16, #tpu.memory_space<vmem>>, vector<512x128xbf16>
    %cst = arith.constant dense<0.000000e+00> : vector<8x128xf32>
    %6 = tpu.matmul %4, %5, %cst {dimension_numbers = #tpu.dot_dimension_numbers<[1], [0], [0], [1], [0, 0, 1, 1], [], []>} : vector<8x512xbf16>, vector<512x128xbf16>, vector<8x128xf32> -> vector<8x128xf32>
    %7 = arith.addf %3, %6 : vector<8x128xf32>
    %c0_6 = arith.constant 0 : index
    %c0_7 = arith.constant 0 : index
    %8 = vector.load %arg7[%c0_6, %c0_7] : memref<8x128xf32, #tpu.memory_space<vmem>>, vector<8x128xf32>
    tpu.vector_store %arg7[%c0_6, %c0_7], %7 {strides = array<i32>} : memref<8x128xf32, #tpu.memory_space<vmem>>, vector<8x128xf32>,
    %c1_i32 = arith.constant 1 : i32
    %9 = arith.cmpi eq, %arg2, %c1_i32 : i32
    %10 = arith.extui %9 : i1 to i32
    %c0_i32_8 = arith.constant 0 : i32
    %11 = arith.cmpi ne, %10, %c0_i32_8 : i32
    scf.if %11 {
      %c0_9 = arith.constant 0 : index
      %c0_10 = arith.constant 0 : index
      %12 = vector.load %arg7[%c0_9, %c0_10] : memref<8x128xf32, #tpu.memory_space<vmem>>, vector<8x128xf32>
      %c0_11 = arith.constant 0 : index
      %c0_12 = arith.constant 0 : index
      %13 = vector.load %arg5[%c0_11, %c0_12] : memref<1x128xf32, #tpu.memory_space<vmem>>, vector<1x128xf32>
      %14 = vector.broadcast %13 : vector<1x128xf32> to vector<8x128xf32>
      %15 = arith.addf %12, %14 : vector<8x128xf32>
      %c0_13 = arith.constant 0 : index
      %c0_14 = arith.constant 0 : index
      %16 = vector.load %arg6[%c0_13, %c0_14] : memref<8x128xf32, #tpu.memory_space<vmem>>, vector<8x128xf32>
      tpu.vector_store %arg6[%c0_13, %c0_14], %15 {strides = array<i32>} : memref<8x128xf32, #tpu.memory_space<vmem>>, vector<8x128xf32>,
    } else {
    }
    return
  }
  func.func @transform_0(%arg0: i32, %arg1: i32, %arg2: i32) -> (i32, i32) {
    %c0_i32 = arith.constant 0 : i32
    return %arg0, %arg2 : i32, i32
  }
  func.func @transform_1(%arg0: i32, %arg1: i32, %arg2: i32) -> (i32, i32) {
    %c0_i32 = arith.constant 0 : i32
    return %arg2, %arg1 : i32, i32
  }
  func.func @transform_2(%arg0: i32, %arg1: i32, %arg2: i32) -> (i32, i32) {
    %c0_i32 = arith.constant 0 : i32
    %c0_i32_0 = arith.constant 0 : i32
    return %c0_i32, %arg1 : i32, i32
  }
  func.func @transform_3(%arg0: i32, %arg1: i32, %arg2: i32) -> (i32, i32) {
    %c0_i32 = arith.constant 0 : i32
    return %arg0, %arg1 : i32, i32
  }
}

module attributes {stable_mosaic.version = 11 : i64} {
  func.func @_gemm_bias_act_kernel(%arg0: i32, %arg1: i32, %arg2: i32, %arg3: memref<8x64xbf16, #tpu.memory_space<vmem>>, %arg4: memref<64x128xbf16, #tpu.memory_space<vmem>>, %arg5: memref<1x128xf32, #tpu.memory_space<vmem>>, %arg6: memref<8x128xf32, #tpu.memory_space<vmem>>, %arg7: memref<8x128xf32, #tpu.memory_space<vmem>>) attributes {dimension_semantics = [#tpu.dimension_semantics<parallel>, #tpu.dimension_semantics<parallel>, #tpu.dimension_semantics<arbitrary>], iteration_bounds = array<i64: 1, 1, 1>, scalar_prefetch = 0 : i64, scratch_operands = 1 : i64, tpu.core_type = #tpu.core_type<tc>, window_params = [{transform_indices = @transform_0, window_bounds = array<i64: 8, 64>}, {transform_indices = @transform_1, window_bounds = array<i64: 64, 128>}, {transform_indices = @transform_2, window_bounds = array<i64: 1, 128>}, {transform_indices = @transform_3, window_bounds = array<i64: 8, 128>}]} {
    %c0_i32 = arith.constant 0 : i32
    %0 = arith.cmpi eq, %arg2, %c0_i32 : i32
    %1 = arith.extui %0 : i1 to i32
    %c0_i32_0 = arith.constant 0 : i32
    %2 = arith.cmpi ne, %1, %c0_i32_0 : i32
    scf.if %2 {
      %cst_10 = arith.constant 0.000000e+00 : f32
      %12 = vector.broadcast %cst_10 : f32 to vector<8x128xf32>
      %c0_11 = arith.constant 0 : index
      %c0_12 = arith.constant 0 : index
      %13 = vector.load %arg7[%c0_11, %c0_12] : memref<8x128xf32, #tpu.memory_space<vmem>>, vector<8x128xf32>
      tpu.vector_store %arg7[%c0_11, %c0_12], %12 {strides = array<i32>} : memref<8x128xf32, #tpu.memory_space<vmem>>, vector<8x128xf32>,
    } else {
    }
    %c0 = arith.constant 0 : index
    %c0_1 = arith.constant 0 : index
    %3 = vector.load %arg7[%c0, %c0_1] : memref<8x128xf32, #tpu.memory_space<vmem>>, vector<8x128xf32>
    %c0_2 = arith.constant 0 : index
    %c0_3 = arith.constant 0 : index
    %4 = vector.load %arg3[%c0_2, %c0_3] : memref<8x64xbf16, #tpu.memory_space<vmem>>, vector<8x64xbf16>
    %c0_4 = arith.constant 0 : index
    %c0_5 = arith.constant 0 : index
    %5 = vector.load %arg4[%c0_4, %c0_5] : memref<64x128xbf16, #tpu.memory_space<vmem>>, vector<64x128xbf16>
    %cst = arith.constant dense<0.000000e+00> : vector<8x128xf32>
    %6 = tpu.matmul %4, %5, %cst {dimension_numbers = #tpu.dot_dimension_numbers<[1], [0], [0], [1], [0, 0, 1, 1], [], []>} : vector<8x64xbf16>, vector<64x128xbf16>, vector<8x128xf32> -> vector<8x128xf32>
    %7 = arith.addf %3, %6 : vector<8x128xf32>
    %c0_6 = arith.constant 0 : index
    %c0_7 = arith.constant 0 : index
    %8 = vector.load %arg7[%c0_6, %c0_7] : memref<8x128xf32, #tpu.memory_space<vmem>>, vector<8x128xf32>
    tpu.vector_store %arg7[%c0_6, %c0_7], %7 {strides = array<i32>} : memref<8x128xf32, #tpu.memory_space<vmem>>, vector<8x128xf32>,
    %c0_i32_8 = arith.constant 0 : i32
    %9 = arith.cmpi eq, %arg2, %c0_i32_8 : i32
    %10 = arith.extui %9 : i1 to i32
    %c0_i32_9 = arith.constant 0 : i32
    %11 = arith.cmpi ne, %10, %c0_i32_9 : i32
    scf.if %11 {
      %c0_10 = arith.constant 0 : index
      %c0_11 = arith.constant 0 : index
      %12 = vector.load %arg7[%c0_10, %c0_11] : memref<8x128xf32, #tpu.memory_space<vmem>>, vector<8x128xf32>
      %c0_12 = arith.constant 0 : index
      %c0_13 = arith.constant 0 : index
      %13 = vector.load %arg5[%c0_12, %c0_13] : memref<1x128xf32, #tpu.memory_space<vmem>>, vector<1x128xf32>
      %14 = vector.broadcast %13 : vector<1x128xf32> to vector<8x128xf32>
      %15 = arith.addf %12, %14 : vector<8x128xf32>
      %c0_14 = arith.constant 0 : index
      %c0_15 = arith.constant 0 : index
      %16 = vector.load %arg6[%c0_14, %c0_15] : memref<8x128xf32, #tpu.memory_space<vmem>>, vector<8x128xf32>
      tpu.vector_store %arg6[%c0_14, %c0_15], %15 {strides = array<i32>} : memref<8x128xf32, #tpu.memory_space<vmem>>, vector<8x128xf32>,
    } else {
    }
    return
  }
  func.func @transform_0(%arg0: i32, %arg1: i32, %arg2: i32) -> (i32, i32) {
    %c0_i32 = arith.constant 0 : i32
    return %arg0, %arg2 : i32, i32
  }
  func.func @transform_1(%arg0: i32, %arg1: i32, %arg2: i32) -> (i32, i32) {
    %c0_i32 = arith.constant 0 : i32
    return %arg2, %arg1 : i32, i32
  }
  func.func @transform_2(%arg0: i32, %arg1: i32, %arg2: i32) -> (i32, i32) {
    %c0_i32 = arith.constant 0 : i32
    %c0_i32_0 = arith.constant 0 : i32
    return %c0_i32, %arg1 : i32, i32
  }
  func.func @transform_3(%arg0: i32, %arg1: i32, %arg2: i32) -> (i32, i32) {
    %c0_i32 = arith.constant 0 : i32
    return %arg0, %arg1 : i32, i32
  }
}

</mosaic_0001>

<bundles_post_ra>
// kernel: discriminator_forward.9
= control target key start
LH: loop header
LB: loop body
LE: loop exit
PB: predicated region body
PF: predicated region fallthrough
CT: control target
= control target key end

     0   :  { %s1900_s1 = inlined_call_operand.vmem [shape: bf16[128,128], index: 1, kind: input, shape index: {}]   ;;  %s1901_s0 = inlined_call_operand.vmem [shape: bf16[512,128], index: 0, kind: input, shape index: {}]   ;;  %s1902_s2 = inlined_call_operand.vmem [shape: f32[1,128], index: 2, kind: input, shape index: {}]   ;;  %s1903_s3 = inlined_call_operand.vmem [shape: f32[512,128], index: 3, kind: output, shape index: {}]  }
   0x1   :  { %v1459_v0 = vld [vmem:[%s1900_s1] sm:$0xff]   ;;  %v1460_v1 = vld [vmem:[%s1900_s1 + $0x8] sm:$0xff]   ;;  %v1461_v2 = vld [vmem:[%s1900_s1 + $0x10] sm:$0xff]  }
   0x2   :  { %1363 = vmatprep.subr.bf16.mxu0 %v1459_v0  ;;  %1443 = vmatprep.subr.bf16.mxu1 %v1459_v0  ;;  %v1462_v3 = vld [vmem:[%s1900_s1 + $0x18] sm:$0xff]   ;;  %v1467_v4 = vld [vmem:[%s1901_s0] sm:$0xff]   ;;  %v1464_v7 = vld [vmem:[%s1900_s1 + $0x28] sm:$0xff]  }
   0x3   :  { %1364 = vmatpush3.bf16.msra.mxu0 %v1459_v0  ;;  %1451 = vmatpush3.bf16.msra.mxu1 %v1459_v0  ;;  %v1468_v5 = vld [vmem:[%s1901_s0 + $0x80] sm:$0xff]   ;;  %v1465_v8 = vld [vmem:[%s1900_s1 + $0x30] sm:$0xff]   ;;  %v1466_v9 = vld [vmem:[%s1900_s1 + $0x38] sm:$0xff]  }
   0x4   :  { %1365 = vmatprep.subr.bf16.mxu0 %v1460_v1  ;;  %1444 = vmatprep.subr.bf16.mxu1 %v1460_v1  ;;  %v1463_v6 = vld [vmem:[%s1900_s1 + $0x20] sm:$0xff]   ;;  %v1469_v10 = vld [vmem:[%s1901_s0 + $0x8] sm:$0xff]   ;;  %v1471_v12 = vld [vmem:[%s1901_s0 + $0x10] sm:$0xff]  }
   0x5   :  { %1379 = vmatprep.mubr.bf16.mxu0 %v1467_v4  ;;  %1411 = vmatprep.mubr.bf16.mxu1 %v1468_v5  ;;  %v1470_v11 = vld [vmem:[%s1901_s0 + $0x88] sm:$0xff]   ;;  %v1472_v13 = vld [vmem:[%s1901_s0 + $0x90] sm:$0xff]   ;;  %v1473_v14 = vld [vmem:[%s1901_s0 + $0x18] sm:$0xff]  }
   0x6   :  { %v1474_v15 = vld [vmem:[%s1901_s0 + $0x98] sm:$0xff]   ;;  %v1475_v16 = vld [vmem:[%s1901_s0 + $0x20] sm:$0xff]   ;;  %v1477_v18 = vld [vmem:[%s1901_s0 + $0x28] sm:$0xff]  }
   0x7   :  { %1366 = vmatpush3.bf16.msra.mxu0 %v1460_v1  ;;  %1452 = vmatpush3.bf16.msra.mxu1 %v1460_v1  ;;  %v1476_v17 = vld [vmem:[%s1901_s0 + $0xa0] sm:$0xff]   ;;  %v1478_v19 = vld [vmem:[%s1901_s0 + $0xa8] sm:$0xff]   ;;  %v1479_v20 = vld [vmem:[%s1901_s0 + $0x30] sm:$0xff]  }
   0x8   :  { %1367 = vmatprep.subr.bf16.mxu0 %v1461_v2  ;;  %1445 = vmatprep.subr.bf16.mxu1 %v1461_v2  ;;  %v1480_v21 = vld [vmem:[%s1901_s0 + $0xb0] sm:$0xff]   ;;  %v1481_v22 = vld [vmem:[%s1901_s0 + $0x38] sm:$0xff]   ;;  %v1483_v24 = vld [vmem:[%s1901_s0 + $0x40] sm:$0xff]  }
   0x9   :  { %v1482_v23 = vld [vmem:[%s1901_s0 + $0xb8] sm:$0xff]   ;;  %v1484_v25 = vld [vmem:[%s1901_s0 + $0xc0] sm:$0xff]   ;;  %v1485_v26 = vld [vmem:[%s1901_s0 + $0x48] sm:$0xff]  }
   0xa   :  { %v1486_v27 = vld [vmem:[%s1901_s0 + $0xc8] sm:$0xff]   ;;  %v1487_v28 = vld [vmem:[%s1901_s0 + $0x50] sm:$0xff]   ;;  %v1489_v30 = vld [vmem:[%s1901_s0 + $0x58] sm:$0xff]  }
   0xb   :  { %1368 = vmatpush3.bf16.msra.mxu0 %v1461_v2  ;;  %1453 = vmatpush3.bf16.msra.mxu1 %v1461_v2  ;;  %v1488_v29 = vld [vmem:[%s1901_s0 + $0xd0] sm:$0xff]   ;;  %v1490_v31 = vld [vmem:[%s1901_s0 + $0xd8] sm:$0xff]   ;;  %v1491_v32 = vld [vmem:[%s1901_s0 + $0x60] sm:$0xff]  }
   0xc   :  { %1369 = vmatprep.subr.bf16.mxu0 %v1462_v3  ;;  %1446 = vmatprep.subr.bf16.mxu1 %v1462_v3  ;;  %v1492_v33 = vld [vmem:[%s1901_s0 + $0xe0] sm:$0xff]   ;;  %v1493_v34 = vld [vmem:[%s1901_s0 + $0x68] sm:$0xff]   ;;  %v1495_v36 = vld [vmem:[%s1901_s0 + $0x70] sm:$0xff]  }
   0xd   :  { %v1494_v35 = vld [vmem:[%s1901_s0 + $0xe8] sm:$0xff]   ;;  %v1496_v37 = vld [vmem:[%s1901_s0 + $0xf0] sm:$0xff]   ;;  %v1497_v38 = vld [vmem:[%s1901_s0 + $0x78] sm:$0xff]  }
   0xe   :  { %v1498_v39 = vld [vmem:[%s1901_s0 + $0xf8] sm:$0xff]   ;;  %v1642_v40 = vld [vmem:[%s1902_s2] ss:$0 sm:$0xff] }
   0xf   :  { %1370 = vmatpush3.bf16.msra.mxu0 %v1462_v3  ;;  %1454 = vmatpush3.bf16.msra.mxu1 %v1462_v3 }
  0x10   :  { %1371 = vmatprep.subr.bf16.mxu0 %v1463_v6  ;;  %1447 = vmatprep.subr.bf16.mxu1 %v1463_v6 }
  0x13   :  { %1372 = vmatpush3.bf16.msra.mxu0 %v1463_v6  ;;  %1455 = vmatpush3.bf16.msra.mxu1 %v1463_v6 }
  0x14   :  { %1373 = vmatprep.subr.bf16.mxu0 %v1464_v7  ;;  %1448 = vmatprep.subr.bf16.mxu1 %v1464_v7 }
  0x17   :  { %1374 = vmatpush3.bf16.msra.mxu0 %v1464_v7  ;;  %1456 = vmatpush3.bf16.msra.mxu1 %v1464_v7 }
  0x18   :  { %1375 = vmatprep.subr.bf16.mxu0 %v1465_v8  ;;  %1449 = vmatprep.subr.bf16.mxu1 %v1465_v8 }
  0x1b   :  { %1376 = vmatpush3.bf16.msra.mxu0 %v1465_v8  ;;  %1457 = vmatpush3.bf16.msra.mxu1 %v1465_v8 }
  0x1c   :  { %1377 = vmatprep.subr.bf16.mxu0 %v1466_v9  ;;  %1450 = vmatprep.subr.bf16.mxu1 %v1466_v9 }
  0x1f   :  { %1378 = vmatpush3.bf16.msra.mxu0 %v1466_v9  ;;  %1458 = vmatpush3.bf16.msra.mxu1 %v1466_v9 }
  0x22   :  { %1380 = vmatmul.mubr.bf16.vlgmr.msra.gmra.mrb[0].mxu0 %v1469_v10  ;;  %1412 = vmatmul.mubr.bf16.vlgmr.msra.gmra.mrb[0].mxu1 %v1470_v11 }
  0x23   :  { %1383 = vmatprep.mubr.bf16.mxu0 %v1471_v12  ;;  %1415 = vmatprep.mubr.bf16.mxu1 %v1472_v13 }
  0x2a   :  { %1384 = vmatmul.mubr.bf16.gmra.mrb[4].mxu0 %v1473_v14  ;;  %1416 = vmatmul.mubr.bf16.gmra.mrb[4].mxu1 %v1474_v15 }
  0x2b   :  { %1387 = vmatprep.mubr.bf16.mxu0 %v1475_v16  ;;  %1419 = vmatprep.mubr.bf16.mxu1 %v1476_v17 }
  0x32   :  { %1388 = vmatmul.mubr.bf16.gmra.mrb[8].mxu0 %v1477_v18  ;;  %1420 = vmatmul.mubr.bf16.gmra.mrb[8].mxu1 %v1478_v19 }
  0x33   :  { %1391 = vmatprep.mubr.bf16.mxu0 %v1479_v20  ;;  %1423 = vmatprep.mubr.bf16.mxu1 %v1480_v21 }
  0x3a   :  { %1392 = vmatmul.mubr.bf16.gmra.mrb[12].mxu0 %v1481_v22  ;;  %1424 = vmatmul.mubr.bf16.gmra.mrb[12].mxu1 %v1482_v23 }
  0x3b   :  { %1395 = vmatprep.mubr.bf16.mxu0 %v1483_v24  ;;  %1427 = vmatprep.mubr.bf16.mxu1 %v1484_v25 }
  0x42   :  { %1396 = vmatmul.mubr.bf16.gmra.mrb[16].mxu0 %v1485_v26  ;;  %1428 = vmatmul.mubr.bf16.gmra.mrb[16].mxu1 %v1486_v27 }
  0x43   :  { %1399 = vmatprep.mubr.bf16.mxu0 %v1487_v28  ;;  %1431 = vmatprep.mubr.bf16.mxu1 %v1488_v29 }
  0x4a   :  { %1400 = vmatmul.mubr.bf16.gmra.mrb[20].mxu0 %v1489_v30  ;;  %1432 = vmatmul.mubr.bf16.gmra.mrb[20].mxu1 %v1490_v31 }
  0x4b   :  { %1403 = vmatprep.mubr.bf16.mxu0 %v1491_v32  ;;  %1435 = vmatprep.mubr.bf16.mxu1 %v1492_v33 }
  0x52   :  { %1404 = vmatmul.mubr.bf16.gmra.mrb[24].mxu0 %v1493_v34  ;;  %1436 = vmatmul.mubr.bf16.gmra.mrb[24].mxu1 %v1494_v35 }
  0x53   :  { %1407 = vmatprep.mubr.bf16.mxu0 %v1495_v36  ;;  %1439 = vmatprep.mubr.bf16.mxu1 %v1496_v37 }
  0x5a   :  { %1408 = vmatmul.mubr.bf16.gmra.mrb[28].mxu0 %v1497_v38  ;;  %1440 = vmatmul.mubr.bf16.gmra.mrb[28].mxu1 %v1498_v39 }
  0xf5   :  { %v1381_v41 = vpop.f32.mrb[0].mxu0  ;;  %v1413_v42 = vpop.f32.mrb[0].mxu1 }
  0xf6   :  { %v960_v43 = vadd.f32 %v1381_v41, %v1642_v40  ;;  %v992_v44 = vadd.f32 %v1413_v42, %v1642_v40  ;;  %v501_v45 = vpop.f32.mrb[1].mxu0  ;;  %v629_v46 = vpop.f32.mrb[1].mxu1 }
  0xf7   :  { %v958_v47 = vadd.f32 %v1642_v40, %v501_v45  ;;  %v990_v48 = vadd.f32 %v1642_v40, %v629_v46  ;;  %v1382_v49 = vpop.f32.mrb[2].mxu0  ;;  %v1414_v50 = vpop.f32.mrb[2].mxu1 }
  0xf8   :  { %vm1024_vm0 = vcmp.ge.f32.partialorder %v960_v43, 0.0  ;;  %v1088_v51 = vmul.f32 0.01, %v960_v43  ;;  %vm1056_vm1 = vcmp.ge.f32.partialorder %v992_v44, 0.0  ;;  %v1120_v52 = vmul.f32 0.01, %v992_v44 }
  0xf9   :  { %vm1022_vm2 = vcmp.ge.f32.partialorder %v958_v47, 0.0  ;;  %v1086_v53 = vmul.f32 0.01, %v958_v47  ;;  %vm1054_vm3 = vcmp.ge.f32.partialorder %v990_v48, 0.0  ;;  %v1118_v54 = vmul.f32 0.01, %v990_v48 }
  0xfa   :  { %v1152_v55 = vsel %vm1024_vm0, %v960_v43, %v1088_v51  ;;  %v1184_v56 = vsel %vm1056_vm1, %v992_v44, %v1120_v52  ;;  %v961_v57 = vadd.f32 %v1382_v49, %v1642_v40  ;;  %v993_v58 = vadd.f32 %v1414_v50, %v1642_v40  ;;  %v504_v59 = vpop.f32.mrb[3].mxu0  ;;  %v632_v60 = vpop.f32.mrb[3].mxu1 }
  0xfb   :  { %1216 = vst [vmem:[%s1903_s3 + $0x10] sm:$0xff] %v1152_v55  ;;  %1248 = vst [vmem:[%s1903_s3 + $0x110] sm:$0xff] %v1184_v56  ;;  %v1150_v61 = vsel %vm1022_vm2, %v958_v47, %v1086_v53  ;;  %v1182_v62 = vsel %vm1054_vm3, %v990_v48, %v1118_v54  ;;  %v959_v63 = vadd.f32 %v1642_v40, %v504_v59 }
  0xfc   :  { %v991_v0 = vadd.f32 %v1642_v40, %v632_v60  ;;  %1214 = vst [vmem:[%s1903_s3] sm:$0xff] %v1150_v61  ;;  %1246 = vst [vmem:[%s1903_s3 + $0x100] sm:$0xff] %v1182_v62  ;;  %vm1025_vm4 = vcmp.ge.f32.partialorder %v961_v57, 0.0  ;;  %v1089_v1 = vmul.f32 0.01, %v961_v57  ;;  %vm1057_vm5 = vcmp.ge.f32.partialorder %v993_v58, 0.0 }
  0xfd   :  { %v1121_v2 = vmul.f32 0.01, %v993_v58  ;;  %vm1023_vm6 = vcmp.ge.f32.partialorder %v959_v63, 0.0  ;;  %v1087_v3 = vmul.f32 0.01, %v959_v63  ;;  %v1385_v7 = vpop.f32.mrb[4].mxu0 }
  0xfe   :  { %vm1055_vm7 = vcmp.ge.f32.partialorder %v991_v0, 0.0  ;;  %v1119_v4 = vmul.f32 0.01, %v991_v0  ;;  %v1153_v5 = vsel %vm1025_vm4, %v961_v57, %v1089_v1  ;;  %v1417_v8 = vpop.f32.mrb[4].mxu1  ;;  %v964_v11 = vadd.f32 %v1385_v7, %v1642_v40  ;;  %v517_v13 = vpop.f32.mrb[5].mxu0 }
  0xff   :  { %v1185_v6 = vsel %vm1057_vm5, %v993_v58, %v1121_v2  ;;  %1217 = vst [vmem:[%s1903_s3 + $0x18] sm:$0xff] %v1153_v5  ;;  %v1151_v9 = vsel %vm1023_vm6, %v959_v63, %v1087_v3  ;;  %v996_v12 = vadd.f32 %v1417_v8, %v1642_v40  ;;  %v645_v14 = vpop.f32.mrb[5].mxu1  ;;  %v962_v15 = vadd.f32 %v1642_v40, %v517_v13  ;;  %v1386_v17 = vpop.f32.mrb[6].mxu0 }
 0x100   :  { %1249 = vst [vmem:[%s1903_s3 + $0x118] sm:$0xff] %v1185_v6  ;;  %v1183_v10 = vsel %vm1055_vm7, %v991_v0, %v1119_v4  ;;  %1215 = vst [vmem:[%s1903_s3 + $0x8] sm:$0xff] %v1151_v9  ;;  %v994_v16 = vadd.f32 %v1642_v40, %v645_v14  ;;  %v1418_v18 = vpop.f32.mrb[6].mxu1  ;;  %vm1028_vm8 = vcmp.ge.f32.partialorder %v964_v11, 0.0  ;;  %v1092_v19 = vmul.f32 0.01, %v964_v11 }
 0x101   :  { %1247 = vst [vmem:[%s1903_s3 + $0x108] sm:$0xff] %v1183_v10  ;;  %vm1060_vm9 = vcmp.ge.f32.partialorder %v996_v12, 0.0  ;;  %v1124_v20 = vmul.f32 0.01, %v996_v12  ;;  %vm1026_vm10 = vcmp.ge.f32.partialorder %v962_v15, 0.0  ;;  %v965_v25 = vadd.f32 %v1386_v17, %v1642_v40  ;;  %v520_v27 = vpop.f32.mrb[7].mxu0 }
 0x102   :  { %v1090_v21 = vmul.f32 0.01, %v962_v15  ;;  %vm1058_vm11 = vcmp.ge.f32.partialorder %v994_v16, 0.0  ;;  %v1122_v22 = vmul.f32 0.01, %v994_v16  ;;  %v1156_v23 = vsel %vm1028_vm8, %v964_v11, %v1092_v19  ;;  %v648_v28 = vpop.f32.mrb[7].mxu1 }
 0x103   :  { %v1188_v24 = vsel %vm1060_vm9, %v996_v12, %v1124_v20  ;;  %v997_v26 = vadd.f32 %v1418_v18, %v1642_v40  ;;  %1220 = vst [vmem:[%s1903_s3 + $0x30] sm:$0xff] %v1156_v23  ;;  %v963_v31 = vadd.f32 %v1642_v40, %v520_v27  ;;  %v995_v32 = vadd.f32 %v1642_v40, %v648_v28 }
 0x104   :  { %1252 = vst [vmem:[%s1903_s3 + $0x130] sm:$0xff] %v1188_v24  ;;  %v1154_v29 = vsel %vm1026_vm10, %v962_v15, %v1090_v21  ;;  %v1186_v30 = vsel %vm1058_vm11, %v994_v16, %v1122_v22  ;;  %vm1029_vm12 = vcmp.ge.f32.partialorder %v965_v25, 0.0  ;;  %v1093_v33 = vmul.f32 0.01, %v965_v25 }
 0x105   :  { %1218 = vst [vmem:[%s1903_s3 + $0x20] sm:$0xff] %v1154_v29  ;;  %1250 = vst [vmem:[%s1903_s3 + $0x120] sm:$0xff] %v1186_v30  ;;  %vm1061_vm13 = vcmp.ge.f32.partialorder %v997_v26, 0.0  ;;  %v1125_v34 = vmul.f32 0.01, %v997_v26  ;;  %vm1027_vm14 = vcmp.ge.f32.partialorder %v963_v31, 0.0 }
 0x106   :  { %v1091_v35 = vmul.f32 0.01, %v963_v31  ;;  %vm1059_vm15 = vcmp.ge.f32.partialorder %v995_v32, 0.0  ;;  %v1123_v36 = vmul.f32 0.01, %v995_v32  ;;  %v1157_v37 = vsel %vm1029_vm12, %v965_v25, %v1093_v33  ;;  %v1389_v39 = vpop.f32.mrb[8].mxu0 }
 0x107   :  { %v1189_v38 = vsel %vm1061_vm13, %v997_v26, %v1125_v34  ;;  %v1421_v41 = vpop.f32.mrb[8].mxu1  ;;  %1221 = vst [vmem:[%s1903_s3 + $0x38] sm:$0xff] %v1157_v37  ;;  %v968_v44 = vadd.f32 %v1389_v39, %v1642_v40  ;;  %v533_v46 = vpop.f32.mrb[9].mxu0 }
 0x108   :  { %1253 = vst [vmem:[%s1903_s3 + $0x138] sm:$0xff] %v1189_v38  ;;  %v1155_v42 = vsel %vm1027_vm14, %v963_v31, %v1091_v35  ;;  %v1187_v43 = vsel %vm1059_vm15, %v995_v32, %v1123_v36  ;;  %v1000_v45 = vadd.f32 %v1421_v41, %v1642_v40  ;;  %v661_v47 = vpop.f32.mrb[9].mxu1  ;;  %v966_v48 = vadd.f32 %v1642_v40, %v533_v46  ;;  %v1390_v50 = vpop.f32.mrb[10].mxu0 }
 0x109   :  { %1219 = vst [vmem:[%s1903_s3 + $0x28] sm:$0xff] %v1155_v42  ;;  %1251 = vst [vmem:[%s1903_s3 + $0x128] sm:$0xff] %v1187_v43  ;;  %v998_v49 = vadd.f32 %v1642_v40, %v661_v47  ;;  %v1422_v51 = vpop.f32.mrb[10].mxu1  ;;  %vm1032_vm0 = vcmp.ge.f32.partialorder %v968_v44, 0.0  ;;  %v1096_v52 = vmul.f32 0.01, %v968_v44  ;;  %v969_v58 = vadd.f32 %v1390_v50, %v1642_v40 }
 0x10a   :  { %vm1064_vm1 = vcmp.ge.f32.partialorder %v1000_v45, 0.0  ;;  %v1128_v53 = vmul.f32 0.01, %v1000_v45  ;;  %vm1030_vm2 = vcmp.ge.f32.partialorder %v966_v48, 0.0  ;;  %v1094_v54 = vmul.f32 0.01, %v966_v48 }
 0x10b   :  { %vm1062_vm3 = vcmp.ge.f32.partialorder %v998_v49, 0.0  ;;  %v1126_v55 = vmul.f32 0.01, %v998_v49  ;;  %v1160_v56 = vsel %vm1032_vm0, %v968_v44, %v1096_v52  ;;  %v1001_v59 = vadd.f32 %v1422_v51, %v1642_v40  ;;  %v536_v60 = vpop.f32.mrb[11].mxu0  ;;  %v664_v61 = vpop.f32.mrb[11].mxu1 }
 0x10c   :  { %v1192_v57 = vsel %vm1064_vm1, %v1000_v45, %v1128_v53  ;;  %1224 = vst [vmem:[%s1903_s3 + $0x50] sm:$0xff] %v1160_v56  ;;  %v1158_v62 = vsel %vm1030_vm2, %v966_v48, %v1094_v54  ;;  %v967_v0 = vadd.f32 %v1642_v40, %v536_v60  ;;  %v999_v1 = vadd.f32 %v1642_v40, %v664_v61 }
 0x10d   :  { %1256 = vst [vmem:[%s1903_s3 + $0x150] sm:$0xff] %v1192_v57  ;;  %v1190_v63 = vsel %vm1062_vm3, %v998_v49, %v1126_v55  ;;  %v1393_v2 = vpop.f32.mrb[12].mxu0  ;;  %v1425_v3 = vpop.f32.mrb[12].mxu1  ;;  %1222 = vst [vmem:[%s1903_s3 + $0x40] sm:$0xff] %v1158_v62  ;;  %vm1033_vm4 = vcmp.ge.f32.partialorder %v969_v58, 0.0  ;;  %vm1065_vm5 = vcmp.ge.f32.partialorder %v1001_v59, 0.0 }
 0x10e   :  { %1254 = vst [vmem:[%s1903_s3 + $0x140] sm:$0xff] %v1190_v63  ;;  %v1097_v4 = vmul.f32 0.01, %v969_v58  ;;  %v1129_v5 = vmul.f32 0.01, %v1001_v59  ;;  %vm1031_vm6 = vcmp.ge.f32.partialorder %v967_v0, 0.0  ;;  %v972_v10 = vadd.f32 %v1393_v2, %v1642_v40 }
 0x10f   :  { %v1095_v6 = vmul.f32 0.01, %v967_v0  ;;  %vm1063_vm7 = vcmp.ge.f32.partialorder %v999_v1, 0.0  ;;  %v1127_v7 = vmul.f32 0.01, %v999_v1  ;;  %v1004_v11 = vadd.f32 %v1425_v3, %v1642_v40  ;;  %v549_v12 = vpop.f32.mrb[13].mxu0 }
 0x110   :  { %v1161_v8 = vsel %vm1033_vm4, %v969_v58, %v1097_v4  ;;  %v1193_v9 = vsel %vm1065_vm5, %v1001_v59, %v1129_v5  ;;  %v677_v13 = vpop.f32.mrb[13].mxu1  ;;  %v970_v16 = vadd.f32 %v1642_v40, %v549_v12  ;;  %v1394_v18 = vpop.f32.mrb[14].mxu0  ;;  %vm1036_vm8 = vcmp.ge.f32.partialorder %v972_v10, 0.0 }
 0x111   :  { %1225 = vst [vmem:[%s1903_s3 + $0x58] sm:$0xff] %v1161_v8  ;;  %1257 = vst [vmem:[%s1903_s3 + $0x158] sm:$0xff] %v1193_v9  ;;  %v1159_v14 = vsel %vm1031_vm6, %v967_v0, %v1095_v6  ;;  %v1191_v15 = vsel %vm1063_vm7, %v999_v1, %v1127_v7  ;;  %v1002_v17 = vadd.f32 %v1642_v40, %v677_v13  ;;  %v1426_v19 = vpop.f32.mrb[14].mxu1  ;;  %v1100_v20 = vmul.f32 0.01, %v972_v10  ;;  %v552_v28 = vpop.f32.mrb[15].mxu0 }
 0x112   :  { %1223 = vst [vmem:[%s1903_s3 + $0x48] sm:$0xff] %v1159_v14  ;;  %1255 = vst [vmem:[%s1903_s3 + $0x148] sm:$0xff] %v1191_v15  ;;  %vm1068_vm9 = vcmp.ge.f32.partialorder %v1004_v11, 0.0  ;;  %v1132_v21 = vmul.f32 0.01, %v1004_v11  ;;  %vm1034_vm10 = vcmp.ge.f32.partialorder %v970_v16, 0.0  ;;  %v973_v26 = vadd.f32 %v1394_v18, %v1642_v40 }
 0x113   :  { %v1098_v22 = vmul.f32 0.01, %v970_v16  ;;  %vm1066_vm11 = vcmp.ge.f32.partialorder %v1002_v17, 0.0  ;;  %v1130_v23 = vmul.f32 0.01, %v1002_v17  ;;  %v1164_v24 = vsel %vm1036_vm8, %v972_v10, %v1100_v20  ;;  %v680_v29 = vpop.f32.mrb[15].mxu1 }
 0x114   :  { %v1196_v25 = vsel %vm1068_vm9, %v1004_v11, %v1132_v21  ;;  %v1005_v27 = vadd.f32 %v1426_v19, %v1642_v40  ;;  %1228 = vst [vmem:[%s1903_s3 + $0x70] sm:$0xff] %v1164_v24  ;;  %v971_v32 = vadd.f32 %v1642_v40, %v552_v28  ;;  %v1003_v33 = vadd.f32 %v1642_v40, %v680_v29 }
 0x115   :  { %1260 = vst [vmem:[%s1903_s3 + $0x170] sm:$0xff] %v1196_v25  ;;  %v1162_v30 = vsel %vm1034_vm10, %v970_v16, %v1098_v22  ;;  %v1194_v31 = vsel %vm1066_vm11, %v1002_v17, %v1130_v23  ;;  %v1397_v34 = vpop.f32.mrb[16].mxu0  ;;  %v1429_v35 = vpop.f32.mrb[16].mxu1  ;;  %vm1037_vm12 = vcmp.ge.f32.partialorder %v973_v26, 0.0  ;;  %v1101_v36 = vmul.f32 0.01, %v973_v26 }
 0x116   :  { %1226 = vst [vmem:[%s1903_s3 + $0x60] sm:$0xff] %v1162_v30  ;;  %1258 = vst [vmem:[%s1903_s3 + $0x160] sm:$0xff] %v1194_v31  ;;  %vm1069_vm13 = vcmp.ge.f32.partialorder %v1005_v27, 0.0  ;;  %v1133_v37 = vmul.f32 0.01, %v1005_v27  ;;  %vm1035_vm14 = vcmp.ge.f32.partialorder %v971_v32, 0.0  ;;  %v976_v43 = vadd.f32 %v1397_v34, %v1642_v40 }
 0x117   :  { %v1099_v38 = vmul.f32 0.01, %v971_v32  ;;  %vm1067_vm15 = vcmp.ge.f32.partialorder %v1003_v33, 0.0  ;;  %v1131_v39 = vmul.f32 0.01, %v1003_v33  ;;  %v1165_v41 = vsel %vm1037_vm12, %v973_v26, %v1101_v36  ;;  %v565_v45 = vpop.f32.mrb[17].mxu0 }
 0x118   :  { %v1197_v42 = vsel %vm1069_vm13, %v1005_v27, %v1133_v37  ;;  %v1008_v44 = vadd.f32 %v1429_v35, %v1642_v40  ;;  %v693_v46 = vpop.f32.mrb[17].mxu1  ;;  %1229 = vst [vmem:[%s1903_s3 + $0x78] sm:$0xff] %v1165_v41  ;;  %v974_v49 = vadd.f32 %v1642_v40, %v565_v45  ;;  %v1398_v51 = vpop.f32.mrb[18].mxu0  ;;  %vm1040_vm0 = vcmp.ge.f32.partialorder %v976_v43, 0.0 }
 0x119   :  { %1261 = vst [vmem:[%s1903_s3 + $0x178] sm:$0xff] %v1197_v42  ;;  %v1163_v47 = vsel %vm1035_vm14, %v971_v32, %v1099_v38  ;;  %v1195_v48 = vsel %vm1067_vm15, %v1003_v33, %v1131_v39  ;;  %v1006_v50 = vadd.f32 %v1642_v40, %v693_v46  ;;  %v1430_v52 = vpop.f32.mrb[18].mxu1  ;;  %v1104_v53 = vmul.f32 0.01, %v976_v43  ;;  %v568_v61 = vpop.f32.mrb[19].mxu0 }
 0x11a   :  { %1227 = vst [vmem:[%s1903_s3 + $0x68] sm:$0xff] %v1163_v47  ;;  %1259 = vst [vmem:[%s1903_s3 + $0x168] sm:$0xff] %v1195_v48  ;;  %vm1072_vm1 = vcmp.ge.f32.partialorder %v1008_v44, 0.0  ;;  %v1136_v54 = vmul.f32 0.01, %v1008_v44  ;;  %vm1038_vm2 = vcmp.ge.f32.partialorder %v974_v49, 0.0  ;;  %v977_v59 = vadd.f32 %v1398_v51, %v1642_v40 }
 0x11b   :  { %v1102_v55 = vmul.f32 0.01, %v974_v49  ;;  %vm1070_vm3 = vcmp.ge.f32.partialorder %v1006_v50, 0.0  ;;  %v1134_v56 = vmul.f32 0.01, %v1006_v50  ;;  %v1168_v57 = vsel %vm1040_vm0, %v976_v43, %v1104_v53  ;;  %v696_v62 = vpop.f32.mrb[19].mxu1 }
 0x11c   :  { %v1200_v58 = vsel %vm1072_vm1, %v1008_v44, %v1136_v54  ;;  %v1009_v60 = vadd.f32 %v1430_v52, %v1642_v40  ;;  %1232 = vst [vmem:[%s1903_s3 + $0x90] sm:$0xff] %v1168_v57  ;;  %v975_v1 = vadd.f32 %v1642_v40, %v568_v61  ;;  %v1007_v2 = vadd.f32 %v1642_v40, %v696_v62 }
 0x11d   :  { %1264 = vst [vmem:[%s1903_s3 + $0x190] sm:$0xff] %v1200_v58  ;;  %v1166_v63 = vsel %vm1038_vm2, %v974_v49, %v1102_v55  ;;  %v1198_v0 = vsel %vm1070_vm3, %v1006_v50, %v1134_v56  ;;  %v1401_v3 = vpop.f32.mrb[20].mxu0  ;;  %v1433_v4 = vpop.f32.mrb[20].mxu1  ;;  %vm1041_vm4 = vcmp.ge.f32.partialorder %v977_v59, 0.0  ;;  %v1105_v5 = vmul.f32 0.01, %v977_v59 }
 0x11e   :  { %1230 = vst [vmem:[%s1903_s3 + $0x80] sm:$0xff] %v1166_v63  ;;  %1262 = vst [vmem:[%s1903_s3 + $0x180] sm:$0xff] %v1198_v0  ;;  %vm1073_vm5 = vcmp.ge.f32.partialorder %v1009_v60, 0.0  ;;  %v1137_v6 = vmul.f32 0.01, %v1009_v60  ;;  %vm1039_vm6 = vcmp.ge.f32.partialorder %v975_v1, 0.0  ;;  %v980_v11 = vadd.f32 %v1401_v3, %v1642_v40 }
 0x11f   :  { %v1103_v7 = vmul.f32 0.01, %v975_v1  ;;  %vm1071_vm7 = vcmp.ge.f32.partialorder %v1007_v2, 0.0  ;;  %v1135_v8 = vmul.f32 0.01, %v1007_v2  ;;  %v1169_v9 = vsel %vm1041_vm4, %v977_v59, %v1105_v5  ;;  %v581_v13 = vpop.f32.mrb[21].mxu0 }
 0x120   :  { %v1201_v10 = vsel %vm1073_vm5, %v1009_v60, %v1137_v6  ;;  %v1012_v12 = vadd.f32 %v1433_v4, %v1642_v40  ;;  %v709_v14 = vpop.f32.mrb[21].mxu1  ;;  %1233 = vst [vmem:[%s1903_s3 + $0x98] sm:$0xff] %v1169_v9  ;;  %v978_v17 = vadd.f32 %v1642_v40, %v581_v13  ;;  %v1402_v19 = vpop.f32.mrb[22].mxu0  ;;  %vm1044_vm8 = vcmp.ge.f32.partialorder %v980_v11, 0.0 }
 0x121   :  { %1265 = vst [vmem:[%s1903_s3 + $0x198] sm:$0xff] %v1201_v10  ;;  %v1167_v15 = vsel %vm1039_vm6, %v975_v1, %v1103_v7  ;;  %v1199_v16 = vsel %vm1071_vm7, %v1007_v2, %v1135_v8  ;;  %v1010_v18 = vadd.f32 %v1642_v40, %v709_v14  ;;  %v1434_v20 = vpop.f32.mrb[22].mxu1  ;;  %v1108_v21 = vmul.f32 0.01, %v980_v11  ;;  %v584_v29 = vpop.f32.mrb[23].mxu0 }
 0x122   :  { %1231 = vst [vmem:[%s1903_s3 + $0x88] sm:$0xff] %v1167_v15  ;;  %1263 = vst [vmem:[%s1903_s3 + $0x188] sm:$0xff] %v1199_v16  ;;  %vm1076_vm9 = vcmp.ge.f32.partialorder %v1012_v12, 0.0  ;;  %v1140_v22 = vmul.f32 0.01, %v1012_v12  ;;  %vm1042_vm10 = vcmp.ge.f32.partialorder %v978_v17, 0.0  ;;  %v981_v27 = vadd.f32 %v1402_v19, %v1642_v40 }
 0x123   :  { %v1106_v23 = vmul.f32 0.01, %v978_v17  ;;  %vm1074_vm11 = vcmp.ge.f32.partialorder %v1010_v18, 0.0  ;;  %v1138_v24 = vmul.f32 0.01, %v1010_v18  ;;  %v1172_v25 = vsel %vm1044_vm8, %v980_v11, %v1108_v21  ;;  %v712_v30 = vpop.f32.mrb[23].mxu1 }
 0x124   :  { %v1204_v26 = vsel %vm1076_vm9, %v1012_v12, %v1140_v22  ;;  %v1013_v28 = vadd.f32 %v1434_v20, %v1642_v40  ;;  %1236 = vst [vmem:[%s1903_s3 + $0xb0] sm:$0xff] %v1172_v25  ;;  %v979_v33 = vadd.f32 %v1642_v40, %v584_v29  ;;  %v1011_v34 = vadd.f32 %v1642_v40, %v712_v30 }
 0x125   :  { %1268 = vst [vmem:[%s1903_s3 + $0x1b0] sm:$0xff] %v1204_v26  ;;  %v1170_v31 = vsel %vm1042_vm10, %v978_v17, %v1106_v23  ;;  %v1202_v32 = vsel %vm1074_vm11, %v1010_v18, %v1138_v24  ;;  %v1405_v35 = vpop.f32.mrb[24].mxu0  ;;  %v1437_v36 = vpop.f32.mrb[24].mxu1  ;;  %vm1045_vm12 = vcmp.ge.f32.partialorder %v981_v27, 0.0  ;;  %v1109_v37 = vmul.f32 0.01, %v981_v27 }
 0x126   :  { %1234 = vst [vmem:[%s1903_s3 + $0xa0] sm:$0xff] %v1170_v31  ;;  %1266 = vst [vmem:[%s1903_s3 + $0x1a0] sm:$0xff] %v1202_v32  ;;  %vm1077_vm13 = vcmp.ge.f32.partialorder %v1013_v28, 0.0  ;;  %v1141_v38 = vmul.f32 0.01, %v1013_v28  ;;  %vm1043_vm14 = vcmp.ge.f32.partialorder %v979_v33, 0.0  ;;  %v984_v44 = vadd.f32 %v1405_v35, %v1642_v40 }
 0x127   :  { %v1107_v39 = vmul.f32 0.01, %v979_v33  ;;  %vm1075_vm15 = vcmp.ge.f32.partialorder %v1011_v34, 0.0  ;;  %v1139_v41 = vmul.f32 0.01, %v1011_v34  ;;  %v1173_v42 = vsel %vm1045_vm12, %v981_v27, %v1109_v37  ;;  %v597_v46 = vpop.f32.mrb[25].mxu0 }
 0x128   :  { %v1205_v43 = vsel %vm1077_vm13, %v1013_v28, %v1141_v38  ;;  %v1016_v45 = vadd.f32 %v1437_v36, %v1642_v40  ;;  %v725_v47 = vpop.f32.mrb[25].mxu1  ;;  %1237 = vst [vmem:[%s1903_s3 + $0xb8] sm:$0xff] %v1173_v42  ;;  %v982_v50 = vadd.f32 %v1642_v40, %v597_v46  ;;  %v1406_v52 = vpop.f32.mrb[26].mxu0  ;;  %vm1048_vm0 = vcmp.ge.f32.partialorder %v984_v44, 0.0 }
 0x129   :  { %1269 = vst [vmem:[%s1903_s3 + $0x1b8] sm:$0xff] %v1205_v43  ;;  %v1171_v48 = vsel %vm1043_vm14, %v979_v33, %v1107_v39  ;;  %v1203_v49 = vsel %vm1075_vm15, %v1011_v34, %v1139_v41  ;;  %v1014_v51 = vadd.f32 %v1642_v40, %v725_v47  ;;  %v1438_v53 = vpop.f32.mrb[26].mxu1  ;;  %v1112_v54 = vmul.f32 0.01, %v984_v44  ;;  %v600_v62 = vpop.f32.mrb[27].mxu0 }
 0x12a   :  { %1235 = vst [vmem:[%s1903_s3 + $0xa8] sm:$0xff] %v1171_v48  ;;  %1267 = vst [vmem:[%s1903_s3 + $0x1a8] sm:$0xff] %v1203_v49  ;;  %vm1080_vm1 = vcmp.ge.f32.partialorder %v1016_v45, 0.0  ;;  %v1144_v55 = vmul.f32 0.01, %v1016_v45  ;;  %vm1046_vm2 = vcmp.ge.f32.partialorder %v982_v50, 0.0  ;;  %v985_v60 = vadd.f32 %v1406_v52, %v1642_v40 }
 0x12b   :  { %v1110_v56 = vmul.f32 0.01, %v982_v50  ;;  %vm1078_vm3 = vcmp.ge.f32.partialorder %v1014_v51, 0.0  ;;  %v1142_v57 = vmul.f32 0.01, %v1014_v51  ;;  %v1176_v58 = vsel %vm1048_vm0, %v984_v44, %v1112_v54  ;;  %v728_v63 = vpop.f32.mrb[27].mxu1 }
 0x12c   :  { %v1208_v59 = vsel %vm1080_vm1, %v1016_v45, %v1144_v55  ;;  %v1017_v61 = vadd.f32 %v1438_v53, %v1642_v40  ;;  %1240 = vst [vmem:[%s1903_s3 + $0xd0] sm:$0xff] %v1176_v58  ;;  %v983_v2 = vadd.f32 %v1642_v40, %v600_v62  ;;  %v1015_v3 = vadd.f32 %v1642_v40, %v728_v63 }
 0x12d   :  { %1272 = vst [vmem:[%s1903_s3 + $0x1d0] sm:$0xff] %v1208_v59  ;;  %v1174_v0 = vsel %vm1046_vm2, %v982_v50, %v1110_v56  ;;  %v1206_v1 = vsel %vm1078_vm3, %v1014_v51, %v1142_v57  ;;  %v1409_v4 = vpop.f32.mrb[28].mxu0  ;;  %v1441_v5 = vpop.f32.mrb[28].mxu1  ;;  %vm1049_vm4 = vcmp.ge.f32.partialorder %v985_v60, 0.0  ;;  %v1113_v6 = vmul.f32 0.01, %v985_v60 }
 0x12e   :  { %1238 = vst [vmem:[%s1903_s3 + $0xc0] sm:$0xff] %v1174_v0  ;;  %1270 = vst [vmem:[%s1903_s3 + $0x1c0] sm:$0xff] %v1206_v1  ;;  %vm1081_vm5 = vcmp.ge.f32.partialorder %v1017_v61, 0.0  ;;  %v1145_v7 = vmul.f32 0.01, %v1017_v61  ;;  %vm1047_vm6 = vcmp.ge.f32.partialorder %v983_v2, 0.0  ;;  %v988_v12 = vadd.f32 %v1409_v4, %v1642_v40 }
 0x12f   :  { %v1111_v8 = vmul.f32 0.01, %v983_v2  ;;  %vm1079_vm7 = vcmp.ge.f32.partialorder %v1015_v3, 0.0  ;;  %v1143_v9 = vmul.f32 0.01, %v1015_v3  ;;  %v1177_v10 = vsel %vm1049_vm4, %v985_v60, %v1113_v6  ;;  %v613_v14 = vpop.f32.mrb[29].mxu0 }
 0x130   :  { %v1209_v11 = vsel %vm1081_vm5, %v1017_v61, %v1145_v7  ;;  %v1020_v13 = vadd.f32 %v1441_v5, %v1642_v40  ;;  %v741_v15 = vpop.f32.mrb[29].mxu1  ;;  %1241 = vst [vmem:[%s1903_s3 + $0xd8] sm:$0xff] %v1177_v10  ;;  %v986_v18 = vadd.f32 %v1642_v40, %v613_v14  ;;  %v1410_v20 = vpop.f32.mrb[30].mxu0  ;;  %vm1052_vm8 = vcmp.ge.f32.partialorder %v988_v12, 0.0 }
 0x131   :  { %1273 = vst [vmem:[%s1903_s3 + $0x1d8] sm:$0xff] %v1209_v11  ;;  %v1175_v16 = vsel %vm1047_vm6, %v983_v2, %v1111_v8  ;;  %v1207_v17 = vsel %vm1079_vm7, %v1015_v3, %v1143_v9  ;;  %v1018_v19 = vadd.f32 %v1642_v40, %v741_v15  ;;  %v1442_v21 = vpop.f32.mrb[30].mxu1  ;;  %v1116_v22 = vmul.f32 0.01, %v988_v12  ;;  %v616_v30 = vpop.f32.mrb[31].mxu0 }
 0x132   :  { %1239 = vst [vmem:[%s1903_s3 + $0xc8] sm:$0xff] %v1175_v16  ;;  %1271 = vst [vmem:[%s1903_s3 + $0x1c8] sm:$0xff] %v1207_v17  ;;  %vm1084_vm9 = vcmp.ge.f32.partialorder %v1020_v13, 0.0  ;;  %v1148_v23 = vmul.f32 0.01, %v1020_v13  ;;  %vm1050_vm10 = vcmp.ge.f32.partialorder %v986_v18, 0.0  ;;  %v989_v28 = vadd.f32 %v1410_v20, %v1642_v40 }
 0x133   :  { %v1114_v24 = vmul.f32 0.01, %v986_v18  ;;  %vm1082_vm11 = vcmp.ge.f32.partialorder %v1018_v19, 0.0  ;;  %v1146_v25 = vmul.f32 0.01, %v1018_v19  ;;  %v1180_v26 = vsel %vm1052_vm8, %v988_v12, %v1116_v22  ;;  %v744_v31 = vpop.f32.mrb[31].mxu1 }
 0x134   :  { %v1212_v27 = vsel %vm1084_vm9, %v1020_v13, %v1148_v23  ;;  %v1021_v29 = vadd.f32 %v1442_v21, %v1642_v40  ;;  %1244 = vst [vmem:[%s1903_s3 + $0xf0] sm:$0xff] %v1180_v26  ;;  %v987_v34 = vadd.f32 %v1642_v40, %v616_v30  ;;  %v1019_v35 = vadd.f32 %v1642_v40, %v744_v31 }
 0x135   :  { %1276 = vst [vmem:[%s1903_s3 + $0x1f0] sm:$0xff] %v1212_v27  ;;  %v1178_v32 = vsel %vm1050_vm10, %v986_v18, %v1114_v24  ;;  %v1210_v33 = vsel %vm1082_vm11, %v1018_v19, %v1146_v25  ;;  %vm1053_vm12 = vcmp.ge.f32.partialorder %v989_v28, 0.0  ;;  %v1117_v36 = vmul.f32 0.01, %v989_v28 }
 0x136   :  { %1242 = vst [vmem:[%s1903_s3 + $0xe0] sm:$0xff] %v1178_v32  ;;  %1274 = vst [vmem:[%s1903_s3 + $0x1e0] sm:$0xff] %v1210_v33  ;;  %vm1085_vm13 = vcmp.ge.f32.partialorder %v1021_v29, 0.0  ;;  %v1149_v37 = vmul.f32 0.01, %v1021_v29  ;;  %vm1051_vm14 = vcmp.ge.f32.partialorder %v987_v34, 0.0 }
 0x137   :  { %v1115_v38 = vmul.f32 0.01, %v987_v34  ;;  %vm1083_vm15 = vcmp.ge.f32.partialorder %v1019_v35, 0.0  ;;  %v1147_v39 = vmul.f32 0.01, %v1019_v35  ;;  %v1181_v41 = vsel %vm1053_vm12, %v989_v28, %v1117_v36 }
 0x138   :  { %v1213_v42 = vsel %vm1085_vm13, %v1021_v29, %v1149_v37  ;;  %1245 = vst [vmem:[%s1903_s3 + $0xf8] sm:$0xff] %v1181_v41 }
 0x139   :  { %1277 = vst [vmem:[%s1903_s3 + $0x1f8] sm:$0xff] %v1213_v42  ;;  %v1179_v40 = vsel %vm1051_vm14, %v987_v34, %v1115_v38  ;;  %v1211_v43 = vsel %vm1083_vm15, %v1019_v35, %v1147_v39 }
 0x13a   :  { %1243 = vst [vmem:[%s1903_s3 + $0xe8] sm:$0xff] %v1179_v40  ;;  %1275 = vst [vmem:[%s1903_s3 + $0x1e8] sm:$0xff] %v1211_v43 }

// kernel: discriminator_forward.8
= control target key start
LH: loop header
LB: loop body
LE: loop exit
PB: predicated region body
PF: predicated region fallthrough
CT: control target
= control target key end

     0   :  { %s3363_s12 = smov 0   ;;  %s3365_s13 = smov 0   ;;  %s3807_s0 = inlined_call_operand.vmem [shape: bf16[2048,48], index: 0, kind: input, shape index: {}]   ;;  %s3808_s1 = inlined_call_operand.vmem [shape: bf16[48,128], index: 1, kind: input, shape index: {}]   ;;  %s3809_s2 = inlined_call_operand.vmem [shape: f32[1,128], index: 2, kind: input, shape index: {}]   ;;  %s3810_s3 = inlined_call_operand.vmem [shape: f32[2048,128], index: 3, kind: output, shape index: {}]  }
   0x1   :  { %s3367_s14 = smov 0  }
   0x2 LB: > { %s32_s15 = sadd.s32 1, %s3337_s13  ;;  %p2881_p0 = scmp.ge.s32.totalorder %s3341_s14, 1  ;;  %s3341_s14 = sphi %s3367_s14, %s13_s14   ;;  %s3337_s13 = sphi %s3365_s13, %s3812_s13   ;;  %s3333_s12 = sphi %s3363_s12, %s3811_s12  }
   0x3   : > { %p34_p1 = scmp.ge.s32.totalorder %s32_s15, 2  ;;  %p188_p2 = scmp.lt.s32.totalorder %s3341_s14, 3 }
   0x5   : > { %s3814_s15 = smov (%p34_p1, %s32_s15), 0  ;;  %p189_p3 = pnand %p2881_p0, %p188_p2 }
   0x6   : > { %v3251_v0 = vld [vmem:[%s3808_s1] sm:$0xff] (!%p189_p3)   ;;  %s2882_s18 = sshll.u32 (!%p189_p3), %s3333_s12, 7  ;;  %v3252_v1 = vld [vmem:[%s3808_s1 + $0x8] sm:$0xff] (!%p189_p3)   ;;  %v3253_v2 = vld [vmem:[%s3808_s1 + $0x10] sm:$0xff] (!%p189_p3)   ;;  %vm992_vm0 = vcmask (!%p189_p3), 392192  }
   0x7   : > { %192 = sbr.rel (%p189_p3) target bundleno = 365 (0x16d), region = 32  ;;  %p230_p4 = scmp.lt.s32.totalorder (!%p189_p3), %s2882_s18, 255  ;;  %3087 = vmatprep.subr.bf16.mxu0 (!%p189_p3), %v3251_v0  ;;  %3221 = vmatprep.subr.bf16.mxu1 (!%p189_p3), %v3251_v0 }
   0x8   : > { %3088 = vmatpush3.bf16.msra.mxu0 (!%p189_p3), %v3251_v0  ;;  %3224 = vmatpush3.bf16.msra.mxu1 (!%p189_p3), %v3251_v0 }
   0x9   : > { %3089 = vmatprep.subr.bf16.mxu0 (!%p189_p3), %v3252_v1  ;;  %3222 = vmatprep.subr.bf16.mxu1 (!%p189_p3), %v3252_v1 }
   0xc   : > { %3090 = vmatpush3.bf16.msra.mxu0 (!%p189_p3), %v3252_v1  ;;  %3225 = vmatpush3.bf16.msra.mxu1 (!%p189_p3), %v3252_v1 }
   0xd   : > { %3091 = vmatprep.subr.bf16.mxu0 (!%p189_p3), %v3253_v2  ;;  %3223 = vmatprep.subr.bf16.mxu1 (!%p189_p3), %v3253_v2 }
   0xe   : > { %s3816_s18 = smov (!%p230_p4, %s2882_s18), 255 }
   0xf   : > { %s2883_s23 = sshll.u32 %s3816_s18, 2  ;;  %s2885_s29 = sshll.u32 %s3816_s18, 3 }
  0x10   : > { %s3396_s26 = scalar_lea.vmem %s3807_s0, %s2883_s23  ;;  %3092 = vmatpush3.bf16.msra.mxu0 %v3253_v2  ;;  %3226 = vmatpush3.bf16.msra.mxu1 %v3253_v2  ;;  %s3539_s5 = scalar_lea.vmem %s3810_s3, %s2885_s29 }
  0x11   : > { %v3254_v3 = vld [vmem:[%s3396_s26] sm:$0xff]   ;;  %v3256_v5 = vld [vmem:[%s3396_s26 + $0x8] sm:$0xff]   ;;  %v3258_v7 = vld [vmem:[%s3396_s26 + $0x10] sm:$0xff]  }
  0x12   : > { %v3255_v4 = vld [vmem:[%s3396_s26 + $0x100] sm:$0xff]   ;;  %3093 = vmatprep.mubr.msk.bf16.mxu0 %vm992_vm0, %v3254_v3  ;;  %v3257_v6 = vld [vmem:[%s3396_s26 + $0x108] sm:$0xff]   ;;  %v3259_v8 = vld [vmem:[%s3396_s26 + $0x110] sm:$0xff]  }
  0x13   : > { %3157 = vmatprep.mubr.msk.bf16.mxu1 %vm992_vm0, %v3255_v4  ;;  %3094 = vmatmul.mubr.msk.bf16.vlgmr.msra.gmra.mrb[0].mxu0 %vm992_vm0, %v3256_v5  ;;  %v3260_v9 = vld [vmem:[%s3396_s26 + $0x18] sm:$0xff]   ;;  %v3262_v11 = vld [vmem:[%s3396_s26 + $0x20] sm:$0xff]   ;;  %v3264_v13 = vld [vmem:[%s3396_s26 + $0x28] sm:$0xff]  }
  0x14   : > { %3158 = vmatmul.mubr.msk.bf16.vlgmr.msra.gmra.mrb[0].mxu1 %vm992_vm0, %v3257_v6  ;;  %3097 = vmatprep.mubr.msk.bf16.mxu0 %vm992_vm0, %v3258_v7  ;;  %v3261_v10 = vld [vmem:[%s3396_s26 + $0x118] sm:$0xff]   ;;  %v3263_v12 = vld [vmem:[%s3396_s26 + $0x120] sm:$0xff]   ;;  %v3265_v14 = vld [vmem:[%s3396_s26 + $0x128] sm:$0xff]  }
  0x15   : > { %3161 = vmatprep.mubr.msk.bf16.mxu1 %vm992_vm0, %v3259_v8  ;;  %v3266_v15 = vld [vmem:[%s3396_s26 + $0x30] sm:$0xff]   ;;  %v3268_v17 = vld [vmem:[%s3396_s26 + $0x38] sm:$0xff]   ;;  %v3270_v19 = vld [vmem:[%s3396_s26 + $0x40] sm:$0xff]  }
  0x16   : > { %v3267_v16 = vld [vmem:[%s3396_s26 + $0x130] sm:$0xff]   ;;  %v3269_v18 = vld [vmem:[%s3396_s26 + $0x138] sm:$0xff]   ;;  %v3271_v20 = vld [vmem:[%s3396_s26 + $0x140] sm:$0xff]  }
  0x17   : > { %v3272_v21 = vld [vmem:[%s3396_s26 + $0x48] sm:$0xff]   ;;  %v3274_v23 = vld [vmem:[%s3396_s26 + $0x50] sm:$0xff]   ;;  %v3276_v25 = vld [vmem:[%s3396_s26 + $0x58] sm:$0xff]  }
  0x18   : > { %v3273_v22 = vld [vmem:[%s3396_s26 + $0x148] sm:$0xff]   ;;  %v3275_v24 = vld [vmem:[%s3396_s26 + $0x150] sm:$0xff]   ;;  %v3277_v26 = vld [vmem:[%s3396_s26 + $0x158] sm:$0xff]  }
  0x19   : > { %v3278_v27 = vld [vmem:[%s3396_s26 + $0x60] sm:$0xff]   ;;  %v3280_v29 = vld [vmem:[%s3396_s26 + $0x68] sm:$0xff]   ;;  %v3282_v31 = vld [vmem:[%s3396_s26 + $0x70] sm:$0xff]  }
  0x1a   : > { %v3279_v28 = vld [vmem:[%s3396_s26 + $0x160] sm:$0xff]   ;;  %v3281_v30 = vld [vmem:[%s3396_s26 + $0x168] sm:$0xff]   ;;  %v3283_v32 = vld [vmem:[%s3396_s26 + $0x170] sm:$0xff]  }
  0x1b   : > { %3098 = vmatmul.mubr.msk.bf16.gmra.mrb[4].mxu0 %vm992_vm0, %v3260_v9  ;;  %v3284_v33 = vld [vmem:[%s3396_s26 + $0x78] sm:$0xff]   ;;  %v3286_v35 = vld [vmem:[%s3396_s26 + $0x80] sm:$0xff]   ;;  %v3288_v37 = vld [vmem:[%s3396_s26 + $0x88] sm:$0xff]  }
  0x1c   : > { %3162 = vmatmul.mubr.msk.bf16.gmra.mrb[4].mxu1 %vm992_vm0, %v3261_v10  ;;  %3101 = vmatprep.mubr.msk.bf16.mxu0 %vm992_vm0, %v3262_v11  ;;  %v3285_v34 = vld [vmem:[%s3396_s26 + $0x178] sm:$0xff]   ;;  %v3287_v36 = vld [vmem:[%s3396_s26 + $0x180] sm:$0xff]   ;;  %v3289_v38 = vld [vmem:[%s3396_s26 + $0x188] sm:$0xff]  }
  0x1d   : > { %3165 = vmatprep.mubr.msk.bf16.mxu1 %vm992_vm0, %v3263_v12  ;;  %v3290_v39 = vld [vmem:[%s3396_s26 + $0x90] sm:$0xff]   ;;  %v3292_v41 = vld [vmem:[%s3396_s26 + $0x98] sm:$0xff]   ;;  %v3294_v43 = vld [vmem:[%s3396_s26 + $0xa0] sm:$0xff]  }
  0x1e   : > { %v3291_v40 = vld [vmem:[%s3396_s26 + $0x190] sm:$0xff]   ;;  %v3293_v42 = vld [vmem:[%s3396_s26 + $0x198] sm:$0xff]   ;;  %v3295_v44 = vld [vmem:[%s3396_s26 + $0x1a0] sm:$0xff]  }
  0x1f   : > { %v3296_v45 = vld [vmem:[%s3396_s26 + $0xa8] sm:$0xff]   ;;  %v3298_v47 = vld [vmem:[%s3396_s26 + $0xb0] sm:$0xff]   ;;  %v3300_v49 = vld [vmem:[%s3396_s26 + $0xb8] sm:$0xff]  }
  0x20   : > { %v3297_v46 = vld [vmem:[%s3396_s26 + $0x1a8] sm:$0xff]   ;;  %v3299_v48 = vld [vmem:[%s3396_s26 + $0x1b0] sm:$0xff]   ;;  %v3301_v50 = vld [vmem:[%s3396_s26 + $0x1b8] sm:$0xff]  }
  0x21   : > { %v3302_v51 = vld [vmem:[%s3396_s26 + $0xc0] sm:$0xff]   ;;  %v3304_v53 = vld [vmem:[%s3396_s26 + $0xc8] sm:$0xff]   ;;  %v3306_v55 = vld [vmem:[%s3396_s26 + $0xd0] sm:$0xff]  }
  0x22   : > { %v3303_v52 = vld [vmem:[%s3396_s26 + $0x1c0] sm:$0xff]   ;;  %v3305_v54 = vld [vmem:[%s3396_s26 + $0x1c8] sm:$0xff]   ;;  %v3307_v56 = vld [vmem:[%s3396_s26 + $0x1d0] sm:$0xff]  }
  0x23   : > { %3102 = vmatmul.mubr.msk.bf16.gmra.mrb[8].mxu0 %vm992_vm0, %v3264_v13  ;;  %v3308_v57 = vld [vmem:[%s3396_s26 + $0xd8] sm:$0xff]   ;;  %v3310_v59 = vld [vmem:[%s3396_s26 + $0xe0] sm:$0xff]   ;;  %v3312_v61 = vld [vmem:[%s3396_s26 + $0xe8] sm:$0xff]  }
  0x24   : > { %3166 = vmatmul.mubr.msk.bf16.gmra.mrb[8].mxu1 %vm992_vm0, %v3265_v14  ;;  %3105 = vmatprep.mubr.msk.bf16.mxu0 %vm992_vm0, %v3266_v15  ;;  %v3309_v58 = vld [vmem:[%s3396_s26 + $0x1d8] sm:$0xff]   ;;  %v3311_v60 = vld [vmem:[%s3396_s26 + $0x1e0] sm:$0xff]   ;;  %v3313_v62 = vld [vmem:[%s3396_s26 + $0x1e8] sm:$0xff]  }
  0x25   : > { %3169 = vmatprep.mubr.msk.bf16.mxu1 %vm992_vm0, %v3267_v16  ;;  %v3314_v63 = vld [vmem:[%s3396_s26 + $0xf0] sm:$0xff]   ;;  %v3316_v1 = vld [vmem:[%s3396_s26 + $0xf8] sm:$0xff]   ;;  %v3529_v3 = vld [vmem:[%s3809_s2] ss:$0 sm:$0xff] }
  0x26   : > { %v3315_v0 = vld [vmem:[%s3396_s26 + $0x1f0] sm:$0xff]   ;;  %v3317_v2 = vld [vmem:[%s3396_s26 + $0x1f8] sm:$0xff]  }
  0x2b   : > { %3106 = vmatmul.mubr.msk.bf16.gmra.mrb[12].mxu0 %vm992_vm0, %v3268_v17 }
  0x2c   : > { %3170 = vmatmul.mubr.msk.bf16.gmra.mrb[12].mxu1 %vm992_vm0, %v3269_v18  ;;  %3109 = vmatprep.mubr.msk.bf16.mxu0 %vm992_vm0, %v3270_v19 }
  0x2d   : > { %3173 = vmatprep.mubr.msk.bf16.mxu1 %vm992_vm0, %v3271_v20 }
  0x33   : > { %3110 = vmatmul.mubr.msk.bf16.gmra.mrb[16].mxu0 %vm992_vm0, %v3272_v21 }
  0x34   : > { %3174 = vmatmul.mubr.msk.bf16.gmra.mrb[16].mxu1 %vm992_vm0, %v3273_v22  ;;  %3113 = vmatprep.mubr.msk.bf16.mxu0 %vm992_vm0, %v3274_v23 }
  0x35   : > { %3177 = vmatprep.mubr.msk.bf16.mxu1 %vm992_vm0, %v3275_v24 }
  0x3b   : > { %3114 = vmatmul.mubr.msk.bf16.gmra.mrb[20].mxu0 %vm992_vm0, %v3276_v25 }
  0x3c   : > { %3178 = vmatmul.mubr.msk.bf16.gmra.mrb[20].mxu1 %vm992_vm0, %v3277_v26  ;;  %3117 = vmatprep.mubr.msk.bf16.mxu0 %vm992_vm0, %v3278_v27 }
  0x3d   : > { %3181 = vmatprep.mubr.msk.bf16.mxu1 %vm992_vm0, %v3279_v28 }
  0x43   : > { %3118 = vmatmul.mubr.msk.bf16.gmra.mrb[24].mxu0 %vm992_vm0, %v3280_v29 }
  0x44   : > { %3182 = vmatmul.mubr.msk.bf16.gmra.mrb[24].mxu1 %vm992_vm0, %v3281_v30  ;;  %3121 = vmatprep.mubr.msk.bf16.mxu0 %vm992_vm0, %v3282_v31 }
  0x45   : > { %3185 = vmatprep.mubr.msk.bf16.mxu1 %vm992_vm0, %v3283_v32 }
  0x4b   : > { %3122 = vmatmul.mubr.msk.bf16.gmra.mrb[28].mxu0 %vm992_vm0, %v3284_v33 }
  0x4c   : > { %3186 = vmatmul.mubr.msk.bf16.gmra.mrb[28].mxu1 %vm992_vm0, %v3285_v34  ;;  %3125 = vmatprep.mubr.msk.bf16.mxu0 %vm992_vm0, %v3286_v35 }
  0x4d   : > { %3189 = vmatprep.mubr.msk.bf16.mxu1 %vm992_vm0, %v3287_v36 }
  0x53   : > { %3126 = vmatmul.mubr.msk.bf16.gmra.mrb[32].mxu0 %vm992_vm0, %v3288_v37 }
  0x54   : > { %3190 = vmatmul.mubr.msk.bf16.gmra.mrb[32].mxu1 %vm992_vm0, %v3289_v38  ;;  %3129 = vmatprep.mubr.msk.bf16.mxu0 %vm992_vm0, %v3290_v39 }
  0x55   : > { %3193 = vmatprep.mubr.msk.bf16.mxu1 %vm992_vm0, %v3291_v40 }
  0x5b   : > { %3130 = vmatmul.mubr.msk.bf16.gmra.mrb[36].mxu0 %vm992_vm0, %v3292_v41 }
  0x5c   : > { %3194 = vmatmul.mubr.msk.bf16.gmra.mrb[36].mxu1 %vm992_vm0, %v3293_v42  ;;  %3133 = vmatprep.mubr.msk.bf16.mxu0 %vm992_vm0, %v3294_v43 }
  0x5d   : > { %3197 = vmatprep.mubr.msk.bf16.mxu1 %vm992_vm0, %v3295_v44 }
  0x63   : > { %3134 = vmatmul.mubr.msk.bf16.gmra.mrb[40].mxu0 %vm992_vm0, %v3296_v45 }
  0x64   : > { %3198 = vmatmul.mubr.msk.bf16.gmra.mrb[40].mxu1 %vm992_vm0, %v3297_v46  ;;  %3137 = vmatprep.mubr.msk.bf16.mxu0 %vm992_vm0, %v3298_v47 }
  0x65   : > { %3201 = vmatprep.mubr.msk.bf16.mxu1 %vm992_vm0, %v3299_v48 }
  0x6b   : > { %3138 = vmatmul.mubr.msk.bf16.gmra.mrb[44].mxu0 %vm992_vm0, %v3300_v49 }
  0x6c   : > { %3202 = vmatmul.mubr.msk.bf16.gmra.mrb[44].mxu1 %vm992_vm0, %v3301_v50  ;;  %3141 = vmatprep.mubr.msk.bf16.mxu0 %vm992_vm0, %v3302_v51 }
  0x6d   : > { %3205 = vmatprep.mubr.msk.bf16.mxu1 %vm992_vm0, %v3303_v52 }
  0x73   : > { %3142 = vmatmul.mubr.msk.bf16.gmra.mrb[48].mxu0 %vm992_vm0, %v3304_v53 }
  0x74   : > { %3206 = vmatmul.mubr.msk.bf16.gmra.mrb[48].mxu1 %vm992_vm0, %v3305_v54  ;;  %3145 = vmatprep.mubr.msk.bf16.mxu0 %vm992_vm0, %v3306_v55 }
  0x75   : > { %3209 = vmatprep.mubr.msk.bf16.mxu1 %vm992_vm0, %v3307_v56 }
  0x7b   : > { %3146 = vmatmul.mubr.msk.bf16.gmra.mrb[52].mxu0 %vm992_vm0, %v3308_v57 }
  0x7c   : > { %3210 = vmatmul.mubr.msk.bf16.gmra.mrb[52].mxu1 %vm992_vm0, %v3309_v58  ;;  %3149 = vmatprep.mubr.msk.bf16.mxu0 %vm992_vm0, %v3310_v59 }
  0x7d   : > { %3213 = vmatprep.mubr.msk.bf16.mxu1 %vm992_vm0, %v3311_v60 }
  0x83   : > { %3150 = vmatmul.mubr.msk.bf16.gmra.mrb[56].mxu0 %vm992_vm0, %v3312_v61 }
  0x84   : > { %3214 = vmatmul.mubr.msk.bf16.gmra.mrb[56].mxu1 %vm992_vm0, %v3313_v62  ;;  %3153 = vmatprep.mubr.msk.bf16.mxu0 %vm992_vm0, %v3314_v63 }
  0x85   : > { %3217 = vmatprep.mubr.msk.bf16.mxu1 %vm992_vm0, %v3315_v0 }
  0x8b   : > { %3154 = vmatmul.mubr.msk.bf16.gmra.mrb[60].mxu0 %vm992_vm0, %v3316_v1 }
  0x8c   : > { %3218 = vmatmul.mubr.msk.bf16.gmra.mrb[60].mxu1 %vm992_vm0, %v3317_v2 }
  0xe6   : > { %v3095_v4 = vpop.f32.mrb[0].mxu0 }
  0xe7   : > { %v3159_v5 = vpop.f32.mrb[0].mxu1  ;;  %v2126_v6 = vadd.f32 %v3095_v4, %v3529_v3  ;;  %v1219_v8 = vpop.f32.mrb[1].mxu0 }
  0xe8   : > { %v2190_v7 = vadd.f32 %v3159_v5, %v3529_v3  ;;  %v1475_v9 = vpop.f32.mrb[1].mxu1  ;;  %v2124_v10 = vadd.f32 %v3529_v3, %v1219_v8  ;;  %v3096_v12 = vpop.f32.mrb[2].mxu0 }
  0xe9   : > { %v2188_v11 = vadd.f32 %v3529_v3, %v1475_v9  ;;  %v3160_v13 = vpop.f32.mrb[2].mxu1  ;;  %vm2254_vm1 = vcmp.ge.f32.partialorder %v2126_v6, 0.0  ;;  %v2382_v14 = vmul.f32 0.01, %v2126_v6  ;;  %v2127_v20 = vadd.f32 %v3096_v12, %v3529_v3  ;;  %v1222_v22 = vpop.f32.mrb[3].mxu0 }
  0xea   : > { %vm2318_vm2 = vcmp.ge.f32.partialorder %v2190_v7, 0.0  ;;  %v2446_v15 = vmul.f32 0.01, %v2190_v7  ;;  %vm2252_vm3 = vcmp.ge.f32.partialorder %v2124_v10, 0.0  ;;  %v2380_v16 = vmul.f32 0.01, %v2124_v10 }
  0xeb   : > { %vm2316_vm4 = vcmp.ge.f32.partialorder %v2188_v11, 0.0  ;;  %v2444_v17 = vmul.f32 0.01, %v2188_v11  ;;  %v2510_v18 = vsel %vm2254_vm1, %v2126_v6, %v2382_v14  ;;  %v2191_v21 = vadd.f32 %v3160_v13, %v3529_v3  ;;  %v1478_v23 = vpop.f32.mrb[3].mxu1 }
  0xec   : > { %v2574_v19 = vsel %vm2318_vm2, %v2190_v7, %v2446_v15  ;;  %2638 = vst [vmem:[%s3539_s5 + $0x10] sm:$0xff] %v2510_v18  ;;  %v2508_v24 = vsel %vm2252_vm3, %v2124_v10, %v2380_v16  ;;  %v2125_v26 = vadd.f32 %v3529_v3, %v1222_v22  ;;  %v2189_v27 = vadd.f32 %v3529_v3, %v1478_v23 }
  0xed   : > { %2702 = vst [vmem:[%s3539_s5 + $0x210] sm:$0xff] %v2574_v19  ;;  %v2572_v25 = vsel %vm2316_vm4, %v2188_v11, %v2444_v17  ;;  %2636 = vst [vmem:[%s3539_s5] sm:$0xff] %v2508_v24  ;;  %vm2255_vm5 = vcmp.ge.f32.partialorder %v2127_v20, 0.0  ;;  %v2383_v28 = vmul.f32 0.01, %v2127_v20  ;;  %vm2319_vm6 = vcmp.ge.f32.partialorder %v2191_v21, 0.0 }
  0xee   : > { %2700 = vst [vmem:[%s3539_s5 + $0x200] sm:$0xff] %v2572_v25  ;;  %v2447_v29 = vmul.f32 0.01, %v2191_v21  ;;  %vm2253_vm7 = vcmp.ge.f32.partialorder %v2125_v26, 0.0  ;;  %v2381_v30 = vmul.f32 0.01, %v2125_v26 }
  0xef   : > { %vm2317_vm8 = vcmp.ge.f32.partialorder %v2189_v27, 0.0  ;;  %v2445_v31 = vmul.f32 0.01, %v2189_v27  ;;  %v2511_v32 = vsel %vm2255_vm5, %v2127_v20, %v2383_v28  ;;  %v3099_v34 = vpop.f32.mrb[4].mxu0  ;;  %v3163_v35 = vpop.f32.mrb[4].mxu1 }
  0xf0   : > { %v2575_v33 = vsel %vm2319_vm6, %v2191_v21, %v2447_v29  ;;  %2639 = vst [vmem:[%s3539_s5 + $0x18] sm:$0xff] %v2511_v32  ;;  %v2509_v36 = vsel %vm2253_vm7, %v2125_v26, %v2381_v30  ;;  %v2130_v38 = vadd.f32 %v3099_v34, %v3529_v3  ;;  %v2194_v39 = vadd.f32 %v3163_v35, %v3529_v3  ;;  %v1235_v40 = vpop.f32.mrb[5].mxu0  ;;  %v1491_v41 = vpop.f32.mrb[5].mxu1 }
  0xf1   : > { %2703 = vst [vmem:[%s3539_s5 + $0x218] sm:$0xff] %v2575_v33  ;;  %v2573_v37 = vsel %vm2317_vm8, %v2189_v27, %v2445_v31  ;;  %2637 = vst [vmem:[%s3539_s5 + $0x8] sm:$0xff] %v2509_v36  ;;  %v2128_v42 = vadd.f32 %v3529_v3, %v1235_v40  ;;  %v2192_v43 = vadd.f32 %v3529_v3, %v1491_v41  ;;  %v3100_v44 = vpop.f32.mrb[6].mxu0  ;;  %v3164_v45 = vpop.f32.mrb[6].mxu1 }
  0xf2   : > { %2701 = vst [vmem:[%s3539_s5 + $0x208] sm:$0xff] %v2573_v37  ;;  %vm2258_vm9 = vcmp.ge.f32.partialorder %v2130_v38, 0.0  ;;  %v2386_v46 = vmul.f32 0.01, %v2130_v38  ;;  %vm2322_vm10 = vcmp.ge.f32.partialorder %v2194_v39, 0.0  ;;  %v2131_v52 = vadd.f32 %v3100_v44, %v3529_v3  ;;  %v1238_v54 = vpop.f32.mrb[7].mxu0 }
  0xf3   : > { %v2450_v47 = vmul.f32 0.01, %v2194_v39  ;;  %vm2256_vm11 = vcmp.ge.f32.partialorder %v2128_v42, 0.0  ;;  %v2384_v48 = vmul.f32 0.01, %v2128_v42  ;;  %vm2320_vm12 = vcmp.ge.f32.partialorder %v2192_v43, 0.0 }
  0xf4   : > { %v2448_v49 = vmul.f32 0.01, %v2192_v43  ;;  %v2514_v50 = vsel %vm2258_vm9, %v2130_v38, %v2386_v46  ;;  %v2195_v53 = vadd.f32 %v3164_v45, %v3529_v3  ;;  %v1494_v55 = vpop.f32.mrb[7].mxu1  ;;  %v2129_v58 = vadd.f32 %v3529_v3, %v1238_v54 }
  0xf5   : > { %v2578_v51 = vsel %vm2322_vm10, %v2194_v39, %v2450_v47  ;;  %2642 = vst [vmem:[%s3539_s5 + $0x30] sm:$0xff] %v2514_v50  ;;  %v2512_v56 = vsel %vm2256_vm11, %v2128_v42, %v2384_v48  ;;  %v2193_v59 = vadd.f32 %v3529_v3, %v1494_v55  ;;  %vm2259_vm13 = vcmp.ge.f32.partialorder %v2131_v52, 0.0 }
  0xf6   : > { %2706 = vst [vmem:[%s3539_s5 + $0x230] sm:$0xff] %v2578_v51  ;;  %v2576_v57 = vsel %vm2320_vm12, %v2192_v43, %v2448_v49  ;;  %2640 = vst [vmem:[%s3539_s5 + $0x20] sm:$0xff] %v2512_v56  ;;  %v2387_v60 = vmul.f32 0.01, %v2131_v52  ;;  %vm2323_vm14 = vcmp.ge.f32.partialorder %v2195_v53, 0.0  ;;  %vm2257_vm15 = vcmp.ge.f32.partialorder %v2129_v58, 0.0 }
  0xf7   : > { %2704 = vst [vmem:[%s3539_s5 + $0x220] sm:$0xff] %v2576_v57  ;;  %v2451_v61 = vmul.f32 0.01, %v2195_v53  ;;  %v2385_v62 = vmul.f32 0.01, %v2129_v58  ;;  %vm2321_vm0 = vcmp.ge.f32.partialorder %v2193_v59, 0.0 }
  0xf8   : > { %v2449_v63 = vmul.f32 0.01, %v2193_v59  ;;  %v2515_v0 = vsel %vm2259_vm13, %v2131_v52, %v2387_v60  ;;  %v3103_v2 = vpop.f32.mrb[8].mxu0  ;;  %v3167_v4 = vpop.f32.mrb[8].mxu1 }
  0xf9   : > { %v2579_v1 = vsel %vm2323_vm14, %v2195_v53, %v2451_v61  ;;  %2643 = vst [vmem:[%s3539_s5 + $0x38] sm:$0xff] %v2515_v0  ;;  %v2513_v5 = vsel %vm2257_vm15, %v2129_v58, %v2385_v62  ;;  %v2134_v7 = vadd.f32 %v3103_v2, %v3529_v3  ;;  %v2198_v8 = vadd.f32 %v3167_v4, %v3529_v3  ;;  %v1251_v9 = vpop.f32.mrb[9].mxu0  ;;  %v1507_v10 = vpop.f32.mrb[9].mxu1 }
  0xfa   : > { %2707 = vst [vmem:[%s3539_s5 + $0x238] sm:$0xff] %v2579_v1  ;;  %v2577_v6 = vsel %vm2321_vm0, %v2193_v59, %v2449_v63  ;;  %2641 = vst [vmem:[%s3539_s5 + $0x28] sm:$0xff] %v2513_v5  ;;  %v2132_v11 = vadd.f32 %v3529_v3, %v1251_v9  ;;  %v2196_v12 = vadd.f32 %v3529_v3, %v1507_v10  ;;  %v3104_v13 = vpop.f32.mrb[10].mxu0  ;;  %v3168_v14 = vpop.f32.mrb[10].mxu1 }
  0xfb   : > { %2705 = vst [vmem:[%s3539_s5 + $0x228] sm:$0xff] %v2577_v6  ;;  %vm2262_vm1 = vcmp.ge.f32.partialorder %v2134_v7, 0.0  ;;  %v2390_v15 = vmul.f32 0.01, %v2134_v7  ;;  %vm2326_vm2 = vcmp.ge.f32.partialorder %v2198_v8, 0.0  ;;  %v2135_v21 = vadd.f32 %v3104_v13, %v3529_v3  ;;  %v1254_v23 = vpop.f32.mrb[11].mxu0 }
  0xfc   : > { %v2454_v16 = vmul.f32 0.01, %v2198_v8  ;;  %vm2260_vm3 = vcmp.ge.f32.partialorder %v2132_v11, 0.0  ;;  %v2388_v17 = vmul.f32 0.01, %v2132_v11  ;;  %vm2324_vm4 = vcmp.ge.f32.partialorder %v2196_v12, 0.0 }
  0xfd   : > { %v2452_v18 = vmul.f32 0.01, %v2196_v12  ;;  %v2518_v19 = vsel %vm2262_vm1, %v2134_v7, %v2390_v15  ;;  %v2199_v22 = vadd.f32 %v3168_v14, %v3529_v3  ;;  %v1510_v24 = vpop.f32.mrb[11].mxu1  ;;  %v2133_v27 = vadd.f32 %v3529_v3, %v1254_v23 }
  0xfe   : > { %v2582_v20 = vsel %vm2326_vm2, %v2198_v8, %v2454_v16  ;;  %2646 = vst [vmem:[%s3539_s5 + $0x50] sm:$0xff] %v2518_v19  ;;  %v2516_v25 = vsel %vm2260_vm3, %v2132_v11, %v2388_v17  ;;  %v2197_v28 = vadd.f32 %v3529_v3, %v1510_v24  ;;  %v3107_v29 = vpop.f32.mrb[12].mxu0  ;;  %vm2263_vm5 = vcmp.ge.f32.partialorder %v2135_v21, 0.0 }
  0xff   : > { %2710 = vst [vmem:[%s3539_s5 + $0x250] sm:$0xff] %v2582_v20  ;;  %v2580_v26 = vsel %vm2324_vm4, %v2196_v12, %v2452_v18  ;;  %v3171_v30 = vpop.f32.mrb[12].mxu1  ;;  %2644 = vst [vmem:[%s3539_s5 + $0x40] sm:$0xff] %v2516_v25  ;;  %v2391_v31 = vmul.f32 0.01, %v2135_v21  ;;  %vm2327_vm6 = vcmp.ge.f32.partialorder %v2199_v22, 0.0  ;;  %v2138_v37 = vadd.f32 %v3107_v29, %v3529_v3 }
 0x100   : > { %2708 = vst [vmem:[%s3539_s5 + $0x240] sm:$0xff] %v2580_v26  ;;  %v2455_v32 = vmul.f32 0.01, %v2199_v22  ;;  %vm2261_vm7 = vcmp.ge.f32.partialorder %v2133_v27, 0.0  ;;  %v2389_v33 = vmul.f32 0.01, %v2133_v27  ;;  %v2202_v38 = vadd.f32 %v3171_v30, %v3529_v3 }
 0x101   : > { %vm2325_vm8 = vcmp.ge.f32.partialorder %v2197_v28, 0.0  ;;  %v2453_v34 = vmul.f32 0.01, %v2197_v28  ;;  %v2519_v35 = vsel %vm2263_vm5, %v2135_v21, %v2391_v31  ;;  %v1267_v39 = vpop.f32.mrb[13].mxu0  ;;  %v1523_v40 = vpop.f32.mrb[13].mxu1  ;;  %vm2266_vm9 = vcmp.ge.f32.partialorder %v2138_v37, 0.0 }
 0x102   : > { %v2583_v36 = vsel %vm2327_vm6, %v2199_v22, %v2455_v32  ;;  %2647 = vst [vmem:[%s3539_s5 + $0x58] sm:$0xff] %v2519_v35  ;;  %v2517_v41 = vsel %vm2261_vm7, %v2133_v27, %v2389_v33  ;;  %v2136_v43 = vadd.f32 %v3529_v3, %v1267_v39  ;;  %v2200_v44 = vadd.f32 %v3529_v3, %v1523_v40  ;;  %v3108_v45 = vpop.f32.mrb[14].mxu0  ;;  %v3172_v46 = vpop.f32.mrb[14].mxu1 }
 0x103   : > { %2711 = vst [vmem:[%s3539_s5 + $0x258] sm:$0xff] %v2583_v36  ;;  %v2581_v42 = vsel %vm2325_vm8, %v2197_v28, %v2453_v34  ;;  %2645 = vst [vmem:[%s3539_s5 + $0x48] sm:$0xff] %v2517_v41  ;;  %v2394_v47 = vmul.f32 0.01, %v2138_v37  ;;  %vm2330_vm10 = vcmp.ge.f32.partialorder %v2202_v38, 0.0  ;;  %v2139_v53 = vadd.f32 %v3108_v45, %v3529_v3  ;;  %v1270_v55 = vpop.f32.mrb[15].mxu0 }
 0x104   : > { %2709 = vst [vmem:[%s3539_s5 + $0x248] sm:$0xff] %v2581_v42  ;;  %v2458_v48 = vmul.f32 0.01, %v2202_v38  ;;  %vm2264_vm11 = vcmp.ge.f32.partialorder %v2136_v43, 0.0  ;;  %v2392_v49 = vmul.f32 0.01, %v2136_v43  ;;  %v2203_v54 = vadd.f32 %v3172_v46, %v3529_v3 }
 0x105   : > { %vm2328_vm12 = vcmp.ge.f32.partialorder %v2200_v44, 0.0  ;;  %v2456_v50 = vmul.f32 0.01, %v2200_v44  ;;  %v2522_v51 = vsel %vm2266_vm9, %v2138_v37, %v2394_v47  ;;  %v1526_v56 = vpop.f32.mrb[15].mxu1  ;;  %v2137_v59 = vadd.f32 %v3529_v3, %v1270_v55 }
 0x106   : > { %v2586_v52 = vsel %vm2330_vm10, %v2202_v38, %v2458_v48  ;;  %2650 = vst [vmem:[%s3539_s5 + $0x70] sm:$0xff] %v2522_v51  ;;  %v2520_v57 = vsel %vm2264_vm11, %v2136_v43, %v2392_v49  ;;  %v2201_v60 = vadd.f32 %v3529_v3, %v1526_v56  ;;  %v3111_v61 = vpop.f32.mrb[16].mxu0  ;;  %vm2267_vm13 = vcmp.ge.f32.partialorder %v2139_v53, 0.0 }
 0x107   : > { %2714 = vst [vmem:[%s3539_s5 + $0x270] sm:$0xff] %v2586_v52  ;;  %v2584_v58 = vsel %vm2328_vm12, %v2200_v44, %v2456_v50  ;;  %v3175_v62 = vpop.f32.mrb[16].mxu1  ;;  %2648 = vst [vmem:[%s3539_s5 + $0x60] sm:$0xff] %v2520_v57  ;;  %v2395_v63 = vmul.f32 0.01, %v2139_v53  ;;  %vm2331_vm14 = vcmp.ge.f32.partialorder %v2203_v54, 0.0  ;;  %v2142_v6 = vadd.f32 %v3111_v61, %v3529_v3 }
 0x108   : > { %2712 = vst [vmem:[%s3539_s5 + $0x260] sm:$0xff] %v2584_v58  ;;  %v2459_v0 = vmul.f32 0.01, %v2203_v54  ;;  %vm2265_vm15 = vcmp.ge.f32.partialorder %v2137_v59, 0.0  ;;  %v2393_v1 = vmul.f32 0.01, %v2137_v59  ;;  %v2206_v7 = vadd.f32 %v3175_v62, %v3529_v3 }
 0x109   : > { %vm2329_vm0 = vcmp.ge.f32.partialorder %v2201_v60, 0.0  ;;  %v2457_v2 = vmul.f32 0.01, %v2201_v60  ;;  %v2523_v4 = vsel %vm2267_vm13, %v2139_v53, %v2395_v63  ;;  %v1283_v8 = vpop.f32.mrb[17].mxu0  ;;  %v1539_v9 = vpop.f32.mrb[17].mxu1  ;;  %vm2270_vm1 = vcmp.ge.f32.partialorder %v2142_v6, 0.0 }
 0x10a   : > { %v2587_v5 = vsel %vm2331_vm14, %v2203_v54, %v2459_v0  ;;  %2651 = vst [vmem:[%s3539_s5 + $0x78] sm:$0xff] %v2523_v4  ;;  %v2521_v10 = vsel %vm2265_vm15, %v2137_v59, %v2393_v1  ;;  %v2140_v12 = vadd.f32 %v3529_v3, %v1283_v8  ;;  %v2204_v13 = vadd.f32 %v3529_v3, %v1539_v9  ;;  %v3112_v14 = vpop.f32.mrb[18].mxu0  ;;  %v3176_v15 = vpop.f32.mrb[18].mxu1 }
 0x10b   : > { %2715 = vst [vmem:[%s3539_s5 + $0x278] sm:$0xff] %v2587_v5  ;;  %v2585_v11 = vsel %vm2329_vm0, %v2201_v60, %v2457_v2  ;;  %2649 = vst [vmem:[%s3539_s5 + $0x68] sm:$0xff] %v2521_v10  ;;  %v2398_v16 = vmul.f32 0.01, %v2142_v6  ;;  %vm2334_vm2 = vcmp.ge.f32.partialorder %v2206_v7, 0.0  ;;  %v2143_v22 = vadd.f32 %v3112_v14, %v3529_v3  ;;  %v1286_v24 = vpop.f32.mrb[19].mxu0 }
 0x10c   : > { %2713 = vst [vmem:[%s3539_s5 + $0x268] sm:$0xff] %v2585_v11  ;;  %v2462_v17 = vmul.f32 0.01, %v2206_v7  ;;  %vm2268_vm3 = vcmp.ge.f32.partialorder %v2140_v12, 0.0  ;;  %v2396_v18 = vmul.f32 0.01, %v2140_v12  ;;  %v2207_v23 = vadd.f32 %v3176_v15, %v3529_v3 }
 0x10d   : > { %vm2332_vm4 = vcmp.ge.f32.partialorder %v2204_v13, 0.0  ;;  %v2460_v19 = vmul.f32 0.01, %v2204_v13  ;;  %v2526_v20 = vsel %vm2270_vm1, %v2142_v6, %v2398_v16  ;;  %v1542_v25 = vpop.f32.mrb[19].mxu1  ;;  %v2141_v28 = vadd.f32 %v3529_v3, %v1286_v24 }
 0x10e   : > { %v2590_v21 = vsel %vm2334_vm2, %v2206_v7, %v2462_v17  ;;  %2654 = vst [vmem:[%s3539_s5 + $0x90] sm:$0xff] %v2526_v20  ;;  %v2524_v26 = vsel %vm2268_vm3, %v2140_v12, %v2396_v18  ;;  %v2205_v29 = vadd.f32 %v3529_v3, %v1542_v25  ;;  %v3115_v30 = vpop.f32.mrb[20].mxu0  ;;  %vm2271_vm5 = vcmp.ge.f32.partialorder %v2143_v22, 0.0 }
 0x10f   : > { %2718 = vst [vmem:[%s3539_s5 + $0x290] sm:$0xff] %v2590_v21  ;;  %v2588_v27 = vsel %vm2332_vm4, %v2204_v13, %v2460_v19  ;;  %v3179_v31 = vpop.f32.mrb[20].mxu1  ;;  %2652 = vst [vmem:[%s3539_s5 + $0x80] sm:$0xff] %v2524_v26  ;;  %v2399_v32 = vmul.f32 0.01, %v2143_v22  ;;  %vm2335_vm6 = vcmp.ge.f32.partialorder %v2207_v23, 0.0  ;;  %v2146_v38 = vadd.f32 %v3115_v30, %v3529_v3 }
 0x110   : > { %2716 = vst [vmem:[%s3539_s5 + $0x280] sm:$0xff] %v2588_v27  ;;  %v2463_v33 = vmul.f32 0.01, %v2207_v23  ;;  %vm2269_vm7 = vcmp.ge.f32.partialorder %v2141_v28, 0.0  ;;  %v2397_v34 = vmul.f32 0.01, %v2141_v28  ;;  %v2210_v39 = vadd.f32 %v3179_v31, %v3529_v3 }
 0x111   : > { %vm2333_vm8 = vcmp.ge.f32.partialorder %v2205_v29, 0.0  ;;  %v2461_v35 = vmul.f32 0.01, %v2205_v29  ;;  %v2527_v36 = vsel %vm2271_vm5, %v2143_v22, %v2399_v32  ;;  %v1299_v40 = vpop.f32.mrb[21].mxu0  ;;  %v1555_v41 = vpop.f32.mrb[21].mxu1  ;;  %vm2274_vm9 = vcmp.ge.f32.partialorder %v2146_v38, 0.0 }
 0x112   : > { %v2591_v37 = vsel %vm2335_vm6, %v2207_v23, %v2463_v33  ;;  %2655 = vst [vmem:[%s3539_s5 + $0x98] sm:$0xff] %v2527_v36  ;;  %v2525_v42 = vsel %vm2269_vm7, %v2141_v28, %v2397_v34  ;;  %v2144_v44 = vadd.f32 %v3529_v3, %v1299_v40  ;;  %v2208_v45 = vadd.f32 %v3529_v3, %v1555_v41  ;;  %v3116_v46 = vpop.f32.mrb[22].mxu0  ;;  %v3180_v47 = vpop.f32.mrb[22].mxu1 }
 0x113   : > { %2719 = vst [vmem:[%s3539_s5 + $0x298] sm:$0xff] %v2591_v37  ;;  %v2589_v43 = vsel %vm2333_vm8, %v2205_v29, %v2461_v35  ;;  %2653 = vst [vmem:[%s3539_s5 + $0x88] sm:$0xff] %v2525_v42  ;;  %v2402_v48 = vmul.f32 0.01, %v2146_v38  ;;  %vm2338_vm10 = vcmp.ge.f32.partialorder %v2210_v39, 0.0  ;;  %v2147_v54 = vadd.f32 %v3116_v46, %v3529_v3  ;;  %v1302_v56 = vpop.f32.mrb[23].mxu0 }
 0x114   : > { %2717 = vst [vmem:[%s3539_s5 + $0x288] sm:$0xff] %v2589_v43  ;;  %v2466_v49 = vmul.f32 0.01, %v2210_v39  ;;  %vm2272_vm11 = vcmp.ge.f32.partialorder %v2144_v44, 0.0  ;;  %v2400_v50 = vmul.f32 0.01, %v2144_v44  ;;  %v2211_v55 = vadd.f32 %v3180_v47, %v3529_v3 }
 0x115   : > { %vm2336_vm12 = vcmp.ge.f32.partialorder %v2208_v45, 0.0  ;;  %v2464_v51 = vmul.f32 0.01, %v2208_v45  ;;  %v2530_v52 = vsel %vm2274_vm9, %v2146_v38, %v2402_v48  ;;  %v1558_v57 = vpop.f32.mrb[23].mxu1  ;;  %v2145_v60 = vadd.f32 %v3529_v3, %v1302_v56 }
 0x116   : > { %v2594_v53 = vsel %vm2338_vm10, %v2210_v39, %v2466_v49  ;;  %2658 = vst [vmem:[%s3539_s5 + $0xb0] sm:$0xff] %v2530_v52  ;;  %v2528_v58 = vsel %vm2272_vm11, %v2144_v44, %v2400_v50  ;;  %v2209_v61 = vadd.f32 %v3529_v3, %v1558_v57  ;;  %v3119_v62 = vpop.f32.mrb[24].mxu0  ;;  %vm2275_vm13 = vcmp.ge.f32.partialorder %v2147_v54, 0.0 }
 0x117   : > { %2722 = vst [vmem:[%s3539_s5 + $0x2b0] sm:$0xff] %v2594_v53  ;;  %v2592_v59 = vsel %vm2336_vm12, %v2208_v45, %v2464_v51  ;;  %v3183_v63 = vpop.f32.mrb[24].mxu1  ;;  %2656 = vst [vmem:[%s3539_s5 + $0xa0] sm:$0xff] %v2528_v58  ;;  %v2403_v0 = vmul.f32 0.01, %v2147_v54  ;;  %vm2339_vm14 = vcmp.ge.f32.partialorder %v2211_v55, 0.0  ;;  %v2150_v7 = vadd.f32 %v3119_v62, %v3529_v3 }
 0x118   : > { %2720 = vst [vmem:[%s3539_s5 + $0x2a0] sm:$0xff] %v2592_v59  ;;  %v2467_v1 = vmul.f32 0.01, %v2211_v55  ;;  %vm2273_vm15 = vcmp.ge.f32.partialorder %v2145_v60, 0.0  ;;  %v2401_v2 = vmul.f32 0.01, %v2145_v60  ;;  %v2214_v8 = vadd.f32 %v3183_v63, %v3529_v3 }
 0x119   : > { %vm2337_vm0 = vcmp.ge.f32.partialorder %v2209_v61, 0.0  ;;  %v2465_v4 = vmul.f32 0.01, %v2209_v61  ;;  %v2531_v5 = vsel %vm2275_vm13, %v2147_v54, %v2403_v0  ;;  %v1315_v9 = vpop.f32.mrb[25].mxu0  ;;  %v1571_v10 = vpop.f32.mrb[25].mxu1  ;;  %vm2278_vm1 = vcmp.ge.f32.partialorder %v2150_v7, 0.0 }
 0x11a   : > { %v2595_v6 = vsel %vm2339_vm14, %v2211_v55, %v2467_v1  ;;  %2659 = vst [vmem:[%s3539_s5 + $0xb8] sm:$0xff] %v2531_v5  ;;  %v2529_v11 = vsel %vm2273_vm15, %v2145_v60, %v2401_v2  ;;  %v2148_v13 = vadd.f32 %v3529_v3, %v1315_v9  ;;  %v2212_v14 = vadd.f32 %v3529_v3, %v1571_v10  ;;  %v3120_v15 = vpop.f32.mrb[26].mxu0  ;;  %v3184_v16 = vpop.f32.mrb[26].mxu1 }
 0x11b   : > { %2723 = vst [vmem:[%s3539_s5 + $0x2b8] sm:$0xff] %v2595_v6  ;;  %v2593_v12 = vsel %vm2337_vm0, %v2209_v61, %v2465_v4  ;;  %2657 = vst [vmem:[%s3539_s5 + $0xa8] sm:$0xff] %v2529_v11  ;;  %v2406_v17 = vmul.f32 0.01, %v2150_v7  ;;  %vm2342_vm2 = vcmp.ge.f32.partialorder %v2214_v8, 0.0  ;;  %v2151_v23 = vadd.f32 %v3120_v15, %v3529_v3  ;;  %v1318_v25 = vpop.f32.mrb[27].mxu0 }
 0x11c   : > { %2721 = vst [vmem:[%s3539_s5 + $0x2a8] sm:$0xff] %v2593_v12  ;;  %v2470_v18 = vmul.f32 0.01, %v2214_v8  ;;  %vm2276_vm3 = vcmp.ge.f32.partialorder %v2148_v13, 0.0  ;;  %v2404_v19 = vmul.f32 0.01, %v2148_v13  ;;  %v2215_v24 = vadd.f32 %v3184_v16, %v3529_v3 }
 0x11d   : > { %vm2340_vm4 = vcmp.ge.f32.partialorder %v2212_v14, 0.0  ;;  %v2468_v20 = vmul.f32 0.01, %v2212_v14  ;;  %v2534_v21 = vsel %vm2278_vm1, %v2150_v7, %v2406_v17  ;;  %v1574_v26 = vpop.f32.mrb[27].mxu1  ;;  %v2149_v29 = vadd.f32 %v3529_v3, %v1318_v25 }
 0x11e   : > { %v2598_v22 = vsel %vm2342_vm2, %v2214_v8, %v2470_v18  ;;  %2662 = vst [vmem:[%s3539_s5 + $0xd0] sm:$0xff] %v2534_v21  ;;  %v2532_v27 = vsel %vm2276_vm3, %v2148_v13, %v2404_v19  ;;  %v2213_v30 = vadd.f32 %v3529_v3, %v1574_v26  ;;  %v3123_v31 = vpop.f32.mrb[28].mxu0  ;;  %vm2279_vm5 = vcmp.ge.f32.partialorder %v2151_v23, 0.0 }
 0x11f   : > { %2726 = vst [vmem:[%s3539_s5 + $0x2d0] sm:$0xff] %v2598_v22  ;;  %v2596_v28 = vsel %vm2340_vm4, %v2212_v14, %v2468_v20  ;;  %v3187_v32 = vpop.f32.mrb[28].mxu1  ;;  %2660 = vst [vmem:[%s3539_s5 + $0xc0] sm:$0xff] %v2532_v27  ;;  %v2407_v33 = vmul.f32 0.01, %v2151_v23  ;;  %vm2343_vm6 = vcmp.ge.f32.partialorder %v2215_v24, 0.0  ;;  %v2154_v39 = vadd.f32 %v3123_v31, %v3529_v3 }
 0x120   : > { %2724 = vst [vmem:[%s3539_s5 + $0x2c0] sm:$0xff] %v2596_v28  ;;  %v2471_v34 = vmul.f32 0.01, %v2215_v24  ;;  %vm2277_vm7 = vcmp.ge.f32.partialorder %v2149_v29, 0.0  ;;  %v2405_v35 = vmul.f32 0.01, %v2149_v29  ;;  %v2218_v40 = vadd.f32 %v3187_v32, %v3529_v3 }
 0x121   : > { %vm2341_vm8 = vcmp.ge.f32.partialorder %v2213_v30, 0.0  ;;  %v2469_v36 = vmul.f32 0.01, %v2213_v30  ;;  %v2535_v37 = vsel %vm2279_vm5, %v2151_v23, %v2407_v33  ;;  %v1331_v41 = vpop.f32.mrb[29].mxu0  ;;  %v1587_v42 = vpop.f32.mrb[29].mxu1  ;;  %vm2282_vm9 = vcmp.ge.f32.partialorder %v2154_v39, 0.0 }
 0x122   : > { %v2599_v38 = vsel %vm2343_vm6, %v2215_v24, %v2471_v34  ;;  %2663 = vst [vmem:[%s3539_s5 + $0xd8] sm:$0xff] %v2535_v37  ;;  %v2533_v43 = vsel %vm2277_vm7, %v2149_v29, %v2405_v35  ;;  %v2152_v45 = vadd.f32 %v3529_v3, %v1331_v41  ;;  %v2216_v46 = vadd.f32 %v3529_v3, %v1587_v42  ;;  %v3124_v47 = vpop.f32.mrb[30].mxu0  ;;  %v3188_v48 = vpop.f32.mrb[30].mxu1 }
 0x123   : > { %2727 = vst [vmem:[%s3539_s5 + $0x2d8] sm:$0xff] %v2599_v38  ;;  %v2597_v44 = vsel %vm2341_vm8, %v2213_v30, %v2469_v36  ;;  %2661 = vst [vmem:[%s3539_s5 + $0xc8] sm:$0xff] %v2533_v43  ;;  %v2410_v49 = vmul.f32 0.01, %v2154_v39  ;;  %vm2346_vm10 = vcmp.ge.f32.partialorder %v2218_v40, 0.0  ;;  %v2155_v55 = vadd.f32 %v3124_v47, %v3529_v3  ;;  %v1334_v57 = vpop.f32.mrb[31].mxu0 }
 0x124   : > { %2725 = vst [vmem:[%s3539_s5 + $0x2c8] sm:$0xff] %v2597_v44  ;;  %v2474_v50 = vmul.f32 0.01, %v2218_v40  ;;  %vm2280_vm11 = vcmp.ge.f32.partialorder %v2152_v45, 0.0  ;;  %v2408_v51 = vmul.f32 0.01, %v2152_v45  ;;  %v2219_v56 = vadd.f32 %v3188_v48, %v3529_v3 }
 0x125   : > { %vm2344_vm12 = vcmp.ge.f32.partialorder %v2216_v46, 0.0  ;;  %v2472_v52 = vmul.f32 0.01, %v2216_v46  ;;  %v2538_v53 = vsel %vm2282_vm9, %v2154_v39, %v2410_v49  ;;  %v1590_v58 = vpop.f32.mrb[31].mxu1  ;;  %v2153_v61 = vadd.f32 %v3529_v3, %v1334_v57 }
 0x126   : > { %v2602_v54 = vsel %vm2346_vm10, %v2218_v40, %v2474_v50  ;;  %2666 = vst [vmem:[%s3539_s5 + $0xf0] sm:$0xff] %v2538_v53  ;;  %v2536_v59 = vsel %vm2280_vm11, %v2152_v45, %v2408_v51  ;;  %v2217_v62 = vadd.f32 %v3529_v3, %v1590_v58  ;;  %v3127_v63 = vpop.f32.mrb[32].mxu0  ;;  %vm2283_vm13 = vcmp.ge.f32.partialorder %v2155_v55, 0.0 }
 0x127   : > { %2730 = vst [vmem:[%s3539_s5 + $0x2f0] sm:$0xff] %v2602_v54  ;;  %v2600_v60 = vsel %vm2344_vm12, %v2216_v46, %v2472_v52  ;;  %v3191_v0 = vpop.f32.mrb[32].mxu1  ;;  %2664 = vst [vmem:[%s3539_s5 + $0xe0] sm:$0xff] %v2536_v59  ;;  %v2411_v1 = vmul.f32 0.01, %v2155_v55  ;;  %vm2347_vm14 = vcmp.ge.f32.partialorder %v2219_v56, 0.0  ;;  %v2158_v8 = vadd.f32 %v3127_v63, %v3529_v3 }
 0x128   : > { %2728 = vst [vmem:[%s3539_s5 + $0x2e0] sm:$0xff] %v2600_v60  ;;  %v2475_v2 = vmul.f32 0.01, %v2219_v56  ;;  %vm2281_vm15 = vcmp.ge.f32.partialorder %v2153_v61, 0.0  ;;  %v2409_v4 = vmul.f32 0.01, %v2153_v61  ;;  %v2222_v9 = vadd.f32 %v3191_v0, %v3529_v3 }
 0x129   : > { %vm2345_vm0 = vcmp.ge.f32.partialorder %v2217_v62, 0.0  ;;  %v2473_v5 = vmul.f32 0.01, %v2217_v62  ;;  %v2539_v6 = vsel %vm2283_vm13, %v2155_v55, %v2411_v1  ;;  %v1347_v10 = vpop.f32.mrb[33].mxu0  ;;  %v1603_v11 = vpop.f32.mrb[33].mxu1  ;;  %vm2286_vm1 = vcmp.ge.f32.partialorder %v2158_v8, 0.0 }
 0x12a   : > { %v2603_v7 = vsel %vm2347_vm14, %v2219_v56, %v2475_v2  ;;  %2667 = vst [vmem:[%s3539_s5 + $0xf8] sm:$0xff] %v2539_v6  ;;  %v2537_v12 = vsel %vm2281_vm15, %v2153_v61, %v2409_v4  ;;  %v2156_v14 = vadd.f32 %v3529_v3, %v1347_v10  ;;  %v2220_v15 = vadd.f32 %v3529_v3, %v1603_v11  ;;  %v3128_v16 = vpop.f32.mrb[34].mxu0  ;;  %v3192_v17 = vpop.f32.mrb[34].mxu1 }
 0x12b   : > { %2731 = vst [vmem:[%s3539_s5 + $0x2f8] sm:$0xff] %v2603_v7  ;;  %v2601_v13 = vsel %vm2345_vm0, %v2217_v62, %v2473_v5  ;;  %2665 = vst [vmem:[%s3539_s5 + $0xe8] sm:$0xff] %v2537_v12  ;;  %v2414_v18 = vmul.f32 0.01, %v2158_v8  ;;  %vm2350_vm2 = vcmp.ge.f32.partialorder %v2222_v9, 0.0  ;;  %v2159_v24 = vadd.f32 %v3128_v16, %v3529_v3  ;;  %v1350_v26 = vpop.f32.mrb[35].mxu0 }
 0x12c   : > { %2729 = vst [vmem:[%s3539_s5 + $0x2e8] sm:$0xff] %v2601_v13  ;;  %v2478_v19 = vmul.f32 0.01, %v2222_v9  ;;  %vm2284_vm3 = vcmp.ge.f32.partialorder %v2156_v14, 0.0  ;;  %v2412_v20 = vmul.f32 0.01, %v2156_v14  ;;  %v2223_v25 = vadd.f32 %v3192_v17, %v3529_v3 }
 0x12d   : > { %vm2348_vm4 = vcmp.ge.f32.partialorder %v2220_v15, 0.0  ;;  %v2476_v21 = vmul.f32 0.01, %v2220_v15  ;;  %v2542_v22 = vsel %vm2286_vm1, %v2158_v8, %v2414_v18  ;;  %v1606_v27 = vpop.f32.mrb[35].mxu1  ;;  %v2157_v30 = vadd.f32 %v3529_v3, %v1350_v26 }
 0x12e   : > { %v2606_v23 = vsel %vm2350_vm2, %v2222_v9, %v2478_v19  ;;  %2670 = vst [vmem:[%s3539_s5 + $0x110] sm:$0xff] %v2542_v22  ;;  %v2540_v28 = vsel %vm2284_vm3, %v2156_v14, %v2412_v20  ;;  %v2221_v31 = vadd.f32 %v3529_v3, %v1606_v27  ;;  %v3131_v32 = vpop.f32.mrb[36].mxu0  ;;  %vm2287_vm5 = vcmp.ge.f32.partialorder %v2159_v24, 0.0 }
 0x12f   : > { %2734 = vst [vmem:[%s3539_s5 + $0x310] sm:$0xff] %v2606_v23  ;;  %v2604_v29 = vsel %vm2348_vm4, %v2220_v15, %v2476_v21  ;;  %v3195_v33 = vpop.f32.mrb[36].mxu1  ;;  %2668 = vst [vmem:[%s3539_s5 + $0x100] sm:$0xff] %v2540_v28  ;;  %v2415_v34 = vmul.f32 0.01, %v2159_v24  ;;  %vm2351_vm6 = vcmp.ge.f32.partialorder %v2223_v25, 0.0  ;;  %v2162_v40 = vadd.f32 %v3131_v32, %v3529_v3 }
 0x130   : > { %2732 = vst [vmem:[%s3539_s5 + $0x300] sm:$0xff] %v2604_v29  ;;  %v2479_v35 = vmul.f32 0.01, %v2223_v25  ;;  %vm2285_vm7 = vcmp.ge.f32.partialorder %v2157_v30, 0.0  ;;  %v2413_v36 = vmul.f32 0.01, %v2157_v30  ;;  %v2226_v41 = vadd.f32 %v3195_v33, %v3529_v3 }
 0x131   : > { %vm2349_vm8 = vcmp.ge.f32.partialorder %v2221_v31, 0.0  ;;  %v2477_v37 = vmul.f32 0.01, %v2221_v31  ;;  %v2543_v38 = vsel %vm2287_vm5, %v2159_v24, %v2415_v34  ;;  %v1363_v42 = vpop.f32.mrb[37].mxu0  ;;  %v1619_v43 = vpop.f32.mrb[37].mxu1  ;;  %vm2290_vm9 = vcmp.ge.f32.partialorder %v2162_v40, 0.0 }
 0x132   : > { %v2607_v39 = vsel %vm2351_vm6, %v2223_v25, %v2479_v35  ;;  %2671 = vst [vmem:[%s3539_s5 + $0x118] sm:$0xff] %v2543_v38  ;;  %v2541_v44 = vsel %vm2285_vm7, %v2157_v30, %v2413_v36  ;;  %v2160_v46 = vadd.f32 %v3529_v3, %v1363_v42  ;;  %v2224_v47 = vadd.f32 %v3529_v3, %v1619_v43  ;;  %v3132_v48 = vpop.f32.mrb[38].mxu0  ;;  %v3196_v49 = vpop.f32.mrb[38].mxu1  ;;  %v3709_v32 = vld [vmem:[%s3809_s2] ss:$0 sm:$0xff] }
 0x133   : > { %2735 = vst [vmem:[%s3539_s5 + $0x318] sm:$0xff] %v2607_v39  ;;  %v2605_v45 = vsel %vm2349_vm8, %v2221_v31, %v2477_v37  ;;  %2669 = vst [vmem:[%s3539_s5 + $0x108] sm:$0xff] %v2541_v44  ;;  %v2418_v50 = vmul.f32 0.01, %v2162_v40  ;;  %vm2354_vm10 = vcmp.ge.f32.partialorder %v2226_v41, 0.0  ;;  %v2163_v56 = vadd.f32 %v3132_v48, %v3529_v3  ;;  %v1366_v58 = vpop.f32.mrb[39].mxu0 }
 0x134   : > { %2733 = vst [vmem:[%s3539_s5 + $0x308] sm:$0xff] %v2605_v45  ;;  %v2482_v51 = vmul.f32 0.01, %v2226_v41  ;;  %vm2288_vm11 = vcmp.ge.f32.partialorder %v2160_v46, 0.0  ;;  %v2416_v52 = vmul.f32 0.01, %v2160_v46  ;;  %v2227_v57 = vadd.f32 %v3196_v49, %v3529_v3 }
 0x135   : > { %vm2352_vm12 = vcmp.ge.f32.partialorder %v2224_v47, 0.0  ;;  %v2480_v53 = vmul.f32 0.01, %v2224_v47  ;;  %v2546_v54 = vsel %vm2290_vm9, %v2162_v40, %v2418_v50  ;;  %v1622_v59 = vpop.f32.mrb[39].mxu1  ;;  %v2161_v62 = vadd.f32 %v3529_v3, %v1366_v58 }
 0x136   : > { %v2610_v55 = vsel %vm2354_vm10, %v2226_v41, %v2482_v51  ;;  %2674 = vst [vmem:[%s3539_s5 + $0x130] sm:$0xff] %v2546_v54  ;;  %v2544_v60 = vsel %vm2288_vm11, %v2160_v46, %v2416_v52  ;;  %v2225_v63 = vadd.f32 %v3529_v3, %v1622_v59  ;;  %v3135_v0 = vpop.f32.mrb[40].mxu0  ;;  %vm2291_vm13 = vcmp.ge.f32.partialorder %v2163_v56, 0.0 }
 0x137   : > { %2738 = vst [vmem:[%s3539_s5 + $0x330] sm:$0xff] %v2610_v55  ;;  %v2608_v61 = vsel %vm2352_vm12, %v2224_v47, %v2480_v53  ;;  %v3199_v1 = vpop.f32.mrb[40].mxu1  ;;  %2672 = vst [vmem:[%s3539_s5 + $0x120] sm:$0xff] %v2544_v60  ;;  %v2419_v2 = vmul.f32 0.01, %v2163_v56  ;;  %vm2355_vm14 = vcmp.ge.f32.partialorder %v2227_v57, 0.0  ;;  %v2166_v9 = vadd.f32 %v3135_v0, %v3529_v3 }
 0x138   : > { %2736 = vst [vmem:[%s3539_s5 + $0x320] sm:$0xff] %v2608_v61  ;;  %v2483_v4 = vmul.f32 0.01, %v2227_v57  ;;  %vm2289_vm15 = vcmp.ge.f32.partialorder %v2161_v62, 0.0  ;;  %v2417_v5 = vmul.f32 0.01, %v2161_v62  ;;  %v2230_v10 = vadd.f32 %v3199_v1, %v3529_v3 }
 0x139   : > { %vm2353_vm0 = vcmp.ge.f32.partialorder %v2225_v63, 0.0  ;;  %v2481_v6 = vmul.f32 0.01, %v2225_v63  ;;  %v2547_v7 = vsel %vm2291_vm13, %v2163_v56, %v2419_v2  ;;  %v1379_v11 = vpop.f32.mrb[41].mxu0  ;;  %v1635_v12 = vpop.f32.mrb[41].mxu1  ;;  %vm2294_vm1 = vcmp.ge.f32.partialorder %v2166_v9, 0.0 }
 0x13a   : > { %v2611_v8 = vsel %vm2355_vm14, %v2227_v57, %v2483_v4  ;;  %2675 = vst [vmem:[%s3539_s5 + $0x138] sm:$0xff] %v2547_v7  ;;  %v2545_v13 = vsel %vm2289_vm15, %v2161_v62, %v2417_v5  ;;  %v2164_v15 = vadd.f32 %v3529_v3, %v1379_v11  ;;  %v2228_v16 = vadd.f32 %v3529_v3, %v1635_v12  ;;  %v3136_v17 = vpop.f32.mrb[42].mxu0  ;;  %v3200_v18 = vpop.f32.mrb[42].mxu1 }
 0x13b   : > { %2739 = vst [vmem:[%s3539_s5 + $0x338] sm:$0xff] %v2611_v8  ;;  %v2609_v14 = vsel %vm2353_vm0, %v2225_v63, %v2481_v6  ;;  %2673 = vst [vmem:[%s3539_s5 + $0x128] sm:$0xff] %v2545_v13  ;;  %v2422_v19 = vmul.f32 0.01, %v2166_v9  ;;  %vm2358_vm2 = vcmp.ge.f32.partialorder %v2230_v10, 0.0  ;;  %v2167_v25 = vadd.f32 %v3136_v17, %v3529_v3  ;;  %v1382_v27 = vpop.f32.mrb[43].mxu0 }
 0x13c   : > { %2737 = vst [vmem:[%s3539_s5 + $0x328] sm:$0xff] %v2609_v14  ;;  %v2486_v20 = vmul.f32 0.01, %v2230_v10  ;;  %vm2292_vm3 = vcmp.ge.f32.partialorder %v2164_v15, 0.0  ;;  %v2420_v21 = vmul.f32 0.01, %v2164_v15  ;;  %v2231_v26 = vadd.f32 %v3200_v18, %v3529_v3 }
 0x13d   : > { %vm2356_vm4 = vcmp.ge.f32.partialorder %v2228_v16, 0.0  ;;  %v2484_v22 = vmul.f32 0.01, %v2228_v16  ;;  %v2550_v23 = vsel %vm2294_vm1, %v2166_v9, %v2422_v19  ;;  %v1638_v28 = vpop.f32.mrb[43].mxu1  ;;  %v2165_v31 = vadd.f32 %v3529_v3, %v1382_v27 }
 0x13e   : > { %v2614_v24 = vsel %vm2358_vm2, %v2230_v10, %v2486_v20  ;;  %2678 = vst [vmem:[%s3539_s5 + $0x150] sm:$0xff] %v2550_v23  ;;  %v2548_v29 = vsel %vm2292_vm3, %v2164_v15, %v2420_v21  ;;  %v2229_v33 = vadd.f32 %v3709_v32, %v1638_v28  ;;  %v3139_v34 = vpop.f32.mrb[44].mxu0  ;;  %vm2295_vm5 = vcmp.ge.f32.partialorder %v2167_v25, 0.0 }
 0x13f   : > { %2742 = vst [vmem:[%s3539_s5 + $0x350] sm:$0xff] %v2614_v24  ;;  %v2612_v30 = vsel %vm2356_vm4, %v2228_v16, %v2484_v22  ;;  %v3203_v35 = vpop.f32.mrb[44].mxu1  ;;  %2676 = vst [vmem:[%s3539_s5 + $0x140] sm:$0xff] %v2548_v29  ;;  %v2423_v36 = vmul.f32 0.01, %v2167_v25  ;;  %vm2359_vm6 = vcmp.ge.f32.partialorder %v2231_v26, 0.0  ;;  %v2170_v41 = vadd.f32 %v3709_v32, %v3139_v34 }
 0x140   : > { %2740 = vst [vmem:[%s3539_s5 + $0x340] sm:$0xff] %v2612_v30  ;;  %v2487_v37 = vmul.f32 0.01, %v2231_v26  ;;  %vm2293_vm7 = vcmp.ge.f32.partialorder %v2165_v31, 0.0  ;;  %v2421_v38 = vmul.f32 0.01, %v2165_v31  ;;  %v2234_v42 = vadd.f32 %v3709_v32, %v3203_v35 }
 0x141   : > { %vm2357_vm8 = vcmp.ge.f32.partialorder %v2229_v33, 0.0  ;;  %v2485_v3 = vmul.f32 0.01, %v2229_v33  ;;  %v2551_v39 = vsel %vm2295_vm5, %v2167_v25, %v2423_v36  ;;  %v1395_v43 = vpop.f32.mrb[45].mxu0  ;;  %v1651_v44 = vpop.f32.mrb[45].mxu1  ;;  %vm2298_vm9 = vcmp.ge.f32.partialorder %v2170_v41, 0.0 }
 0x142   : > { %v2615_v40 = vsel %vm2359_vm6, %v2231_v26, %v2487_v37  ;;  %2679 = vst [vmem:[%s3539_s5 + $0x158] sm:$0xff] %v2551_v39  ;;  %v2549_v45 = vsel %vm2293_vm7, %v2165_v31, %v2421_v38  ;;  %v2168_v47 = vadd.f32 %v3709_v32, %v1395_v43  ;;  %v2232_v48 = vadd.f32 %v3709_v32, %v1651_v44  ;;  %v3140_v49 = vpop.f32.mrb[46].mxu0  ;;  %v3204_v50 = vpop.f32.mrb[46].mxu1 }
 0x143   : > { %2743 = vst [vmem:[%s3539_s5 + $0x358] sm:$0xff] %v2615_v40  ;;  %v2613_v46 = vsel %vm2357_vm8, %v2229_v33, %v2485_v3  ;;  %2677 = vst [vmem:[%s3539_s5 + $0x148] sm:$0xff] %v2549_v45  ;;  %v2426_v51 = vmul.f32 0.01, %v2170_v41  ;;  %vm2362_vm10 = vcmp.ge.f32.partialorder %v2234_v42, 0.0  ;;  %v2171_v57 = vadd.f32 %v3709_v32, %v3140_v49  ;;  %v1398_v59 = vpop.f32.mrb[47].mxu0 }
 0x144   : > { %2741 = vst [vmem:[%s3539_s5 + $0x348] sm:$0xff] %v2613_v46  ;;  %v2490_v52 = vmul.f32 0.01, %v2234_v42  ;;  %vm2296_vm11 = vcmp.ge.f32.partialorder %v2168_v47, 0.0  ;;  %v2424_v53 = vmul.f32 0.01, %v2168_v47  ;;  %v2235_v58 = vadd.f32 %v3709_v32, %v3204_v50 }
 0x145   : > { %vm2360_vm12 = vcmp.ge.f32.partialorder %v2232_v48, 0.0  ;;  %v2488_v54 = vmul.f32 0.01, %v2232_v48  ;;  %v2554_v55 = vsel %vm2298_vm9, %v2170_v41, %v2426_v51  ;;  %v1654_v60 = vpop.f32.mrb[47].mxu1  ;;  %v2169_v63 = vadd.f32 %v3709_v32, %v1398_v59 }
 0x146   : > { %v2618_v56 = vsel %vm2362_vm10, %v2234_v42, %v2490_v52  ;;  %2682 = vst [vmem:[%s3539_s5 + $0x170] sm:$0xff] %v2554_v55  ;;  %v2552_v61 = vsel %vm2296_vm11, %v2168_v47, %v2424_v53  ;;  %v2233_v0 = vadd.f32 %v3709_v32, %v1654_v60  ;;  %v3143_v1 = vpop.f32.mrb[48].mxu0  ;;  %vm2299_vm13 = vcmp.ge.f32.partialorder %v2171_v57, 0.0 }
 0x147   : > { %2746 = vst [vmem:[%s3539_s5 + $0x370] sm:$0xff] %v2618_v56  ;;  %v2616_v62 = vsel %vm2360_vm12, %v2232_v48, %v2488_v54  ;;  %v3207_v2 = vpop.f32.mrb[48].mxu1  ;;  %2680 = vst [vmem:[%s3539_s5 + $0x160] sm:$0xff] %v2552_v61  ;;  %v2427_v4 = vmul.f32 0.01, %v2171_v57  ;;  %vm2363_vm14 = vcmp.ge.f32.partialorder %v2235_v58, 0.0  ;;  %v2174_v10 = vadd.f32 %v3709_v32, %v3143_v1 }
 0x148   : > { %2744 = vst [vmem:[%s3539_s5 + $0x360] sm:$0xff] %v2616_v62  ;;  %v2491_v5 = vmul.f32 0.01, %v2235_v58  ;;  %vm2297_vm15 = vcmp.ge.f32.partialorder %v2169_v63, 0.0  ;;  %v2425_v6 = vmul.f32 0.01, %v2169_v63  ;;  %v2238_v11 = vadd.f32 %v3709_v32, %v3207_v2 }
 0x149   : > { %vm2361_vm0 = vcmp.ge.f32.partialorder %v2233_v0, 0.0  ;;  %v2489_v7 = vmul.f32 0.01, %v2233_v0  ;;  %v2555_v8 = vsel %vm2299_vm13, %v2171_v57, %v2427_v4  ;;  %v1411_v12 = vpop.f32.mrb[49].mxu0  ;;  %v1667_v13 = vpop.f32.mrb[49].mxu1  ;;  %vm2302_vm1 = vcmp.ge.f32.partialorder %v2174_v10, 0.0 }
 0x14a   : > { %v2619_v9 = vsel %vm2363_vm14, %v2235_v58, %v2491_v5  ;;  %2683 = vst [vmem:[%s3539_s5 + $0x178] sm:$0xff] %v2555_v8  ;;  %v2553_v14 = vsel %vm2297_vm15, %v2169_v63, %v2425_v6  ;;  %v2172_v16 = vadd.f32 %v3709_v32, %v1411_v12  ;;  %v2236_v17 = vadd.f32 %v3709_v32, %v1667_v13  ;;  %v3144_v18 = vpop.f32.mrb[50].mxu0  ;;  %v3208_v19 = vpop.f32.mrb[50].mxu1 }
 0x14b   : > { %2747 = vst [vmem:[%s3539_s5 + $0x378] sm:$0xff] %v2619_v9  ;;  %v2617_v15 = vsel %vm2361_vm0, %v2233_v0, %v2489_v7  ;;  %2681 = vst [vmem:[%s3539_s5 + $0x168] sm:$0xff] %v2553_v14  ;;  %v2430_v20 = vmul.f32 0.01, %v2174_v10  ;;  %vm2366_vm2 = vcmp.ge.f32.partialorder %v2238_v11, 0.0  ;;  %v2175_v26 = vadd.f32 %v3709_v32, %v3144_v18  ;;  %v1414_v28 = vpop.f32.mrb[51].mxu0 }
 0x14c   : > { %2745 = vst [vmem:[%s3539_s5 + $0x368] sm:$0xff] %v2617_v15  ;;  %v2494_v21 = vmul.f32 0.01, %v2238_v11  ;;  %vm2300_vm3 = vcmp.ge.f32.partialorder %v2172_v16, 0.0  ;;  %v2428_v22 = vmul.f32 0.01, %v2172_v16  ;;  %v2239_v27 = vadd.f32 %v3709_v32, %v3208_v19 }
 0x14d   : > { %vm2364_vm4 = vcmp.ge.f32.partialorder %v2236_v17, 0.0  ;;  %v2492_v23 = vmul.f32 0.01, %v2236_v17  ;;  %v2558_v24 = vsel %vm2302_vm1, %v2174_v10, %v2430_v20  ;;  %v1670_v29 = vpop.f32.mrb[51].mxu1  ;;  %v2173_v33 = vadd.f32 %v3709_v32, %v1414_v28 }
 0x14e   : > { %v2622_v25 = vsel %vm2366_vm2, %v2238_v11, %v2494_v21  ;;  %2686 = vst [vmem:[%s3539_s5 + $0x190] sm:$0xff] %v2558_v24  ;;  %v2556_v30 = vsel %vm2300_vm3, %v2172_v16, %v2428_v22  ;;  %v2237_v34 = vadd.f32 %v3709_v32, %v1670_v29  ;;  %v3147_v35 = vpop.f32.mrb[52].mxu0  ;;  %vm2303_vm5 = vcmp.ge.f32.partialorder %v2175_v26, 0.0 }
 0x14f   : > { %2750 = vst [vmem:[%s3539_s5 + $0x390] sm:$0xff] %v2622_v25  ;;  %v2620_v31 = vsel %vm2364_vm4, %v2236_v17, %v2492_v23  ;;  %v3211_v36 = vpop.f32.mrb[52].mxu1  ;;  %2684 = vst [vmem:[%s3539_s5 + $0x180] sm:$0xff] %v2556_v30  ;;  %v2431_v37 = vmul.f32 0.01, %v2175_v26  ;;  %vm2367_vm6 = vcmp.ge.f32.partialorder %v2239_v27, 0.0  ;;  %v2178_v42 = vadd.f32 %v3709_v32, %v3147_v35 }
 0x150   : > { %2748 = vst [vmem:[%s3539_s5 + $0x380] sm:$0xff] %v2620_v31  ;;  %v2495_v38 = vmul.f32 0.01, %v2239_v27  ;;  %vm2301_vm7 = vcmp.ge.f32.partialorder %v2173_v33, 0.0  ;;  %v2429_v3 = vmul.f32 0.01, %v2173_v33  ;;  %v2242_v43 = vadd.f32 %v3709_v32, %v3211_v36 }
 0x151   : > { %vm2365_vm8 = vcmp.ge.f32.partialorder %v2237_v34, 0.0  ;;  %v2493_v39 = vmul.f32 0.01, %v2237_v34  ;;  %v2559_v40 = vsel %vm2303_vm5, %v2175_v26, %v2431_v37  ;;  %v1427_v44 = vpop.f32.mrb[53].mxu0  ;;  %v1683_v45 = vpop.f32.mrb[53].mxu1  ;;  %vm2306_vm9 = vcmp.ge.f32.partialorder %v2178_v42, 0.0 }
 0x152   : > { %v2623_v41 = vsel %vm2367_vm6, %v2239_v27, %v2495_v38  ;;  %2687 = vst [vmem:[%s3539_s5 + $0x198] sm:$0xff] %v2559_v40  ;;  %v2557_v46 = vsel %vm2301_vm7, %v2173_v33, %v2429_v3  ;;  %v2176_v48 = vadd.f32 %v3709_v32, %v1427_v44  ;;  %v2240_v49 = vadd.f32 %v3709_v32, %v1683_v45  ;;  %v3148_v50 = vpop.f32.mrb[54].mxu0  ;;  %v3212_v51 = vpop.f32.mrb[54].mxu1 }
 0x153   : > { %2751 = vst [vmem:[%s3539_s5 + $0x398] sm:$0xff] %v2623_v41  ;;  %v2621_v47 = vsel %vm2365_vm8, %v2237_v34, %v2493_v39  ;;  %2685 = vst [vmem:[%s3539_s5 + $0x188] sm:$0xff] %v2557_v46  ;;  %v2434_v52 = vmul.f32 0.01, %v2178_v42  ;;  %vm2370_vm10 = vcmp.ge.f32.partialorder %v2242_v43, 0.0  ;;  %v2179_v58 = vadd.f32 %v3709_v32, %v3148_v50  ;;  %v1430_v60 = vpop.f32.mrb[55].mxu0 }
 0x154   : > { %2749 = vst [vmem:[%s3539_s5 + $0x388] sm:$0xff] %v2621_v47  ;;  %v2498_v53 = vmul.f32 0.01, %v2242_v43  ;;  %vm2304_vm11 = vcmp.ge.f32.partialorder %v2176_v48, 0.0  ;;  %v2432_v54 = vmul.f32 0.01, %v2176_v48  ;;  %v2243_v59 = vadd.f32 %v3709_v32, %v3212_v51 }
 0x155   : > { %vm2368_vm12 = vcmp.ge.f32.partialorder %v2240_v49, 0.0  ;;  %v2496_v55 = vmul.f32 0.01, %v2240_v49  ;;  %v2562_v56 = vsel %vm2306_vm9, %v2178_v42, %v2434_v52  ;;  %v1686_v61 = vpop.f32.mrb[55].mxu1  ;;  %v2177_v0 = vadd.f32 %v3709_v32, %v1430_v60 }
 0x156   : > { %v2626_v57 = vsel %vm2370_vm10, %v2242_v43, %v2498_v53  ;;  %2690 = vst [vmem:[%s3539_s5 + $0x1b0] sm:$0xff] %v2562_v56  ;;  %v2560_v62 = vsel %vm2304_vm11, %v2176_v48, %v2432_v54  ;;  %v2241_v1 = vadd.f32 %v3709_v32, %v1686_v61  ;;  %v3151_v2 = vpop.f32.mrb[56].mxu0  ;;  %vm2307_vm13 = vcmp.ge.f32.partialorder %v2179_v58, 0.0 }
 0x157   : > { %2754 = vst [vmem:[%s3539_s5 + $0x3b0] sm:$0xff] %v2626_v57  ;;  %v2624_v63 = vsel %vm2368_vm12, %v2240_v49, %v2496_v55  ;;  %v3215_v4 = vpop.f32.mrb[56].mxu1  ;;  %2688 = vst [vmem:[%s3539_s5 + $0x1a0] sm:$0xff] %v2560_v62  ;;  %v2435_v5 = vmul.f32 0.01, %v2179_v58  ;;  %vm2371_vm14 = vcmp.ge.f32.partialorder %v2243_v59, 0.0  ;;  %v2182_v11 = vadd.f32 %v3709_v32, %v3151_v2 }
 0x158   : > { %2752 = vst [vmem:[%s3539_s5 + $0x3a0] sm:$0xff] %v2624_v63  ;;  %v2499_v6 = vmul.f32 0.01, %v2243_v59  ;;  %vm2305_vm15 = vcmp.ge.f32.partialorder %v2177_v0, 0.0  ;;  %v2433_v7 = vmul.f32 0.01, %v2177_v0  ;;  %v2246_v12 = vadd.f32 %v3709_v32, %v3215_v4 }
 0x159   : > { %vm2369_vm0 = vcmp.ge.f32.partialorder %v2241_v1, 0.0  ;;  %v2497_v8 = vmul.f32 0.01, %v2241_v1  ;;  %v2563_v9 = vsel %vm2307_vm13, %v2179_v58, %v2435_v5  ;;  %v1443_v13 = vpop.f32.mrb[57].mxu0  ;;  %v1699_v14 = vpop.f32.mrb[57].mxu1  ;;  %vm2310_vm1 = vcmp.ge.f32.partialorder %v2182_v11, 0.0 }
 0x15a   : > { %v2627_v10 = vsel %vm2371_vm14, %v2243_v59, %v2499_v6  ;;  %2691 = vst [vmem:[%s3539_s5 + $0x1b8] sm:$0xff] %v2563_v9  ;;  %v2561_v15 = vsel %vm2305_vm15, %v2177_v0, %v2433_v7  ;;  %v2180_v17 = vadd.f32 %v3709_v32, %v1443_v13  ;;  %v2244_v18 = vadd.f32 %v3709_v32, %v1699_v14  ;;  %v3152_v19 = vpop.f32.mrb[58].mxu0  ;;  %v3216_v20 = vpop.f32.mrb[58].mxu1 }
 0x15b   : > { %2755 = vst [vmem:[%s3539_s5 + $0x3b8] sm:$0xff] %v2627_v10  ;;  %v2625_v16 = vsel %vm2369_vm0, %v2241_v1, %v2497_v8  ;;  %2689 = vst [vmem:[%s3539_s5 + $0x1a8] sm:$0xff] %v2561_v15  ;;  %v2438_v21 = vmul.f32 0.01, %v2182_v11  ;;  %vm2374_vm2 = vcmp.ge.f32.partialorder %v2246_v12, 0.0  ;;  %v2183_v27 = vadd.f32 %v3709_v32, %v3152_v19  ;;  %v1446_v29 = vpop.f32.mrb[59].mxu0 }
 0x15c   : > { %2753 = vst [vmem:[%s3539_s5 + $0x3a8] sm:$0xff] %v2625_v16  ;;  %v2502_v22 = vmul.f32 0.01, %v2246_v12  ;;  %vm2308_vm3 = vcmp.ge.f32.partialorder %v2180_v17, 0.0  ;;  %v2436_v23 = vmul.f32 0.01, %v2180_v17  ;;  %v2247_v28 = vadd.f32 %v3709_v32, %v3216_v20 }
 0x15d   : > { %vm2372_vm4 = vcmp.ge.f32.partialorder %v2244_v18, 0.0  ;;  %v2500_v24 = vmul.f32 0.01, %v2244_v18  ;;  %v2566_v25 = vsel %vm2310_vm1, %v2182_v11, %v2438_v21  ;;  %v1702_v30 = vpop.f32.mrb[59].mxu1  ;;  %v2181_v34 = vadd.f32 %v3709_v32, %v1446_v29 }
 0x15e   : > { %v2630_v26 = vsel %vm2374_vm2, %v2246_v12, %v2502_v22  ;;  %2694 = vst [vmem:[%s3539_s5 + $0x1d0] sm:$0xff] %v2566_v25  ;;  %v2564_v31 = vsel %vm2308_vm3, %v2180_v17, %v2436_v23  ;;  %v2245_v35 = vadd.f32 %v3709_v32, %v1702_v30  ;;  %v3155_v36 = vpop.f32.mrb[60].mxu0  ;;  %vm2311_vm5 = vcmp.ge.f32.partialorder %v2183_v27, 0.0 }
 0x15f   : > { %2758 = vst [vmem:[%s3539_s5 + $0x3d0] sm:$0xff] %v2630_v26  ;;  %v2628_v33 = vsel %vm2372_vm4, %v2244_v18, %v2500_v24  ;;  %v3219_v37 = vpop.f32.mrb[60].mxu1  ;;  %2692 = vst [vmem:[%s3539_s5 + $0x1c0] sm:$0xff] %v2564_v31  ;;  %v2439_v38 = vmul.f32 0.01, %v2183_v27  ;;  %vm2375_vm6 = vcmp.ge.f32.partialorder %v2247_v28, 0.0  ;;  %v2186_v43 = vadd.f32 %v3709_v32, %v3155_v36 }
 0x160   : > { %2756 = vst [vmem:[%s3539_s5 + $0x3c0] sm:$0xff] %v2628_v33  ;;  %v2503_v3 = vmul.f32 0.01, %v2247_v28  ;;  %vm2309_vm7 = vcmp.ge.f32.partialorder %v2181_v34, 0.0  ;;  %v2437_v39 = vmul.f32 0.01, %v2181_v34  ;;  %v2250_v44 = vadd.f32 %v3709_v32, %v3219_v37 }
 0x161   : > { %vm2373_vm8 = vcmp.ge.f32.partialorder %v2245_v35, 0.0  ;;  %v2501_v40 = vmul.f32 0.01, %v2245_v35  ;;  %v2567_v41 = vsel %vm2311_vm5, %v2183_v27, %v2439_v38  ;;  %v1459_v45 = vpop.f32.mrb[61].mxu0  ;;  %v1715_v46 = vpop.f32.mrb[61].mxu1  ;;  %vm2314_vm9 = vcmp.ge.f32.partialorder %v2186_v43, 0.0 }
 0x162   : > { %v2631_v42 = vsel %vm2375_vm6, %v2247_v28, %v2503_v3  ;;  %2695 = vst [vmem:[%s3539_s5 + $0x1d8] sm:$0xff] %v2567_v41  ;;  %v2565_v47 = vsel %vm2309_vm7, %v2181_v34, %v2437_v39  ;;  %v2184_v49 = vadd.f32 %v3709_v32, %v1459_v45  ;;  %v2248_v50 = vadd.f32 %v3709_v32, %v1715_v46  ;;  %v3156_v51 = vpop.f32.mrb[62].mxu0  ;;  %v3220_v52 = vpop.f32.mrb[62].mxu1 }
 0x163   : > { %2759 = vst [vmem:[%s3539_s5 + $0x3d8] sm:$0xff] %v2631_v42  ;;  %v2629_v48 = vsel %vm2373_vm8, %v2245_v35, %v2501_v40  ;;  %2693 = vst [vmem:[%s3539_s5 + $0x1c8] sm:$0xff] %v2565_v47  ;;  %v2442_v53 = vmul.f32 0.01, %v2186_v43  ;;  %vm2378_vm10 = vcmp.ge.f32.partialorder %v2250_v44, 0.0  ;;  %v2187_v59 = vadd.f32 %v3709_v32, %v3156_v51  ;;  %v1462_v61 = vpop.f32.mrb[63].mxu0 }
 0x164   : > { %2757 = vst [vmem:[%s3539_s5 + $0x3c8] sm:$0xff] %v2629_v48  ;;  %v2506_v54 = vmul.f32 0.01, %v2250_v44  ;;  %vm2312_vm11 = vcmp.ge.f32.partialorder %v2184_v49, 0.0  ;;  %v2440_v55 = vmul.f32 0.01, %v2184_v49  ;;  %v2251_v60 = vadd.f32 %v3709_v32, %v3220_v52 }
 0x165   : > { %vm2376_vm12 = vcmp.ge.f32.partialorder %v2248_v50, 0.0  ;;  %v2504_v56 = vmul.f32 0.01, %v2248_v50  ;;  %v2570_v57 = vsel %vm2314_vm9, %v2186_v43, %v2442_v53  ;;  %v1718_v62 = vpop.f32.mrb[63].mxu1  ;;  %v2185_v1 = vadd.f32 %v3709_v32, %v1462_v61 }
 0x166   : > { %v2634_v58 = vsel %vm2378_vm10, %v2250_v44, %v2506_v54  ;;  %2698 = vst [vmem:[%s3539_s5 + $0x1f0] sm:$0xff] %v2570_v57  ;;  %v2568_v63 = vsel %vm2312_vm11, %v2184_v49, %v2440_v55  ;;  %v2249_v2 = vadd.f32 %v3709_v32, %v1718_v62  ;;  %vm2315_vm13 = vcmp.ge.f32.partialorder %v2187_v59, 0.0 }
 0x167   : > { %2762 = vst [vmem:[%s3539_s5 + $0x3f0] sm:$0xff] %v2634_v58  ;;  %v2632_v0 = vsel %vm2376_vm12, %v2248_v50, %v2504_v56  ;;  %2696 = vst [vmem:[%s3539_s5 + $0x1e0] sm:$0xff] %v2568_v63  ;;  %v2443_v4 = vmul.f32 0.01, %v2187_v59  ;;  %vm2379_vm14 = vcmp.ge.f32.partialorder %v2251_v60, 0.0  ;;  %vm2313_vm15 = vcmp.ge.f32.partialorder %v2185_v1, 0.0 }
 0x168   : > { %2760 = vst [vmem:[%s3539_s5 + $0x3e0] sm:$0xff] %v2632_v0  ;;  %v2507_v5 = vmul.f32 0.01, %v2251_v60  ;;  %v2441_v6 = vmul.f32 0.01, %v2185_v1  ;;  %vm2377_vm0 = vcmp.ge.f32.partialorder %v2249_v2, 0.0 }
 0x169   : > { %v2505_v7 = vmul.f32 0.01, %v2249_v2  ;;  %v2571_v8 = vsel %vm2315_vm13, %v2187_v59, %v2443_v4 }
 0x16a   : > { %v2635_v9 = vsel %vm2379_vm14, %v2251_v60, %v2507_v5  ;;  %2699 = vst [vmem:[%s3539_s5 + $0x1f8] sm:$0xff] %v2571_v8  ;;  %v2569_v10 = vsel %vm2313_vm15, %v2185_v1, %v2441_v6 }
 0x16b   : > { %2763 = vst [vmem:[%s3539_s5 + $0x3f8] sm:$0xff] %v2635_v9  ;;  %v2633_v11 = vsel %vm2377_vm0, %v2249_v2, %v2505_v7  ;;  %2697 = vst [vmem:[%s3539_s5 + $0x1e8] sm:$0xff] %v2569_v10 }
 0x16c   : > { %2761 = vst [vmem:[%s3539_s5 + $0x3e8] sm:$0xff] %v2633_v11 }
 0x16d PF: > { %s13_s14 = sadd.s32 1, %s3341_s14   ;;  %s3811_s12 = smov %s3337_s13 }
 0x16e   : > { %p10_p5 = scmp.ge.s32.totalorder %s13_s14, 4   ;;  %s3812_s13 = smov %s3814_s15 }
 0x170   :  { %12 = sbr.rel (!%p10_p5) target bundleno = 2 (0x2), region = 76 }

// kernel: discriminator_forward.10
= control target key start
LH: loop header
LB: loop body
LE: loop exit
PB: predicated region body
PF: predicated region fallthrough
CT: control target
= control target key end

     0   :  { %s852_s1 = inlined_call_operand.vmem [shape: bf16[256,128], index: 1, kind: input, shape index: {}]   ;;  %s853_s0 = inlined_call_operand.vmem [shape: bf16[128,256], index: 0, kind: input, shape index: {}]   ;;  %s854_s2 = inlined_call_operand.vmem [shape: f32[1,128], index: 2, kind: input, shape index: {}]   ;;  %s855_s3 = inlined_call_operand.vmem [shape: f32[128,128], index: 3, kind: output, shape index: {}]  }
   0x1   :  { %v627_v0 = vld [vmem:[%s852_s1 + $0x40] sm:$0xff]   ;;  %v629_v2 = vld [vmem:[%s852_s1 + $0x48] sm:$0xff]   ;;  %v631_v4 = vld [vmem:[%s852_s1 + $0x50] sm:$0xff]  }
   0x2   :  { %v628_v1 = vld [vmem:[%s852_s1] sm:$0xff]   ;;  %547 = vmatprep.subr.bf16.mxu0 %v627_v0  ;;  %611 = vmatprep.subr.bf16.mxu1 %v627_v0  ;;  %v630_v3 = vld [vmem:[%s852_s1 + $0x8] sm:$0xff]   ;;  %v632_v5 = vld [vmem:[%s852_s1 + $0x10] sm:$0xff]  }
   0x3   :  { %548 = vmatpush3.bf16.msra.mxu0 %v628_v1  ;;  %619 = vmatpush3.bf16.msra.mxu1 %v628_v1  ;;  %v633_v6 = vld [vmem:[%s852_s1 + $0x58] sm:$0xff]   ;;  %v635_v8 = vld [vmem:[%s852_s1 + $0x60] sm:$0xff]   ;;  %v637_v10 = vld [vmem:[%s852_s1 + $0x68] sm:$0xff]  }
   0x4   :  { %549 = vmatprep.subr.bf16.mxu0 %v629_v2  ;;  %612 = vmatprep.subr.bf16.mxu1 %v629_v2  ;;  %v634_v7 = vld [vmem:[%s852_s1 + $0x18] sm:$0xff]   ;;  %v636_v9 = vld [vmem:[%s852_s1 + $0x20] sm:$0xff]   ;;  %v638_v13 = vld [vmem:[%s852_s1 + $0x28] sm:$0xff]  }
   0x5   :  { %v645_v11 = vld [vmem:[%s853_s0 + $0x4] ss:$8 sps:$4 sm:$0xff]   ;;  %v639_v14 = vld [vmem:[%s852_s1 + $0x70] sm:$0xff]   ;;  %v641_v16 = vld [vmem:[%s852_s1 + $0x78] sm:$0xff]  }
   0x6   :  { %v648_v12 = vld [vmem:[%s853_s0 + $0x44] ss:$8 sps:$4 sm:$0xff]   ;;  %307 = vmatprep.mubr.bf16.mxu0 %v645_v11  ;;  %v640_v15 = vld [vmem:[%s852_s1 + $0x30] sm:$0xff]   ;;  %v642_v17 = vld [vmem:[%s852_s1 + $0x38] sm:$0xff]  }
   0x7   :  { %550 = vmatpush3.bf16.msra.mxu0 %v630_v3  ;;  %620 = vmatpush3.bf16.msra.mxu1 %v630_v3  ;;  %v643_v18 = vld [vmem:[%s853_s0] ss:$8 sps:$4 sm:$0xff]   ;;  %v649_v20 = vld [vmem:[%s853_s0 + $0x14] ss:$8 sps:$4 sm:$0xff]   ;;  %v653_v22 = vld [vmem:[%s853_s0 + $0x10] ss:$8 sps:$4 sm:$0xff]  }
   0x8   :  { %551 = vmatprep.subr.bf16.mxu0 %v631_v4  ;;  %613 = vmatprep.subr.bf16.mxu1 %v631_v4  ;;  %v646_v19 = vld [vmem:[%s853_s0 + $0x40] ss:$8 sps:$4 sm:$0xff]   ;;  %v651_v21 = vld [vmem:[%s853_s0 + $0x54] ss:$8 sps:$4 sm:$0xff]   ;;  %v654_v23 = vld [vmem:[%s853_s0 + $0x50] ss:$8 sps:$4 sm:$0xff]  }
   0x9   :  { %339 = vmatprep.mubr.bf16.mxu1 %v648_v12  ;;  %v655_v24 = vld [vmem:[%s853_s0 + $0x24] ss:$8 sps:$4 sm:$0xff]   ;;  %v659_v26 = vld [vmem:[%s853_s0 + $0x20] ss:$8 sps:$4 sm:$0xff]   ;;  %v661_v28 = vld [vmem:[%s853_s0 + $0x34] ss:$8 sps:$4 sm:$0xff]  }
   0xa   :  { %v657_v25 = vld [vmem:[%s853_s0 + $0x64] ss:$8 sps:$4 sm:$0xff]   ;;  %v660_v27 = vld [vmem:[%s853_s0 + $0x60] ss:$8 sps:$4 sm:$0xff]   ;;  %v663_v29 = vld [vmem:[%s853_s0 + $0x74] ss:$8 sps:$4 sm:$0xff]  }
   0xb   :  { %552 = vmatpush3.bf16.msra.mxu0 %v632_v5  ;;  %621 = vmatpush3.bf16.msra.mxu1 %v632_v5  ;;  %v665_v30 = vld [vmem:[%s853_s0 + $0x30] ss:$8 sps:$4 sm:$0xff]   ;;  %v786_v35 = vld [vmem:[%s854_s2] ss:$0 sm:$0xff] }
   0xc   :  { %553 = vmatprep.subr.bf16.mxu0 %v633_v6  ;;  %614 = vmatprep.subr.bf16.mxu1 %v633_v6  ;;  %v666_v31 = vld [vmem:[%s853_s0 + $0x70] ss:$8 sps:$4 sm:$0xff]  }
   0xf   :  { %554 = vmatpush3.bf16.msra.mxu0 %v634_v7  ;;  %622 = vmatpush3.bf16.msra.mxu1 %v634_v7 }
  0x10   :  { %555 = vmatprep.subr.bf16.mxu0 %v635_v8  ;;  %615 = vmatprep.subr.bf16.mxu1 %v635_v8 }
  0x13   :  { %556 = vmatpush3.bf16.msra.mxu0 %v636_v9  ;;  %623 = vmatpush3.bf16.msra.mxu1 %v636_v9 }
  0x14   :  { %557 = vmatprep.subr.bf16.mxu0 %v637_v10  ;;  %616 = vmatprep.subr.bf16.mxu1 %v637_v10 }
  0x17   :  { %558 = vmatpush3.bf16.msra.mxu0 %v638_v13  ;;  %624 = vmatpush3.bf16.msra.mxu1 %v638_v13 }
  0x18   :  { %559 = vmatprep.subr.bf16.mxu0 %v639_v14  ;;  %617 = vmatprep.subr.bf16.mxu1 %v639_v14 }
  0x1b   :  { %560 = vmatpush3.bf16.msra.mxu0 %v640_v15  ;;  %625 = vmatpush3.bf16.msra.mxu1 %v640_v15 }
  0x1c   :  { %561 = vmatprep.subr.bf16.mxu0 %v641_v16  ;;  %618 = vmatprep.subr.bf16.mxu1 %v641_v16 }
  0x1f   :  { %562 = vmatpush3.bf16.msra.mxu0 %v642_v17  ;;  %626 = vmatpush3.bf16.msra.mxu1 %v642_v17 }
  0x22   :  { %308 = vmatmul.mubr.bf16.vlgmr.msra.gmra.mrb[0].mxu0 %v643_v18  ;;  %340 = vmatmul.mubr.bf16.vlgmr.msra.gmra.mrb[0].mxu1 %v646_v19 }
  0x23   :  { %315 = vmatprep.mubr.bf16.mxu0 %v649_v20  ;;  %347 = vmatprep.mubr.bf16.mxu1 %v651_v21 }
  0x2a   :  { %316 = vmatmul.mubr.bf16.gmra.mrb[4].mxu0 %v653_v22  ;;  %348 = vmatmul.mubr.bf16.gmra.mrb[4].mxu1 %v654_v23 }
  0x2b   :  { %323 = vmatprep.mubr.bf16.mxu0 %v655_v24  ;;  %355 = vmatprep.mubr.bf16.mxu1 %v657_v25 }
  0x32   :  { %324 = vmatmul.mubr.bf16.gmra.mrb[8].mxu0 %v659_v26  ;;  %356 = vmatmul.mubr.bf16.gmra.mrb[8].mxu1 %v660_v27 }
  0x33   :  { %331 = vmatprep.mubr.bf16.mxu0 %v661_v28  ;;  %363 = vmatprep.mubr.bf16.mxu1 %v663_v29 }
  0x3a   :  { %332 = vmatmul.mubr.bf16.gmra.mrb[12].mxu0 %v665_v30  ;;  %364 = vmatmul.mubr.bf16.gmra.mrb[12].mxu1 %v666_v31 }
  0xf5   :  { %v563_v32 = vpop.f32.mrb[0].mxu0  ;;  %v587_v33 = vpop.f32.mrb[0].mxu1 }
  0xf6   :  { %v564_v34 = vpop.f32.mrb[1].mxu0  ;;  %v588_v36 = vpop.f32.mrb[1].mxu1 }
  0xf7   :  { %v565_v37 = vadd.f32 %v564_v34, %v563_v32  ;;  %v589_v38 = vadd.f32 %v588_v36, %v587_v33  ;;  %v566_v39 = vpop.f32.mrb[2].mxu0  ;;  %v590_v40 = vpop.f32.mrb[2].mxu1 }
  0xf8   :  { %v567_v41 = vpop.f32.mrb[3].mxu0  ;;  %v591_v42 = vpop.f32.mrb[3].mxu1 }
  0xf9   :  { %v430_v43 = vadd.f32 %v565_v37, %v786_v35  ;;  %v438_v44 = vadd.f32 %v589_v38, %v786_v35  ;;  %v568_v45 = vadd.f32 %v567_v41, %v566_v39  ;;  %v592_v46 = vadd.f32 %v591_v42, %v590_v40 }
  0xfb   :  { %vm446_vm0 = vcmp.ge.f32.partialorder %v430_v43, 0.0  ;;  %v462_v47 = vmul.f32 0.01, %v430_v43  ;;  %vm454_vm1 = vcmp.ge.f32.partialorder %v438_v44, 0.0  ;;  %v470_v48 = vmul.f32 0.01, %v438_v44 }
  0xfc   :  { %v431_v49 = vadd.f32 %v568_v45, %v786_v35  ;;  %v439_v50 = vadd.f32 %v592_v46, %v786_v35 }
  0xfd   :  { %v478_v51 = vsel %vm446_vm0, %v430_v43, %v462_v47  ;;  %v486_v52 = vsel %vm454_vm1, %v438_v44, %v470_v48  ;;  %v569_v53 = vpop.f32.mrb[4].mxu0  ;;  %v593_v54 = vpop.f32.mrb[4].mxu1 }
  0xfe   :  { %494 = vst [vmem:[%s855_s3] sm:$0xff] %v478_v51  ;;  %502 = vst [vmem:[%s855_s3 + $0x40] sm:$0xff] %v486_v52  ;;  %vm447_vm2 = vcmp.ge.f32.partialorder %v431_v49, 0.0  ;;  %v463_v55 = vmul.f32 0.01, %v431_v49  ;;  %vm455_vm3 = vcmp.ge.f32.partialorder %v439_v50, 0.0  ;;  %v570_v57 = vpop.f32.mrb[5].mxu0 }
  0xff   :  { %v471_v56 = vmul.f32 0.01, %v439_v50  ;;  %v594_v58 = vpop.f32.mrb[5].mxu1  ;;  %v571_v61 = vadd.f32 %v570_v57, %v569_v53  ;;  %v572_v63 = vpop.f32.mrb[6].mxu0 }
 0x100   :  { %v479_v59 = vsel %vm447_vm2, %v431_v49, %v463_v55  ;;  %v595_v62 = vadd.f32 %v594_v58, %v593_v54  ;;  %v596_v0 = vpop.f32.mrb[6].mxu1  ;;  %v573_v1 = vpop.f32.mrb[7].mxu0 }
 0x101   :  { %v487_v60 = vsel %vm455_vm3, %v439_v50, %v471_v56  ;;  %495 = vst [vmem:[%s855_s3 + $0x8] sm:$0xff] %v479_v59  ;;  %v597_v2 = vpop.f32.mrb[7].mxu1  ;;  %v432_v3 = vadd.f32 %v571_v61, %v786_v35  ;;  %v574_v5 = vadd.f32 %v573_v1, %v572_v63 }
 0x102   :  { %503 = vst [vmem:[%s855_s3 + $0x48] sm:$0xff] %v487_v60  ;;  %v440_v4 = vadd.f32 %v595_v62, %v786_v35  ;;  %v598_v6 = vadd.f32 %v597_v2, %v596_v0 }
 0x103   :  { %vm448_vm4 = vcmp.ge.f32.partialorder %v432_v3, 0.0  ;;  %v464_v7 = vmul.f32 0.01, %v432_v3  ;;  %v433_v9 = vadd.f32 %v574_v5, %v786_v35 }
 0x104   :  { %vm456_vm5 = vcmp.ge.f32.partialorder %v440_v4, 0.0  ;;  %v472_v8 = vmul.f32 0.01, %v440_v4  ;;  %v441_v10 = vadd.f32 %v598_v6, %v786_v35 }
 0x105   :  { %v575_v11 = vpop.f32.mrb[8].mxu0  ;;  %v599_v12 = vpop.f32.mrb[8].mxu1  ;;  %v480_v13 = vsel %vm448_vm4, %v432_v3, %v464_v7  ;;  %vm449_vm6 = vcmp.ge.f32.partialorder %v433_v9, 0.0  ;;  %v465_v17 = vmul.f32 0.01, %v433_v9 }
 0x106   :  { %v488_v14 = vsel %vm456_vm5, %v440_v4, %v472_v8  ;;  %v576_v15 = vpop.f32.mrb[9].mxu0  ;;  %v600_v16 = vpop.f32.mrb[9].mxu1  ;;  %496 = vst [vmem:[%s855_s3 + $0x10] sm:$0xff] %v480_v13  ;;  %vm457_vm7 = vcmp.ge.f32.partialorder %v441_v10, 0.0  ;;  %v473_v18 = vmul.f32 0.01, %v441_v10 }
 0x107   :  { %504 = vst [vmem:[%s855_s3 + $0x50] sm:$0xff] %v488_v14  ;;  %v577_v19 = vadd.f32 %v576_v15, %v575_v11  ;;  %v601_v20 = vadd.f32 %v600_v16, %v599_v12  ;;  %v578_v21 = vpop.f32.mrb[10].mxu0  ;;  %v602_v22 = vpop.f32.mrb[10].mxu1  ;;  %v481_v23 = vsel %vm449_vm6, %v433_v9, %v465_v17 }
 0x108   :  { %v489_v24 = vsel %vm457_vm7, %v441_v10, %v473_v18  ;;  %v579_v25 = vpop.f32.mrb[11].mxu0  ;;  %v603_v26 = vpop.f32.mrb[11].mxu1  ;;  %497 = vst [vmem:[%s855_s3 + $0x18] sm:$0xff] %v481_v23 }
 0x109   :  { %505 = vst [vmem:[%s855_s3 + $0x58] sm:$0xff] %v489_v24  ;;  %v434_v27 = vadd.f32 %v577_v19, %v786_v35  ;;  %v442_v28 = vadd.f32 %v601_v20, %v786_v35  ;;  %v580_v29 = vadd.f32 %v579_v25, %v578_v21  ;;  %v604_v30 = vadd.f32 %v603_v26, %v602_v22 }
 0x10b   :  { %vm450_vm8 = vcmp.ge.f32.partialorder %v434_v27, 0.0  ;;  %v466_v31 = vmul.f32 0.01, %v434_v27  ;;  %vm458_vm9 = vcmp.ge.f32.partialorder %v442_v28, 0.0  ;;  %v474_v32 = vmul.f32 0.01, %v442_v28 }
 0x10c   :  { %v435_v33 = vadd.f32 %v580_v29, %v786_v35  ;;  %v443_v34 = vadd.f32 %v604_v30, %v786_v35 }
 0x10d   :  { %v581_v36 = vpop.f32.mrb[12].mxu0  ;;  %v605_v37 = vpop.f32.mrb[12].mxu1  ;;  %v482_v38 = vsel %vm450_vm8, %v434_v27, %v466_v31  ;;  %v490_v39 = vsel %vm458_vm9, %v442_v28, %v474_v32 }
 0x10e   :  { %v582_v40 = vpop.f32.mrb[13].mxu0  ;;  %v606_v41 = vpop.f32.mrb[13].mxu1  ;;  %498 = vst [vmem:[%s855_s3 + $0x20] sm:$0xff] %v482_v38  ;;  %506 = vst [vmem:[%s855_s3 + $0x60] sm:$0xff] %v490_v39  ;;  %vm451_vm10 = vcmp.ge.f32.partialorder %v435_v33, 0.0  ;;  %vm459_vm11 = vcmp.ge.f32.partialorder %v443_v34, 0.0 }
 0x10f   :  { %v467_v42 = vmul.f32 0.01, %v435_v33  ;;  %v475_v43 = vmul.f32 0.01, %v443_v34  ;;  %v583_v44 = vadd.f32 %v582_v40, %v581_v36  ;;  %v607_v45 = vadd.f32 %v606_v41, %v605_v37  ;;  %v584_v46 = vpop.f32.mrb[14].mxu0  ;;  %v608_v47 = vpop.f32.mrb[14].mxu1 }
 0x110   :  { %v585_v50 = vpop.f32.mrb[15].mxu0  ;;  %v609_v51 = vpop.f32.mrb[15].mxu1 }
 0x111   :  { %v483_v48 = vsel %vm451_vm10, %v435_v33, %v467_v42  ;;  %v491_v49 = vsel %vm459_vm11, %v443_v34, %v475_v43  ;;  %v436_v52 = vadd.f32 %v583_v44, %v786_v35  ;;  %v444_v53 = vadd.f32 %v607_v45, %v786_v35 }
 0x112   :  { %499 = vst [vmem:[%s855_s3 + $0x28] sm:$0xff] %v483_v48  ;;  %507 = vst [vmem:[%s855_s3 + $0x68] sm:$0xff] %v491_v49  ;;  %v586_v54 = vadd.f32 %v585_v50, %v584_v46  ;;  %v610_v55 = vadd.f32 %v609_v51, %v608_v47 }
 0x113   :  { %vm452_vm12 = vcmp.ge.f32.partialorder %v436_v52, 0.0  ;;  %v468_v56 = vmul.f32 0.01, %v436_v52  ;;  %vm460_vm13 = vcmp.ge.f32.partialorder %v444_v53, 0.0  ;;  %v476_v57 = vmul.f32 0.01, %v444_v53 }
 0x114   :  { %v437_v58 = vadd.f32 %v586_v54, %v786_v35  ;;  %v445_v59 = vadd.f32 %v610_v55, %v786_v35 }
 0x115   :  { %v484_v60 = vsel %vm452_vm12, %v436_v52, %v468_v56  ;;  %v492_v61 = vsel %vm460_vm13, %v444_v53, %v476_v57 }
 0x116   :  { %500 = vst [vmem:[%s855_s3 + $0x30] sm:$0xff] %v484_v60  ;;  %508 = vst [vmem:[%s855_s3 + $0x70] sm:$0xff] %v492_v61  ;;  %vm453_vm14 = vcmp.ge.f32.partialorder %v437_v58, 0.0  ;;  %v469_v62 = vmul.f32 0.01, %v437_v58  ;;  %vm461_vm15 = vcmp.ge.f32.partialorder %v445_v59, 0.0 }
 0x117   :  { %v477_v63 = vmul.f32 0.01, %v445_v59 }
 0x118   :  { %v485_v0 = vsel %vm453_vm14, %v437_v58, %v469_v62 }
 0x119   :  { %v493_v1 = vsel %vm461_vm15, %v445_v59, %v477_v63  ;;  %501 = vst [vmem:[%s855_s3 + $0x38] sm:$0xff] %v485_v0 }
 0x11a   :  { %509 = vst [vmem:[%s855_s3 + $0x78] sm:$0xff] %v493_v1 }

// kernel: discriminator_forward.11
= control target key start
LH: loop header
LB: loop body
LE: loop exit
PB: predicated region body
PF: predicated region fallthrough
CT: control target
= control target key end

     0   :  { %s771_s1 = inlined_call_operand.vmem [shape: bf16[512,128], index: 1, kind: input, shape index: {}]   ;;  %s772_s0 = inlined_call_operand.vmem [shape: bf16[32,512], index: 0, kind: input, shape index: {}]   ;;  %s773_s2 = inlined_call_operand.vmem [shape: f32[1,128], index: 2, kind: input, shape index: {}]   ;;  %s774_s3 = inlined_call_operand.vmem [shape: f32[32,128], index: 3, kind: output, shape index: {}]  }
   0x1   :  { %v572_v0 = vld [vmem:[%s771_s1 + $0x40] sm:$0xff]   ;;  %v576_v4 = vld [vmem:[%s771_s1 + $0x48] sm:$0xff]   ;;  %v580_v8 = vld [vmem:[%s771_s1 + $0x50] sm:$0xff]  }
   0x2   :  { %v573_v1 = vld [vmem:[%s771_s1 + $0xc0] sm:$0xff]   ;;  %516 = vmatprep.subr.bf16.mxu0 %v572_v0  ;;  %v577_v5 = vld [vmem:[%s771_s1 + $0xc8] sm:$0xff]   ;;  %v581_v9 = vld [vmem:[%s771_s1 + $0xd0] sm:$0xff]  }
   0x3   :  { %v574_v2 = vld [vmem:[%s771_s1] sm:$0xff]   ;;  %544 = vmatprep.subr.bf16.mxu1 %v573_v1  ;;  %v578_v6 = vld [vmem:[%s771_s1 + $0x8] sm:$0xff]   ;;  %v582_v10 = vld [vmem:[%s771_s1 + $0x10] sm:$0xff]  }
   0x4   :  { %v575_v3 = vld [vmem:[%s771_s1 + $0x80] sm:$0xff]   ;;  %517 = vmatpush3.bf16.msra.mxu0 %v574_v2  ;;  %v579_v7 = vld [vmem:[%s771_s1 + $0x88] sm:$0xff]   ;;  %v583_v11 = vld [vmem:[%s771_s1 + $0x90] sm:$0xff]  }
   0x5   :  { %545 = vmatpush3.bf16.msra.mxu1 %v575_v3  ;;  %518 = vmatprep.subr.bf16.mxu0 %v576_v4  ;;  %v584_v12 = vld [vmem:[%s771_s1 + $0x58] sm:$0xff]   ;;  %v588_v16 = vld [vmem:[%s771_s1 + $0x60] sm:$0xff]   ;;  %v592_v20 = vld [vmem:[%s771_s1 + $0x68] sm:$0xff]  }
   0x6   :  { %546 = vmatprep.subr.bf16.mxu1 %v577_v5  ;;  %v585_v13 = vld [vmem:[%s771_s1 + $0xd8] sm:$0xff]   ;;  %v589_v17 = vld [vmem:[%s771_s1 + $0xe0] sm:$0xff]   ;;  %v593_v21 = vld [vmem:[%s771_s1 + $0xe8] sm:$0xff]  }
   0x7   :  { %v586_v14 = vld [vmem:[%s771_s1 + $0x18] sm:$0xff]   ;;  %v590_v18 = vld [vmem:[%s771_s1 + $0x20] sm:$0xff]   ;;  %v594_v22 = vld [vmem:[%s771_s1 + $0x28] sm:$0xff]  }
   0x8   :  { %519 = vmatpush3.bf16.msra.mxu0 %v578_v6  ;;  %v587_v15 = vld [vmem:[%s771_s1 + $0x98] sm:$0xff]   ;;  %v591_v19 = vld [vmem:[%s771_s1 + $0xa0] sm:$0xff]   ;;  %v595_v23 = vld [vmem:[%s771_s1 + $0xa8] sm:$0xff]  }
   0x9   :  { %547 = vmatpush3.bf16.msra.mxu1 %v579_v7  ;;  %520 = vmatprep.subr.bf16.mxu0 %v580_v8  ;;  %v596_v24 = vld [vmem:[%s771_s1 + $0x70] sm:$0xff]   ;;  %v600_v28 = vld [vmem:[%s771_s1 + $0x78] sm:$0xff]   ;;  %v515_v49 = vld [vmem:[%s773_s2] ss:$0 sm:$0xff] }
   0xa   :  { %548 = vmatprep.subr.bf16.mxu1 %v581_v9  ;;  %v597_v25 = vld [vmem:[%s771_s1 + $0xf0] sm:$0xff]   ;;  %v601_v29 = vld [vmem:[%s771_s1 + $0xf8] sm:$0xff]  }
   0xb   :  { %v598_v26 = vld [vmem:[%s771_s1 + $0x30] sm:$0xff]   ;;  %v602_v30 = vld [vmem:[%s771_s1 + $0x38] sm:$0xff]  }
   0xc   :  { %521 = vmatpush3.bf16.msra.mxu0 %v582_v10  ;;  %v599_v27 = vld [vmem:[%s771_s1 + $0xb0] sm:$0xff]   ;;  %v603_v31 = vld [vmem:[%s771_s1 + $0xb8] sm:$0xff]  }
   0xd   :  { %549 = vmatpush3.bf16.msra.mxu1 %v583_v11  ;;  %522 = vmatprep.subr.bf16.mxu0 %v584_v12  ;;  %v604_v32 = vld [vmem:[%s772_s0] ss:$16 sps:$4 sm:$0xff]   ;;  %v606_v33 = vld [vmem:[%s772_s0 + $0x4] ss:$16 sps:$4 sm:$0xff]   ;;  %v607_v34 = vld [vmem:[%s772_s0 + $0x8] ss:$16 sps:$4 sm:$0xff]  }
   0xe   :  { %550 = vmatprep.subr.bf16.mxu1 %v585_v13  ;;  %v609_v35 = vld [vmem:[%s772_s0 + $0xc] ss:$16 sps:$4 sm:$0xff]   ;;  %363 = vmatprep.mubr.bf16.mxu0 %v606_v33  ;;  %v610_v36 = vld [vmem:[%s772_s0 + $0x24] ss:$16 sps:$4 sm:$0xff]   ;;  %v614_v38 = vld [vmem:[%s772_s0 + $0x20] ss:$16 sps:$4 sm:$0xff]  }
   0xf   :  { %412 = vmatprep.mubr.bf16.mxu1 %v609_v35  ;;  %v612_v37 = vld [vmem:[%s772_s0 + $0x2c] ss:$16 sps:$4 sm:$0xff]   ;;  %v615_v39 = vld [vmem:[%s772_s0 + $0x28] ss:$16 sps:$4 sm:$0xff]  }
  0x10   :  { %523 = vmatpush3.bf16.msra.mxu0 %v586_v14 }
  0x11   :  { %551 = vmatpush3.bf16.msra.mxu1 %v587_v15  ;;  %524 = vmatprep.subr.bf16.mxu0 %v588_v16 }
  0x12   :  { %552 = vmatprep.subr.bf16.mxu1 %v589_v17 }
  0x14   :  { %525 = vmatpush3.bf16.msra.mxu0 %v590_v18 }
  0x15   :  { %553 = vmatpush3.bf16.msra.mxu1 %v591_v19  ;;  %526 = vmatprep.subr.bf16.mxu0 %v592_v20 }
  0x16   :  { %554 = vmatprep.subr.bf16.mxu1 %v593_v21 }
  0x18   :  { %527 = vmatpush3.bf16.msra.mxu0 %v594_v22 }
  0x19   :  { %555 = vmatpush3.bf16.msra.mxu1 %v595_v23  ;;  %528 = vmatprep.subr.bf16.mxu0 %v596_v24 }
  0x1a   :  { %556 = vmatprep.subr.bf16.mxu1 %v597_v25 }
  0x1c   :  { %529 = vmatpush3.bf16.msra.mxu0 %v598_v26 }
  0x1d   :  { %557 = vmatpush3.bf16.msra.mxu1 %v599_v27  ;;  %530 = vmatprep.subr.bf16.mxu0 %v600_v28 }
  0x1e   :  { %558 = vmatprep.subr.bf16.mxu1 %v601_v29 }
  0x20   :  { %531 = vmatpush3.bf16.msra.mxu0 %v602_v30 }
  0x21   :  { %559 = vmatpush3.bf16.msra.mxu1 %v603_v31 }
  0x23   :  { %364 = vmatmul.mubr.bf16.vlgmr.msra.gmra.mrb[0].mxu0 %v604_v32 }
  0x24   :  { %413 = vmatmul.mubr.bf16.vlgmr.msra.gmra.mrb[0].mxu1 %v607_v34  ;;  %371 = vmatprep.mubr.bf16.mxu0 %v610_v36 }
  0x25   :  { %420 = vmatprep.mubr.bf16.mxu1 %v612_v37 }
  0x2b   :  { %372 = vmatmul.mubr.bf16.gmra.mrb[4].mxu0 %v614_v38 }
  0x2c   :  { %421 = vmatmul.mubr.bf16.gmra.mrb[4].mxu1 %v615_v39 }
  0xf6   :  { %v532_v40 = vpop.f32.mrb[0].mxu0 }
  0xf7   :  { %v560_v41 = vpop.f32.mrb[0].mxu1  ;;  %v533_v42 = vpop.f32.mrb[1].mxu0 }
  0xf8   :  { %v534_v43 = vadd.f32 %v533_v42, %v532_v40  ;;  %v561_v44 = vpop.f32.mrb[1].mxu1  ;;  %v535_v45 = vpop.f32.mrb[2].mxu0 }
  0xf9   :  { %v562_v46 = vadd.f32 %v561_v44, %v560_v41  ;;  %v563_v47 = vpop.f32.mrb[2].mxu1  ;;  %v536_v48 = vpop.f32.mrb[3].mxu0 }
  0xfa   :  { %v537_v50 = vadd.f32 %v536_v48, %v535_v45  ;;  %v564_v51 = vpop.f32.mrb[3].mxu1 }
  0xfb   :  { %v415_v52 = vadd.f32 %v562_v46, %v534_v43  ;;  %v565_v53 = vadd.f32 %v564_v51, %v563_v47 }
  0xfd   :  { %v451_v54 = vadd.f32 %v515_v49, %v415_v52  ;;  %v418_v55 = vadd.f32 %v565_v53, %v537_v50 }
  0xfe   :  { %v538_v56 = vpop.f32.mrb[4].mxu0 }
  0xff   :  { %vm455_vm0 = vcmp.ge.f32.partialorder %v451_v54, 0.0  ;;  %v459_v57 = vmul.f32 0.01, %v451_v54  ;;  %v452_v58 = vadd.f32 %v515_v49, %v418_v55  ;;  %v566_v59 = vpop.f32.mrb[4].mxu1  ;;  %v539_v60 = vpop.f32.mrb[5].mxu0 }
 0x100   :  { %v540_v61 = vadd.f32 %v539_v60, %v538_v56  ;;  %v567_v62 = vpop.f32.mrb[5].mxu1  ;;  %v541_v63 = vpop.f32.mrb[6].mxu0 }
 0x101   :  { %v463_v0 = vsel %vm455_vm0, %v451_v54, %v459_v57  ;;  %vm456_vm1 = vcmp.ge.f32.partialorder %v452_v58, 0.0  ;;  %v460_v1 = vmul.f32 0.01, %v452_v58  ;;  %v568_v2 = vadd.f32 %v567_v62, %v566_v59  ;;  %v569_v3 = vpop.f32.mrb[6].mxu1  ;;  %v542_v4 = vpop.f32.mrb[7].mxu0 }
 0x102   :  { %467 = vst [vmem:[%s774_s3] sm:$0xff] %v463_v0  ;;  %v543_v5 = vadd.f32 %v542_v4, %v541_v63  ;;  %v570_v6 = vpop.f32.mrb[7].mxu1 }
 0x103   :  { %v464_v7 = vsel %vm456_vm1, %v452_v58, %v460_v1  ;;  %v423_v8 = vadd.f32 %v568_v2, %v540_v61  ;;  %v571_v9 = vadd.f32 %v570_v6, %v569_v3 }
 0x104   :  { %468 = vst [vmem:[%s774_s3 + $0x8] sm:$0xff] %v464_v7 }
 0x105   :  { %v453_v10 = vadd.f32 %v515_v49, %v423_v8  ;;  %v426_v11 = vadd.f32 %v571_v9, %v543_v5 }
 0x107   :  { %vm457_vm2 = vcmp.ge.f32.partialorder %v453_v10, 0.0  ;;  %v461_v12 = vmul.f32 0.01, %v453_v10  ;;  %v454_v13 = vadd.f32 %v515_v49, %v426_v11 }
 0x109   :  { %v465_v14 = vsel %vm457_vm2, %v453_v10, %v461_v12  ;;  %vm458_vm3 = vcmp.ge.f32.partialorder %v454_v13, 0.0  ;;  %v462_v15 = vmul.f32 0.01, %v454_v13 }
 0x10a   :  { %469 = vst [vmem:[%s774_s3 + $0x10] sm:$0xff] %v465_v14 }
 0x10b   :  { %v466_v16 = vsel %vm458_vm3, %v454_v13, %v462_v15 }
 0x10c   :  { %470 = vst [vmem:[%s774_s3 + $0x18] sm:$0xff] %v466_v16 }

// kernel: discriminator_forward.12
= control target key start
LH: loop header
LB: loop body
LE: loop exit
PB: predicated region body
PF: predicated region fallthrough
CT: control target
= control target key end

     0   :  { %s943_s12 = smov 0   ;;  %s945_s13 = smov 0   ;;  %s1026_s0 = inlined_call_operand.vmem [shape: bf16[8,1024], index: 0, kind: input, shape index: {}]   ;;  %s1027_s1 = inlined_call_operand.vmem [shape: bf16[1024,128], index: 1, kind: input, shape index: {}]   ;;  %s1028_s2 = inlined_call_operand.vmem [shape: f32[1,128], index: 2, kind: input, shape index: {}]   ;;  %s1029_s3 = inlined_call_operand.vmem [shape: f32[8,128], index: 3, kind: output, shape index: {}]  }
   0x1   :  { %s947_s14 = smov 0  }
   0x2 LB: > { %s25_s15 = sadd.s32 1, %s916_s13  ;;  %p746_p0 = scmp.ge.s32.totalorder %s920_s14, 1  ;;  %s920_s14 = sphi %s947_s14, %s13_s14   ;;  %s916_s13 = sphi %s945_s13, %s1031_s13   ;;  %s912_s12 = sphi %s943_s12, %s1030_s12  }
   0x3   : > { %p26_p1 = scmp.ge.s32.totalorder %s25_s15, 2  ;;  %p189_p2 = scmp.lt.s32.totalorder %s920_s14, 3 }
   0x5   : > { %s1033_s15 = smov (%p26_p1, %s25_s15), 0  ;;  %p190_p3 = pnand %p746_p0, %p189_p2 }
   0x6   : > { %s747_s16 = sshll.u32 (!%p190_p3), %s912_s12, 2  ;;  %s749_s17 = sshll.u32 (!%p190_p3), %s912_s12, 6 }
   0x7   : > { %193 = sbr.rel (%p190_p3) target bundleno = 292 (0x124), region = 32  ;;  %p233_p4 = scmp.lt.s32.totalorder (!%p190_p3), %s747_s16, 7 }
   0x8   : > { %p241_p5 = scmp.lt.s32.totalorder (!%p190_p3), %s749_s17, 127  ;;  %p751_p6 = scmp.ne.s32.totalorder (!%p190_p3), %s912_s12, 0 }
   0xe   : > { %s1035_s16 = smov (!%p233_p4, %s747_s16), 7  ;;  %s1037_s17 = smov (!%p241_p5, %s749_s17), 127 }
   0xf   : > { %s748_s18 = sshll.u32 %s1035_s16, 2  ;;  %s750_s22 = sshll.u32 %s1037_s17, 2  ;;  %v922_v0 = vmov (!%p751_p6), 0.0  }
  0x10   : > { %s968_s21 = scalar_lea.vmem %s1026_s0, %s748_s18  ;;  %s973_s25 = scalar_lea.vmem %s1027_s1, %s750_s22  ;;  %264 = vst [vmem:[#allocation2] sm:$0xff] (!%p751_p6), %v922_v0 }
  0x11   : > { %263 = sbr.rel (%p751_p6) target bundleno = 24 (0x18), region = 36 }
  0x18 PF: > { %v862_v1 = vld [vmem:[%s973_s25 + $0x40] sm:$0xff]   ;;  %v866_v5 = vld [vmem:[%s973_s25 + $0x48] sm:$0xff]   ;;  %v870_v9 = vld [vmem:[%s973_s25 + $0x50] sm:$0xff]   ;;  %p788_p7 = scmp.ne.s32.totalorder %s912_s12, 1 }
  0x19   : > { %v863_v2 = vld [vmem:[%s973_s25 + $0xc0] sm:$0xff]   ;;  %793 = vmatprep.subr.bf16.mxu0 %v862_v1  ;;  %v867_v6 = vld [vmem:[%s973_s25 + $0xc8] sm:$0xff]   ;;  %v871_v10 = vld [vmem:[%s973_s25 + $0xd0] sm:$0xff]  }
  0x1a   : > { %v864_v3 = vld [vmem:[%s973_s25] sm:$0xff]   ;;  %815 = vmatprep.subr.bf16.mxu1 %v863_v2  ;;  %v868_v7 = vld [vmem:[%s973_s25 + $0x8] sm:$0xff]   ;;  %v872_v11 = vld [vmem:[%s973_s25 + $0x10] sm:$0xff]  }
  0x1b   : > { %v865_v4 = vld [vmem:[%s973_s25 + $0x80] sm:$0xff]   ;;  %794 = vmatpush3.bf16.msra.mxu0 %v864_v3  ;;  %v869_v8 = vld [vmem:[%s973_s25 + $0x88] sm:$0xff]   ;;  %v873_v12 = vld [vmem:[%s973_s25 + $0x90] sm:$0xff]  }
  0x1c   : > { %816 = vmatpush3.bf16.msra.mxu1 %v865_v4  ;;  %795 = vmatprep.subr.bf16.mxu0 %v866_v5  ;;  %v874_v13 = vld [vmem:[%s973_s25 + $0x58] sm:$0xff]   ;;  %v878_v17 = vld [vmem:[%s973_s25 + $0x60] sm:$0xff]   ;;  %v882_v21 = vld [vmem:[%s973_s25 + $0x68] sm:$0xff]  }
  0x1d   : > { %817 = vmatprep.subr.bf16.mxu1 %v867_v6  ;;  %v875_v14 = vld [vmem:[%s973_s25 + $0xd8] sm:$0xff]   ;;  %v879_v18 = vld [vmem:[%s973_s25 + $0xe0] sm:$0xff]   ;;  %v883_v22 = vld [vmem:[%s973_s25 + $0xe8] sm:$0xff]  }
  0x1e   : > { %v876_v15 = vld [vmem:[%s973_s25 + $0x18] sm:$0xff]   ;;  %v880_v19 = vld [vmem:[%s973_s25 + $0x20] sm:$0xff]   ;;  %v884_v23 = vld [vmem:[%s973_s25 + $0x28] sm:$0xff]  }
  0x1f   : > { %796 = vmatpush3.bf16.msra.mxu0 %v868_v7  ;;  %v877_v16 = vld [vmem:[%s973_s25 + $0x98] sm:$0xff]   ;;  %v881_v20 = vld [vmem:[%s973_s25 + $0xa0] sm:$0xff]   ;;  %v885_v24 = vld [vmem:[%s973_s25 + $0xa8] sm:$0xff]  }
  0x20   : > { %818 = vmatpush3.bf16.msra.mxu1 %v869_v8  ;;  %797 = vmatprep.subr.bf16.mxu0 %v870_v9  ;;  %v886_v25 = vld [vmem:[%s973_s25 + $0x70] sm:$0xff]   ;;  %v890_v29 = vld [vmem:[%s973_s25 + $0x78] sm:$0xff]   ;;  %v266_v33 = vld [vmem:[%s968_s21] sm:$0xff] }
  0x21   : > { %819 = vmatprep.subr.bf16.mxu1 %v871_v10  ;;  %v887_v26 = vld [vmem:[%s973_s25 + $0xf0] sm:$0xff]   ;;  %v891_v30 = vld [vmem:[%s973_s25 + $0xf8] sm:$0xff]   ;;  %v267_v34 = vld [vmem:[%s968_s21 + $0x8] sm:$0xff]  ;;  %v752_v35 = vcombine.low %v266_v33, %v266_v33  ;;  %v753_v36 = vcombine.high %v266_v33, %v266_v33 }
  0x22   : > { %v888_v27 = vld [vmem:[%s973_s25 + $0x30] sm:$0xff]   ;;  %v892_v31 = vld [vmem:[%s973_s25 + $0x38] sm:$0xff]   ;;  %v754_v37 = vcombine.low %v267_v34, %v267_v34  ;;  %v755_v38 = vcombine.high %v267_v34, %v267_v34  ;;  %v265_v47 = vld [vmem:[#allocation2] sm:$0xff] }
  0x23   : > { %798 = vmatpush3.bf16.msra.mxu0 %v872_v11  ;;  %v889_v28 = vld [vmem:[%s973_s25 + $0xb0] sm:$0xff]   ;;  %v893_v32 = vld [vmem:[%s973_s25 + $0xb8] sm:$0xff]   ;;  %570 = vmatprep.mubr.bf16.mxu0 %v753_v36  ;;  %v789_v53 = vld [vmem:[%s1028_s2] ss:$0 sm:$0xff] (!%p788_p7) }
  0x24   : > { %820 = vmatpush3.bf16.msra.mxu1 %v873_v12  ;;  %799 = vmatprep.subr.bf16.mxu0 %v874_v13 }
  0x25   : > { %821 = vmatprep.subr.bf16.mxu1 %v875_v14  ;;  %610 = vmatprep.mubr.bf16.mxu1 %v755_v38 }
  0x27   : > { %800 = vmatpush3.bf16.msra.mxu0 %v876_v15 }
  0x28   : > { %822 = vmatpush3.bf16.msra.mxu1 %v877_v16  ;;  %801 = vmatprep.subr.bf16.mxu0 %v878_v17 }
  0x29   : > { %823 = vmatprep.subr.bf16.mxu1 %v879_v18 }
  0x2b   : > { %802 = vmatpush3.bf16.msra.mxu0 %v880_v19 }
  0x2c   : > { %824 = vmatpush3.bf16.msra.mxu1 %v881_v20  ;;  %803 = vmatprep.subr.bf16.mxu0 %v882_v21 }
  0x2d   : > { %825 = vmatprep.subr.bf16.mxu1 %v883_v22 }
  0x2f   : > { %804 = vmatpush3.bf16.msra.mxu0 %v884_v23 }
  0x30   : > { %826 = vmatpush3.bf16.msra.mxu1 %v885_v24  ;;  %805 = vmatprep.subr.bf16.mxu0 %v886_v25 }
  0x31   : > { %827 = vmatprep.subr.bf16.mxu1 %v887_v26 }
  0x33   : > { %806 = vmatpush3.bf16.msra.mxu0 %v888_v27 }
  0x34   : > { %828 = vmatpush3.bf16.msra.mxu1 %v889_v28  ;;  %807 = vmatprep.subr.bf16.mxu0 %v890_v29 }
  0x35   : > { %829 = vmatprep.subr.bf16.mxu1 %v891_v30 }
  0x37   : > { %808 = vmatpush3.bf16.msra.mxu0 %v892_v31 }
  0x38   : > { %830 = vmatpush3.bf16.msra.mxu1 %v893_v32 }
  0x3a   : > { %571 = vmatmul.mubr.bf16.vlgmr.msra.gmra.mrb[0].mxu0 %v752_v35 }
  0x3b   : > { %611 = vmatmul.mubr.bf16.vlgmr.msra.gmra.mrb[0].mxu1 %v754_v37 }
 0x10d   : > { %v809_v39 = vpop.f32.mrb[0].mxu0 }
 0x10e   : > { %v831_v40 = vpop.f32.mrb[0].mxu1  ;;  %v810_v41 = vpop.f32.mrb[1].mxu0 }
 0x10f   : > { %v832_v42 = vpop.f32.mrb[1].mxu1  ;;  %v811_v43 = vadd.f32 %v810_v41, %v809_v39  ;;  %v812_v45 = vpop.f32.mrb[2].mxu0 }
 0x110   : > { %v833_v44 = vadd.f32 %v832_v42, %v831_v40  ;;  %v834_v46 = vpop.f32.mrb[2].mxu1  ;;  %v813_v48 = vpop.f32.mrb[3].mxu0  ;;  %623 = sbr.rel (%p788_p7) target bundleno = 292 (0x124), region = 40 }
 0x111   : > { %v835_v49 = vpop.f32.mrb[3].mxu1 }
 0x112   : > { %v613_v50 = vadd.f32 %v833_v44, %v811_v43 }
 0x114   : > { %v618_v51 = vadd.f32 %v613_v50, %v265_v47 }
 0x116   : > { %619 = vst [vmem:[#allocation2] sm:$0xff] %v618_v51 }
 0x11d   : > { %v624_v52 = vld [vmem:[#allocation2] sm:$0xff] }
 0x11e   : > { %v632_v54 = vadd.f32 %v789_v53, %v624_v52 }
 0x120   : > { %vm633_vm0 = vcmp.ge.f32.partialorder %v632_v54, 0.0  ;;  %v634_v55 = vmul.f32 0.01, %v632_v54 }
 0x122   : > { %v635_v56 = vsel %vm633_vm0, %v632_v54, %v634_v55 }
 0x123   : > { %636 = vst [vmem:[%s1029_s3] sm:$0xff] %v635_v56 }
 0x124 PF: > { %s13_s14 = sadd.s32 1, %s920_s14   ;;  %s1030_s12 = smov %s916_s13 }
 0x125   : > { %p10_p8 = scmp.ge.s32.totalorder %s13_s14, 4   ;;  %s1031_s13 = smov %s1033_s15 }
 0x127   :  { %12 = sbr.rel (!%p10_p8) target bundleno = 2 (0x2), region = 76 }

// kernel: discriminator_forward.14
= control target key start
LH: loop header
LB: loop body
LE: loop exit
PB: predicated region body
PF: predicated region fallthrough
CT: control target
= control target key end

     0   :  { %s940_s12 = smov 0   ;;  %s942_s13 = smov 0   ;;  %s1023_s0 = inlined_call_operand.vmem [shape: bf16[8,1024], index: 0, kind: input, shape index: {}]   ;;  %s1024_s1 = inlined_call_operand.vmem [shape: bf16[1024,128], index: 1, kind: input, shape index: {}]   ;;  %s1025_s2 = inlined_call_operand.vmem [shape: f32[1,128], index: 2, kind: input, shape index: {}]   ;;  %s1026_s3 = inlined_call_operand.vmem [shape: f32[8,128], index: 3, kind: output, shape index: {}]  }
   0x1   :  { %s944_s14 = smov 0  }
   0x2 LB: > { %s25_s15 = sadd.s32 1, %s913_s13  ;;  %p743_p0 = scmp.ge.s32.totalorder %s917_s14, 1  ;;  %s917_s14 = sphi %s944_s14, %s13_s14   ;;  %s913_s13 = sphi %s942_s13, %s1028_s13   ;;  %s909_s12 = sphi %s940_s12, %s1027_s12  }
   0x3   : > { %p26_p1 = scmp.ge.s32.totalorder %s25_s15, 2  ;;  %p189_p2 = scmp.lt.s32.totalorder %s917_s14, 3 }
   0x5   : > { %s1030_s15 = smov (%p26_p1, %s25_s15), 0  ;;  %p190_p3 = pnand %p743_p0, %p189_p2 }
   0x6   : > { %s744_s16 = sshll.u32 (!%p190_p3), %s909_s12, 2  ;;  %s746_s17 = sshll.u32 (!%p190_p3), %s909_s12, 6 }
   0x7   : > { %193 = sbr.rel (%p190_p3) target bundleno = 289 (0x121), region = 32  ;;  %p233_p4 = scmp.lt.s32.totalorder (!%p190_p3), %s744_s16, 7 }
   0x8   : > { %p241_p5 = scmp.lt.s32.totalorder (!%p190_p3), %s746_s17, 127  ;;  %p748_p6 = scmp.ne.s32.totalorder (!%p190_p3), %s909_s12, 0 }
   0xe   : > { %s1032_s16 = smov (!%p233_p4, %s744_s16), 7  ;;  %s1034_s17 = smov (!%p241_p5, %s746_s17), 127 }
   0xf   : > { %s745_s18 = sshll.u32 %s1032_s16, 2  ;;  %s747_s22 = sshll.u32 %s1034_s17, 2  ;;  %v919_v0 = vmov (!%p748_p6), 0.0  }
  0x10   : > { %s965_s21 = scalar_lea.vmem %s1023_s0, %s745_s18  ;;  %s970_s25 = scalar_lea.vmem %s1024_s1, %s747_s22  ;;  %264 = vst [vmem:[#allocation2] sm:$0xff] (!%p748_p6), %v919_v0 }
  0x11   : > { %263 = sbr.rel (%p748_p6) target bundleno = 24 (0x18), region = 36 }
  0x18 PF: > { %v859_v1 = vld [vmem:[%s970_s25 + $0x40] sm:$0xff]   ;;  %v863_v5 = vld [vmem:[%s970_s25 + $0x48] sm:$0xff]   ;;  %v867_v9 = vld [vmem:[%s970_s25 + $0x50] sm:$0xff]   ;;  %p785_p7 = scmp.ne.s32.totalorder %s909_s12, 1 }
  0x19   : > { %v860_v2 = vld [vmem:[%s970_s25 + $0xc0] sm:$0xff]   ;;  %790 = vmatprep.subr.bf16.mxu0 %v859_v1  ;;  %v864_v6 = vld [vmem:[%s970_s25 + $0xc8] sm:$0xff]   ;;  %v868_v10 = vld [vmem:[%s970_s25 + $0xd0] sm:$0xff]  }
  0x1a   : > { %v861_v3 = vld [vmem:[%s970_s25] sm:$0xff]   ;;  %812 = vmatprep.subr.bf16.mxu1 %v860_v2  ;;  %v865_v7 = vld [vmem:[%s970_s25 + $0x8] sm:$0xff]   ;;  %v869_v11 = vld [vmem:[%s970_s25 + $0x10] sm:$0xff]  }
  0x1b   : > { %v862_v4 = vld [vmem:[%s970_s25 + $0x80] sm:$0xff]   ;;  %791 = vmatpush3.bf16.msra.mxu0 %v861_v3  ;;  %v866_v8 = vld [vmem:[%s970_s25 + $0x88] sm:$0xff]   ;;  %v870_v12 = vld [vmem:[%s970_s25 + $0x90] sm:$0xff]  }
  0x1c   : > { %813 = vmatpush3.bf16.msra.mxu1 %v862_v4  ;;  %792 = vmatprep.subr.bf16.mxu0 %v863_v5  ;;  %v871_v13 = vld [vmem:[%s970_s25 + $0x58] sm:$0xff]   ;;  %v875_v17 = vld [vmem:[%s970_s25 + $0x60] sm:$0xff]   ;;  %v879_v21 = vld [vmem:[%s970_s25 + $0x68] sm:$0xff]  }
  0x1d   : > { %814 = vmatprep.subr.bf16.mxu1 %v864_v6  ;;  %v872_v14 = vld [vmem:[%s970_s25 + $0xd8] sm:$0xff]   ;;  %v876_v18 = vld [vmem:[%s970_s25 + $0xe0] sm:$0xff]   ;;  %v880_v22 = vld [vmem:[%s970_s25 + $0xe8] sm:$0xff]  }
  0x1e   : > { %v873_v15 = vld [vmem:[%s970_s25 + $0x18] sm:$0xff]   ;;  %v877_v19 = vld [vmem:[%s970_s25 + $0x20] sm:$0xff]   ;;  %v881_v23 = vld [vmem:[%s970_s25 + $0x28] sm:$0xff]  }
  0x1f   : > { %793 = vmatpush3.bf16.msra.mxu0 %v865_v7  ;;  %v874_v16 = vld [vmem:[%s970_s25 + $0x98] sm:$0xff]   ;;  %v878_v20 = vld [vmem:[%s970_s25 + $0xa0] sm:$0xff]   ;;  %v882_v24 = vld [vmem:[%s970_s25 + $0xa8] sm:$0xff]  }
  0x20   : > { %815 = vmatpush3.bf16.msra.mxu1 %v866_v8  ;;  %794 = vmatprep.subr.bf16.mxu0 %v867_v9  ;;  %v883_v25 = vld [vmem:[%s970_s25 + $0x70] sm:$0xff]   ;;  %v887_v29 = vld [vmem:[%s970_s25 + $0x78] sm:$0xff]   ;;  %v266_v33 = vld [vmem:[%s965_s21] sm:$0xff] }
  0x21   : > { %816 = vmatprep.subr.bf16.mxu1 %v868_v10  ;;  %v884_v26 = vld [vmem:[%s970_s25 + $0xf0] sm:$0xff]   ;;  %v888_v30 = vld [vmem:[%s970_s25 + $0xf8] sm:$0xff]   ;;  %v267_v34 = vld [vmem:[%s965_s21 + $0x8] sm:$0xff]  ;;  %v749_v35 = vcombine.low %v266_v33, %v266_v33  ;;  %v750_v36 = vcombine.high %v266_v33, %v266_v33 }
  0x22   : > { %v885_v27 = vld [vmem:[%s970_s25 + $0x30] sm:$0xff]   ;;  %v889_v31 = vld [vmem:[%s970_s25 + $0x38] sm:$0xff]   ;;  %v751_v37 = vcombine.low %v267_v34, %v267_v34  ;;  %v752_v38 = vcombine.high %v267_v34, %v267_v34  ;;  %v265_v47 = vld [vmem:[#allocation2] sm:$0xff] }
  0x23   : > { %795 = vmatpush3.bf16.msra.mxu0 %v869_v11  ;;  %v886_v28 = vld [vmem:[%s970_s25 + $0xb0] sm:$0xff]   ;;  %v890_v32 = vld [vmem:[%s970_s25 + $0xb8] sm:$0xff]   ;;  %570 = vmatprep.mubr.bf16.mxu0 %v750_v36  ;;  %v786_v53 = vld [vmem:[%s1025_s2] ss:$0 sm:$0xff] (!%p785_p7) }
  0x24   : > { %817 = vmatpush3.bf16.msra.mxu1 %v870_v12  ;;  %796 = vmatprep.subr.bf16.mxu0 %v871_v13 }
  0x25   : > { %818 = vmatprep.subr.bf16.mxu1 %v872_v14  ;;  %610 = vmatprep.mubr.bf16.mxu1 %v752_v38 }
  0x27   : > { %797 = vmatpush3.bf16.msra.mxu0 %v873_v15 }
  0x28   : > { %819 = vmatpush3.bf16.msra.mxu1 %v874_v16  ;;  %798 = vmatprep.subr.bf16.mxu0 %v875_v17 }
  0x29   : > { %820 = vmatprep.subr.bf16.mxu1 %v876_v18 }
  0x2b   : > { %799 = vmatpush3.bf16.msra.mxu0 %v877_v19 }
  0x2c   : > { %821 = vmatpush3.bf16.msra.mxu1 %v878_v20  ;;  %800 = vmatprep.subr.bf16.mxu0 %v879_v21 }
  0x2d   : > { %822 = vmatprep.subr.bf16.mxu1 %v880_v22 }
  0x2f   : > { %801 = vmatpush3.bf16.msra.mxu0 %v881_v23 }
  0x30   : > { %823 = vmatpush3.bf16.msra.mxu1 %v882_v24  ;;  %802 = vmatprep.subr.bf16.mxu0 %v883_v25 }
  0x31   : > { %824 = vmatprep.subr.bf16.mxu1 %v884_v26 }
  0x33   : > { %803 = vmatpush3.bf16.msra.mxu0 %v885_v27 }
  0x34   : > { %825 = vmatpush3.bf16.msra.mxu1 %v886_v28  ;;  %804 = vmatprep.subr.bf16.mxu0 %v887_v29 }
  0x35   : > { %826 = vmatprep.subr.bf16.mxu1 %v888_v30 }
  0x37   : > { %805 = vmatpush3.bf16.msra.mxu0 %v889_v31 }
  0x38   : > { %827 = vmatpush3.bf16.msra.mxu1 %v890_v32 }
  0x3a   : > { %571 = vmatmul.mubr.bf16.vlgmr.msra.gmra.mrb[0].mxu0 %v749_v35 }
  0x3b   : > { %611 = vmatmul.mubr.bf16.vlgmr.msra.gmra.mrb[0].mxu1 %v751_v37 }
 0x10d   : > { %v806_v39 = vpop.f32.mrb[0].mxu0 }
 0x10e   : > { %v828_v40 = vpop.f32.mrb[0].mxu1  ;;  %v807_v41 = vpop.f32.mrb[1].mxu0 }
 0x10f   : > { %v829_v42 = vpop.f32.mrb[1].mxu1  ;;  %v808_v43 = vadd.f32 %v807_v41, %v806_v39  ;;  %v809_v45 = vpop.f32.mrb[2].mxu0 }
 0x110   : > { %v830_v44 = vadd.f32 %v829_v42, %v828_v40  ;;  %v831_v46 = vpop.f32.mrb[2].mxu1  ;;  %v810_v48 = vpop.f32.mrb[3].mxu0  ;;  %623 = sbr.rel (%p785_p7) target bundleno = 289 (0x121), region = 40 }
 0x111   : > { %v832_v49 = vpop.f32.mrb[3].mxu1 }
 0x112   : > { %v613_v50 = vadd.f32 %v830_v44, %v808_v43 }
 0x114   : > { %v618_v51 = vadd.f32 %v613_v50, %v265_v47 }
 0x116   : > { %619 = vst [vmem:[#allocation2] sm:$0xff] %v618_v51 }
 0x11d   : > { %v624_v52 = vld [vmem:[#allocation2] sm:$0xff] }
 0x11e   : > { %v632_v54 = vadd.f32 %v786_v53, %v624_v52 }
 0x120   : > { %633 = vst [vmem:[%s1026_s3] sm:$0xff] %v632_v54 }
 0x121 PF: > { %s13_s14 = sadd.s32 1, %s917_s14   ;;  %s1027_s12 = smov %s913_s13 }
 0x122   : > { %p10_p8 = scmp.ge.s32.totalorder %s13_s14, 4   ;;  %s1028_s13 = smov %s1030_s15 }
 0x124   :  { %12 = sbr.rel (!%p10_p8) target bundleno = 2 (0x2), region = 76 }

// kernel: discriminator_forward.15
= control target key start
LH: loop header
LB: loop body
LE: loop exit
PB: predicated region body
PF: predicated region fallthrough
CT: control target
= control target key end

     0   :  { %v146_v0 = vmov 0.0   ;;  %vm147_vm0 = vmmov 0   ;;  %vm54_vm1 = vcmask 523264   ;;  %s189_s1 = inlined_call_operand.vmem [shape: bf16[64,128], index: 1, kind: input, shape index: {}]   ;;  %s190_s0 = inlined_call_operand.vmem [shape: bf16[8,64], index: 0, kind: input, shape index: {}]   ;;  %s191_s2 = inlined_call_operand.vmem [shape: f32[1,128], index: 2, kind: input, shape index: {}]   ;;  %s192_s3 = inlined_call_operand.vmem [shape: f32[8,128], index: 3, kind: output, shape index: {}]  }
   0x1   :  { %128 = vmatprep.subr.bf16.mxu0 %v146_v0  ;;  %v142_v1 = vld [vmem:[%s189_s1] sm:$0xff]   ;;  %136 = vmatprep.mubr.msk.bf16.mxu0 %vm147_vm0, %v146_v0  ;;  %v143_v2 = vld [vmem:[%s189_s1 + $0x8] sm:$0xff]   ;;  %v144_v3 = vld [vmem:[%s189_s1 + $0x10] sm:$0xff]  }
   0x2   :  { %129 = vmatpush3.bf16.msra.mxu0 %v142_v1  ;;  %v145_v4 = vld [vmem:[%s189_s1 + $0x18] sm:$0xff]   ;;  %v21_v5 = vld [vmem:[%s190_s0] sm:$0xf] }
   0x3   :  { %130 = vmatprep.subr.bf16.mxu0 %v146_v0  ;;  %v122_v6 = vld [vmem:[%s191_s2] ss:$0 sm:$0xff] }
   0x6   :  { %131 = vmatpush3.bf16.msra.mxu0 %v143_v2 }
   0x7   :  { %132 = vmatprep.subr.bf16.mxu0 %v146_v0 }
   0xa   :  { %133 = vmatpush3.bf16.msra.mxu0 %v144_v3 }
   0xb   :  { %134 = vmatprep.subr.bf16.mxu0 %v146_v0 }
   0xe   :  { %135 = vmatpush3.bf16.msra.mxu0 %v145_v4 }
  0x11   :  { %137 = vmatmul.mubr.msk.bf16.vlgmr.msra.gmra.mrb[0].mxu0 %vm54_vm1, %v21_v5 }
  0xe4   :  { %v92_v7 = vpop.f32.mrb[0].mxu0 }
  0xe5   :  { %v111_v8 = vadd.f32 %v122_v6, %v92_v7  ;;  %v138_v9 = vpop.f32.mrb[1].mxu0 }
  0xe6   :  { %v95_v10 = vpop.f32.mrb[2].mxu0 }
  0xe7   :  { %112 = vst [vmem:[%s192_s3] sm:$0xff] %v111_v8  ;;  %v139_v11 = vpop.f32.mrb[3].mxu0 }

</bundles_post_ra>
